<compile_context>
chip_gen: v7x
topology: tpu7x:2x2x1
jax: 0.10.0
libtpu: 0.0.40
codegen_flags: <defaults>
</compile_context>

<pallas_src>
import jax
import jax.numpy as jnp
from jax.experimental import pallas as pl
from jax.experimental.pallas import tpu as pltpu

HIDDEN = 50          # fixed by the PyTorch module
HP = 128             # per-gate lane padding (vreg-aligned slices)


# ----------------------------------------------------------------------------
# Parameter creation (PyTorch layout) and packing for the kernel
# ----------------------------------------------------------------------------
def init_torch_params(key, input_size, hidden=HIDDEN):
    """PyTorch-style GRU/Linear params: uniform(-1/sqrt(H), 1/sqrt(H))."""
    bound = 1.0 / (hidden ** 0.5)
    keys = jax.random.split(key, 10)

    def u(k, shape):
        return jax.random.uniform(k, shape, jnp.float32, -bound, bound)

    return dict(
        w_ih0=u(keys[0], (3 * hidden, input_size)),   # gate order (r, z, n)
        w_hh0=u(keys[1], (3 * hidden, hidden)),
        b_ih0=u(keys[2], (3 * hidden,)),
        b_hh0=u(keys[3], (3 * hidden,)),
        w_ih1=u(keys[4], (3 * hidden, hidden)),
        w_hh1=u(keys[5], (3 * hidden, hidden)),
        b_ih1=u(keys[6], (3 * hidden,)),
        b_hh1=u(keys[7], (3 * hidden,)),
        w_fc=u(keys[8], (1, hidden)),
        b_fc=u(keys[9], (1,)),
    )


def _pad_gate_cols(mat_3h, rows_out, hidden=HIDDEN):
    """(rows, 3H) -> (rows_out, 3*HP): each gate's H columns placed at g*HP."""
    rows = mat_3h.shape[0]
    out = jnp.zeros((rows_out, 3 * HP), jnp.float32)
    for g in range(3):
        out = out.at[:rows, g * HP:g * HP + hidden].set(
            mat_3h[:, g * hidden:(g + 1) * hidden])
    return out


def pack_params(p, hidden=HIDDEN):
    """Pack PyTorch-layout params into the fused, lane-padded layout.

    Per layer (gate blocks r | z | n, each padded to HP=128 lanes):
      wi : (in_rows, 3*HP) = pad(w_ih^T)
      wh : (HP,      3*HP) = pad(w_hh^T)        (rows H..HP-1 are zero)
      bi : (1, 3*HP) = pad([b_ir+b_hr | b_iz+b_hz | b_in])
      bh : (1, 3*HP) = pad([0 | 0 | b_hn])      (scaled by r, kept apart)
    fc   : wfc (1, HP) zero-padded row vector, bfc (1, 1).
    """
    H = hidden

    def pack_layer(w_ih, w_hh, b_ih, b_hh, in_rows_out):
        wi = _pad_gate_cols(jnp.transpose(w_ih), in_rows_out, H)
        wh = _pad_gate_cols(jnp.transpose(w_hh), HP, H)
        bi_raw = jnp.concatenate([b_ih[:2 * H] + b_hh[:2 * H], b_ih[2 * H:]])
        bh_raw = jnp.concatenate([jnp.zeros((2 * H,), jnp.float32), b_hh[2 * H:]])
        bi = _pad_gate_cols(bi_raw.reshape(1, 3 * H), 1, H)
        bh = _pad_gate_cols(bh_raw.reshape(1, 3 * H), 1, H)
        return wi, wh, bi, bh

    D = p["w_ih0"].shape[1]
    wi0, wh0, bi0, bh0 = pack_layer(p["w_ih0"], p["w_hh0"], p["b_ih0"], p["b_hh0"], D)
    wi1, wh1, bi1, bh1 = pack_layer(p["w_ih1"], p["w_hh1"], p["b_ih1"], p["b_hh1"], HP)

    wfc = jnp.zeros((1, HP), jnp.float32).at[:, :H].set(p["w_fc"].reshape(1, H))
    bfc = p["b_fc"].reshape(1, 1)
    return (wi0, wh0, bi0, bh0, wi1, wh1, bi1, bh1, wfc, bfc)


# ----------------------------------------------------------------------------
# Pallas kernel + wrapper
# ----------------------------------------------------------------------------
def symbolic_regression_gru(x, packed_params):
    """x: (B, T, D) float32 (batch_first). Returns (B, 1) float32."""
    B, T, D = x.shape

    # Time-major, flattened to (T*B, D) so layer-0's input projection is one matmul.
    x2d = jnp.transpose(x, (1, 0, 2)).reshape(T * B, D)

    def kernel(x2d_ref, wi0_ref, wh0_ref, bi0_ref, bh0_ref,
               wi1_ref, wh1_ref, bi1_ref, bh1_ref,
               wfc_ref, bfc_ref, out_ref):
        # ---- precompute layer-0 input projection for all timesteps (one MXU op)
        gi0_all = (jnp.dot(x2d_ref[...], wi0_ref[...],
                           preferred_element_type=jnp.float32) + bi0_ref[...])

        # Hoist all weight/bias loads out of the recurrent loop.
        wh0 = wh0_ref[...]
        bh0 = bh0_ref[...]
        wi1 = wi1_ref[...]
        bi1 = bi1_ref[...]
        wh1 = wh1_ref[...]
        bh1 = bh1_ref[...]

        def cell(gi, h_prev, wh, bh):
            # gi already contains x-projection + folded biases.
            # Slices below are at lane offsets 0 / 128 / 256, width 128:
            # vreg-aligned, so they lower to plain vreg selects (no XLU work).
            gh = jnp.dot(h_prev, wh, preferred_element_type=jnp.float32) + bh
            r = jax.nn.sigmoid(gi[:, 0:HP] + gh[:, 0:HP])
            z = jax.nn.sigmoid(gi[:, HP:2 * HP] + gh[:, HP:2 * HP])
            n = jnp.tanh(gi[:, 2 * HP:3 * HP] + r * gh[:, 2 * HP:3 * HP])
            return (1.0 - z) * n + z * h_prev

        # Hidden states live in registers (carried values), not VMEM scratch.
        # Padded lanes (H..HP-1) remain exactly 0 through the recurrence.
        h0 = jnp.zeros((B, HP), jnp.float32)
        h1 = jnp.zeros((B, HP), jnp.float32)

        # Static unroll over time (T is small & known at trace time).
        for t in range(T):
            gi0 = gi0_all[t * B:(t + 1) * B, :]
            h0 = cell(gi0, h0, wh0, bh0)
            gi1 = jnp.dot(h0, wi1, preferred_element_type=jnp.float32) + bi1
            h1 = cell(gi1, h1, wh1, bh1)

        # fc(50 -> 1) on the last-step hidden of the top layer:
        # VPU multiply + lane reduction instead of an N=1 MXU pass.
        y = jnp.sum(h1 * wfc_ref[...], axis=-1, keepdims=True) + bfc_ref[...]
        out_ref[...] = y.astype(out_ref.dtype)

    vmem = lambda: pl.BlockSpec(memory_space=pltpu.MemorySpace.VMEM)

    # TODO(synk): for large batches on v7x, add a "parallel" batch grid axis so
    # both TensorCores are used; unnecessary at B=2.
    return pl.pallas_call(
        kernel,
        out_shape=jax.ShapeDtypeStruct((B, 1), jnp.float32),
        in_specs=[vmem() for _ in range(11)],
        out_specs=vmem(),
    )(x2d, *packed_params)


# ----------------------------------------------------------------------------
# Pure-JAX reference (PyTorch semantics, PyTorch-layout params)
# ----------------------------------------------------------------------------
def reference_forward(x, p, hidden=HIDDEN):
    H = hidden
    B, T, _ = x.shape

    def cell(xt, h, w_ih, w_hh, b_ih, b_hh):
        gi = xt @ w_ih.T + b_ih
        gh = h @ w_hh.T + b_hh
        r = jax.nn.sigmoid(gi[:, :H] + gh[:, :H])
        z = jax.nn.sigmoid(gi[:, H:2 * H] + gh[:, H:2 * H])
        n = jnp.tanh(gi[:, 2 * H:] + r * gh[:, 2 * H:])
        return (1.0 - z) * n + z * h

    h0 = jnp.zeros((B, H), jnp.float32)
    h1 = jnp.zeros((B, H), jnp.float32)
    for t in range(T):
        xt = x[:, t, :]
        h0 = cell(xt, h0, p["w_ih0"], p["w_hh0"], p["b_ih0"], p["b_hh0"])
        h1 = cell(h0, h1, p["w_ih1"], p["w_hh1"], p["b_ih1"], p["b_hh1"])
    return h1 @ p["w_fc"].T + p["b_fc"]


if __name__ == "__main__":
    B, T, D = 2, 8, 4   # batch=2, seq=8, input_size=4 (hidden fixed at 50 by module)

    x = jax.random.normal(jax.random.PRNGKey(0), (B, T, D), dtype=jnp.float32)
    torch_params = init_torch_params(jax.random.PRNGKey(1), input_size=D)
    packed = pack_params(torch_params)

    out = symbolic_regression_gru(x, packed)
    out = jax.block_until_ready(out)

    ref = reference_forward(x, torch_params)
    assert out.shape == (B, 1)
    assert jnp.allclose(out, ref, atol=1e-4, rtol=1e-4), (out, ref)

    print("KERNEL_OK")
</pallas_src>

<mosaic_0001>
module attributes {stable_mosaic.version = 11 : i64} {
  func.func @kernel(%arg0: memref<16x4xf32, #tpu.memory_space<vmem>>, %arg1: memref<4x384xf32, #tpu.memory_space<vmem>>, %arg2: memref<128x384xf32, #tpu.memory_space<vmem>>, %arg3: memref<1x384xf32, #tpu.memory_space<vmem>>, %arg4: memref<1x384xf32, #tpu.memory_space<vmem>>, %arg5: memref<128x384xf32, #tpu.memory_space<vmem>>, %arg6: memref<128x384xf32, #tpu.memory_space<vmem>>, %arg7: memref<1x384xf32, #tpu.memory_space<vmem>>, %arg8: memref<1x384xf32, #tpu.memory_space<vmem>>, %arg9: memref<1x128xf32, #tpu.memory_space<vmem>>, %arg10: memref<1x1xf32, #tpu.memory_space<vmem>>, %arg11: memref<2x1xf32, #tpu.memory_space<vmem>>) attributes {dimension_semantics = [], scalar_prefetch = 0 : i64, scratch_operands = 0 : i64, tpu.core_type = #tpu.core_type<tc>} {
    %c0 = arith.constant 0 : index
    %c0_0 = arith.constant 0 : index
    %0 = vector.load %arg0[%c0, %c0_0] : memref<16x4xf32, #tpu.memory_space<vmem>>, vector<16x4xf32>
    %c0_1 = arith.constant 0 : index
    %c0_2 = arith.constant 0 : index
    %1 = vector.load %arg1[%c0_1, %c0_2] : memref<4x384xf32, #tpu.memory_space<vmem>>, vector<4x384xf32>
    %cst = arith.constant dense<0.000000e+00> : vector<16x384xf32>
    %2 = tpu.matmul %0, %1, %cst {dimension_numbers = #tpu.dot_dimension_numbers<[1], [0], [0], [1], [0, 0, 1, 1], [], []>} : vector<16x4xf32>, vector<4x384xf32>, vector<16x384xf32> -> vector<16x384xf32>
    %c0_3 = arith.constant 0 : index
    %c0_4 = arith.constant 0 : index
    %3 = vector.load %arg3[%c0_3, %c0_4] : memref<1x384xf32, #tpu.memory_space<vmem>>, vector<1x384xf32>
    %4 = vector.broadcast %3 : vector<1x384xf32> to vector<16x384xf32>
    %5 = arith.addf %2, %4 : vector<16x384xf32>
    %c0_5 = arith.constant 0 : index
    %c0_6 = arith.constant 0 : index
    %6 = vector.load %arg2[%c0_5, %c0_6] : memref<128x384xf32, #tpu.memory_space<vmem>>, vector<128x384xf32>
    %c0_7 = arith.constant 0 : index
    %c0_8 = arith.constant 0 : index
    %7 = vector.load %arg4[%c0_7, %c0_8] : memref<1x384xf32, #tpu.memory_space<vmem>>, vector<1x384xf32>
    %c0_9 = arith.constant 0 : index
    %c0_10 = arith.constant 0 : index
    %8 = vector.load %arg5[%c0_9, %c0_10] : memref<128x384xf32, #tpu.memory_space<vmem>>, vector<128x384xf32>
    %c0_11 = arith.constant 0 : index
    %c0_12 = arith.constant 0 : index
    %9 = vector.load %arg7[%c0_11, %c0_12] : memref<1x384xf32, #tpu.memory_space<vmem>>, vector<1x384xf32>
    %c0_13 = arith.constant 0 : index
    %c0_14 = arith.constant 0 : index
    %10 = vector.load %arg6[%c0_13, %c0_14] : memref<128x384xf32, #tpu.memory_space<vmem>>, vector<128x384xf32>
    %c0_15 = arith.constant 0 : index
    %c0_16 = arith.constant 0 : index
    %11 = vector.load %arg8[%c0_15, %c0_16] : memref<1x384xf32, #tpu.memory_space<vmem>>, vector<1x384xf32>
    %cst_17 = arith.constant 0.000000e+00 : f32
    %12 = vector.broadcast %cst_17 : f32 to vector<2x128xf32>
    %cst_18 = arith.constant 0.000000e+00 : f32
    %13 = vector.broadcast %cst_18 : f32 to vector<2x128xf32>
    %14 = vector.extract_strided_slice %5 {offsets = [0, 0], sizes = [2, 384], strides = [1, 1]} : vector<16x384xf32> to vector<2x384xf32>
    %cst_19 = arith.constant dense<0.000000e+00> : vector<2x384xf32>
    %15 = tpu.matmul %12, %6, %cst_19 {dimension_numbers = #tpu.dot_dimension_numbers<[1], [0], [0], [1], [0, 0, 1, 1], [], []>} : vector<2x128xf32>, vector<128x384xf32>, vector<2x384xf32> -> vector<2x384xf32>
    %16 = vector.broadcast %7 : vector<1x384xf32> to vector<2x384xf32>
    %17 = arith.addf %15, %16 : vector<2x384xf32>
    %18 = vector.extract_strided_slice %14 {offsets = [0, 0], sizes = [2, 128], strides = [1, 1]} : vector<2x384xf32> to vector<2x128xf32>
    %19 = vector.extract_strided_slice %17 {offsets = [0, 0], sizes = [2, 128], strides = [1, 1]} : vector<2x384xf32> to vector<2x128xf32>
    %20 = arith.addf %18, %19 : vector<2x128xf32>
    %21 = arith.negf %20 : vector<2x128xf32>
    %22 = math.exp %21 : vector<2x128xf32>
    %cst_20 = arith.constant 1.000000e+00 : f32
    %23 = vector.broadcast %cst_20 : f32 to vector<2x128xf32>
    %24 = arith.addf %23, %22 : vector<2x128xf32>
    %25 = arith.divf %23, %24 : vector<2x128xf32>
    %26 = vector.extract_strided_slice %14 {offsets = [0, 128], sizes = [2, 128], strides = [1, 1]} : vector<2x384xf32> to vector<2x128xf32>
    %27 = vector.extract_strided_slice %17 {offsets = [0, 128], sizes = [2, 128], strides = [1, 1]} : vector<2x384xf32> to vector<2x128xf32>
    %28 = arith.addf %26, %27 : vector<2x128xf32>
    %29 = arith.negf %28 : vector<2x128xf32>
    %30 = math.exp %29 : vector<2x128xf32>
    %cst_21 = arith.constant 1.000000e+00 : f32
    %31 = vector.broadcast %cst_21 : f32 to vector<2x128xf32>
    %32 = arith.addf %31, %30 : vector<2x128xf32>
    %33 = arith.divf %31, %32 : vector<2x128xf32>
    %34 = vector.extract_strided_slice %14 {offsets = [0, 256], sizes = [2, 128], strides = [1, 1]} : vector<2x384xf32> to vector<2x128xf32>
    %35 = vector.extract_strided_slice %17 {offsets = [0, 256], sizes = [2, 128], strides = [1, 1]} : vector<2x384xf32> to vector<2x128xf32>
    %36 = arith.mulf %25, %35 : vector<2x128xf32>
    %37 = arith.addf %34, %36 : vector<2x128xf32>
    %38 = math.tanh %37 : vector<2x128xf32>
    %cst_22 = arith.constant 1.000000e+00 : f32
    %39 = vector.broadcast %cst_22 : f32 to vector<2x128xf32>
    %40 = arith.subf %39, %33 : vector<2x128xf32>
    %41 = arith.mulf %40, %38 : vector<2x128xf32>
    %42 = arith.mulf %33, %12 : vector<2x128xf32>
    %43 = arith.addf %41, %42 : vector<2x128xf32>
    %cst_23 = arith.constant dense<0.000000e+00> : vector<2x384xf32>
    %44 = tpu.matmul %43, %8, %cst_23 {dimension_numbers = #tpu.dot_dimension_numbers<[1], [0], [0], [1], [0, 0, 1, 1], [], []>} : vector<2x128xf32>, vector<128x384xf32>, vector<2x384xf32> -> vector<2x384xf32>
    %45 = vector.broadcast %9 : vector<1x384xf32> to vector<2x384xf32>
    %46 = arith.addf %44, %45 : vector<2x384xf32>
    %cst_24 = arith.constant dense<0.000000e+00> : vector<2x384xf32>
    %47 = tpu.matmul %13, %10, %cst_24 {dimension_numbers = #tpu.dot_dimension_numbers<[1], [0], [0], [1], [0, 0, 1, 1], [], []>} : vector<2x128xf32>, vector<128x384xf32>, vector<2x384xf32> -> vector<2x384xf32>
    %48 = vector.broadcast %11 : vector<1x384xf32> to vector<2x384xf32>
    %49 = arith.addf %47, %48 : vector<2x384xf32>
    %50 = vector.extract_strided_slice %46 {offsets = [0, 0], sizes = [2, 128], strides = [1, 1]} : vector<2x384xf32> to vector<2x128xf32>
    %51 = vector.extract_strided_slice %49 {offsets = [0, 0], sizes = [2, 128], strides = [1, 1]} : vector<2x384xf32> to vector<2x128xf32>
    %52 = arith.addf %50, %51 : vector<2x128xf32>
    %53 = arith.negf %52 : vector<2x128xf32>
    %54 = math.exp %53 : vector<2x128xf32>
    %cst_25 = arith.constant 1.000000e+00 : f32
    %55 = vector.broadcast %cst_25 : f32 to vector<2x128xf32>
    %56 = arith.addf %55, %54 : vector<2x128xf32>
    %57 = arith.divf %55, %56 : vector<2x128xf32>
    %58 = vector.extract_strided_slice %46 {offsets = [0, 128], sizes = [2, 128], strides = [1, 1]} : vector<2x384xf32> to vector<2x128xf32>
    %59 = vector.extract_strided_slice %49 {offsets = [0, 128], sizes = [2, 128], strides = [1, 1]} : vector<2x384xf32> to vector<2x128xf32>
    %60 = arith.addf %58, %59 : vector<2x128xf32>
    %61 = arith.negf %60 : vector<2x128xf32>
    %62 = math.exp %61 : vector<2x128xf32>
    %cst_26 = arith.constant 1.000000e+00 : f32
    %63 = vector.broadcast %cst_26 : f32 to vector<2x128xf32>
    %64 = arith.addf %63, %62 : vector<2x128xf32>
    %65 = arith.divf %63, %64 : vector<2x128xf32>
    %66 = vector.extract_strided_slice %46 {offsets = [0, 256], sizes = [2, 128], strides = [1, 1]} : vector<2x384xf32> to vector<2x128xf32>
    %67 = vector.extract_strided_slice %49 {offsets = [0, 256], sizes = [2, 128], strides = [1, 1]} : vector<2x384xf32> to vector<2x128xf32>
    %68 = arith.mulf %57, %67 : vector<2x128xf32>
    %69 = arith.addf %66, %68 : vector<2x128xf32>
    %70 = math.tanh %69 : vector<2x128xf32>
    %cst_27 = arith.constant 1.000000e+00 : f32
    %71 = vector.broadcast %cst_27 : f32 to vector<2x128xf32>
    %72 = arith.subf %71, %65 : vector<2x128xf32>
    %73 = arith.mulf %72, %70 : vector<2x128xf32>
    %74 = arith.mulf %65, %13 : vector<2x128xf32>
    %75 = arith.addf %73, %74 : vector<2x128xf32>
    %76 = vector.extract_strided_slice %5 {offsets = [2, 0], sizes = [2, 384], strides = [1, 1]} : vector<16x384xf32> to vector<2x384xf32>
    %cst_28 = arith.constant dense<0.000000e+00> : vector<2x384xf32>
    %77 = tpu.matmul %43, %6, %cst_28 {dimension_numbers = #tpu.dot_dimension_numbers<[1], [0], [0], [1], [0, 0, 1, 1], [], []>} : vector<2x128xf32>, vector<128x384xf32>, vector<2x384xf32> -> vector<2x384xf32>
    %78 = vector.broadcast %7 : vector<1x384xf32> to vector<2x384xf32>
    %79 = arith.addf %77, %78 : vector<2x384xf32>
    %80 = vector.extract_strided_slice %76 {offsets = [0, 0], sizes = [2, 128], strides = [1, 1]} : vector<2x384xf32> to vector<2x128xf32>
    %81 = vector.extract_strided_slice %79 {offsets = [0, 0], sizes = [2, 128], strides = [1, 1]} : vector<2x384xf32> to vector<2x128xf32>
    %82 = arith.addf %80, %81 : vector<2x128xf32>
    %83 = arith.negf %82 : vector<2x128xf32>
    %84 = math.exp %83 : vector<2x128xf32>
    %cst_29 = arith.constant 1.000000e+00 : f32
    %85 = vector.broadcast %cst_29 : f32 to vector<2x128xf32>
    %86 = arith.addf %85, %84 : vector<2x128xf32>
    %87 = arith.divf %85, %86 : vector<2x128xf32>
    %88 = vector.extract_strided_slice %76 {offsets = [0, 128], sizes = [2, 128], strides = [1, 1]} : vector<2x384xf32> to vector<2x128xf32>
    %89 = vector.extract_strided_slice %79 {offsets = [0, 128], sizes = [2, 128], strides = [1, 1]} : vector<2x384xf32> to vector<2x128xf32>
    %90 = arith.addf %88, %89 : vector<2x128xf32>
    %91 = arith.negf %90 : vector<2x128xf32>
    %92 = math.exp %91 : vector<2x128xf32>
    %cst_30 = arith.constant 1.000000e+00 : f32
    %93 = vector.broadcast %cst_30 : f32 to vector<2x128xf32>
    %94 = arith.addf %93, %92 : vector<2x128xf32>
    %95 = arith.divf %93, %94 : vector<2x128xf32>
    %96 = vector.extract_strided_slice %76 {offsets = [0, 256], sizes = [2, 128], strides = [1, 1]} : vector<2x384xf32> to vector<2x128xf32>
    %97 = vector.extract_strided_slice %79 {offsets = [0, 256], sizes = [2, 128], strides = [1, 1]} : vector<2x384xf32> to vector<2x128xf32>
    %98 = arith.mulf %87, %97 : vector<2x128xf32>
    %99 = arith.addf %96, %98 : vector<2x128xf32>
    %100 = math.tanh %99 : vector<2x128xf32>
    %cst_31 = arith.constant 1.000000e+00 : f32
    %101 = vector.broadcast %cst_31 : f32 to vector<2x128xf32>
    %102 = arith.subf %101, %95 : vector<2x128xf32>
    %103 = arith.mulf %102, %100 : vector<2x128xf32>
    %104 = arith.mulf %95, %43 : vector<2x128xf32>
    %105 = arith.addf %103, %104 : vector<2x128xf32>
    %cst_32 = arith.constant dense<0.000000e+00> : vector<2x384xf32>
    %106 = tpu.matmul %105, %8, %cst_32 {dimension_numbers = #tpu.dot_dimension_numbers<[1], [0], [0], [1], [0, 0, 1, 1], [], []>} : vector<2x128xf32>, vector<128x384xf32>, vector<2x384xf32> -> vector<2x384xf32>
    %107 = vector.broadcast %9 : vector<1x384xf32> to vector<2x384xf32>
    %108 = arith.addf %106, %107 : vector<2x384xf32>
    %cst_33 = arith.constant dense<0.000000e+00> : vector<2x384xf32>
    %109 = tpu.matmul %75, %10, %cst_33 {dimension_numbers = #tpu.dot_dimension_numbers<[1], [0], [0], [1], [0, 0, 1, 1], [], []>} : vector<2x128xf32>, vector<128x384xf32>, vector<2x384xf32> -> vector<2x384xf32>
    %110 = vector.broadcast %11 : vector<1x384xf32> to vector<2x384xf32>
    %111 = arith.addf %109, %110 : vector<2x384xf32>
    %112 = vector.extract_strided_slice %108 {offsets = [0, 0], sizes = [2, 128], strides = [1, 1]} : vector<2x384xf32> to vector<2x128xf32>
    %113 = vector.extract_strided_slice %111 {offsets = [0, 0], sizes = [2, 128], strides = [1, 1]} : vector<2x384xf32> to vector<2x128xf32>
    %114 = arith.addf %112, %113 : vector<2x128xf32>
    %115 = arith.negf %114 : vector<2x128xf32>
    %116 = math.exp %115 : vector<2x128xf32>
    %cst_34 = arith.constant 1.000000e+00 : f32
    %117 = vector.broadcast %cst_34 : f32 to vector<2x128xf32>
    %118 = arith.addf %117, %116 : vector<2x128xf32>
    %119 = arith.divf %117, %118 : vector<2x128xf32>
    %120 = vector.extract_strided_slice %108 {offsets = [0, 128], sizes = [2, 128], strides = [1, 1]} : vector<2x384xf32> to vector<2x128xf32>
    %121 = vector.extract_strided_slice %111 {offsets = [0, 128], sizes = [2, 128], strides = [1, 1]} : vector<2x384xf32> to vector<2x128xf32>
    %122 = arith.addf %120, %121 : vector<2x128xf32>
    %123 = arith.negf %122 : vector<2x128xf32>
    %124 = math.exp %123 : vector<2x128xf32>
    %cst_35 = arith.constant 1.000000e+00 : f32
    %125 = vector.broadcast %cst_35 : f32 to vector<2x128xf32>
    %126 = arith.addf %125, %124 : vector<2x128xf32>
    %127 = arith.divf %125, %126 : vector<2x128xf32>
    %128 = vector.extract_strided_slice %108 {offsets = [0, 256], sizes = [2, 128], strides = [1, 1]} : vector<2x384xf32> to vector<2x128xf32>
    %129 = vector.extract_strided_slice %111 {offsets = [0, 256], sizes = [2, 128], strides = [1, 1]} : vector<2x384xf32> to vector<2x128xf32>
    %130 = arith.mulf %119, %129 : vector<2x128xf32>
    %131 = arith.addf %128, %130 : vector<2x128xf32>
    %132 = math.tanh %131 : vector<2x128xf32>
    %cst_36 = arith.constant 1.000000e+00 : f32
    %133 = vector.broadcast %cst_36 : f32 to vector<2x128xf32>
    %134 = arith.subf %133, %127 : vector<2x128xf32>
    %135 = arith.mulf %134, %132 : vector<2x128xf32>
    %136 = arith.mulf %127, %75 : vector<2x128xf32>
    %137 = arith.addf %135, %136 : vector<2x128xf32>
    %138 = vector.extract_strided_slice %5 {offsets = [4, 0], sizes = [2, 384], strides = [1, 1]} : vector<16x384xf32> to vector<2x384xf32>
    %cst_37 = arith.constant dense<0.000000e+00> : vector<2x384xf32>
    %139 = tpu.matmul %105, %6, %cst_37 {dimension_numbers = #tpu.dot_dimension_numbers<[1], [0], [0], [1], [0, 0, 1, 1], [], []>} : vector<2x128xf32>, vector<128x384xf32>, vector<2x384xf32> -> vector<2x384xf32>
    %140 = vector.broadcast %7 : vector<1x384xf32> to vector<2x384xf32>
    %141 = arith.addf %139, %140 : vector<2x384xf32>
    %142 = vector.extract_strided_slice %138 {offsets = [0, 0], sizes = [2, 128], strides = [1, 1]} : vector<2x384xf32> to vector<2x128xf32>
    %143 = vector.extract_strided_slice %141 {offsets = [0, 0], sizes = [2, 128], strides = [1, 1]} : vector<2x384xf32> to vector<2x128xf32>
    %144 = arith.addf %142, %143 : vector<2x128xf32>
    %145 = arith.negf %144 : vector<2x128xf32>
    %146 = math.exp %145 : vector<2x128xf32>
    %cst_38 = arith.constant 1.000000e+00 : f32
    %147 = vector.broadcast %cst_38 : f32 to vector<2x128xf32>
    %148 = arith.addf %147, %146 : vector<2x128xf32>
    %149 = arith.divf %147, %148 : vector<2x128xf32>
    %150 = vector.extract_strided_slice %138 {offsets = [0, 128], sizes = [2, 128], strides = [1, 1]} : vector<2x384xf32> to vector<2x128xf32>
    %151 = vector.extract_strided_slice %141 {offsets = [0, 128], sizes = [2, 128], strides = [1, 1]} : vector<2x384xf32> to vector<2x128xf32>
    %152 = arith.addf %150, %151 : vector<2x128xf32>
    %153 = arith.negf %152 : vector<2x128xf32>
    %154 = math.exp %153 : vector<2x128xf32>
    %cst_39 = arith.constant 1.000000e+00 : f32
    %155 = vector.broadcast %cst_39 : f32 to vector<2x128xf32>
    %156 = arith.addf %155, %154 : vector<2x128xf32>
    %157 = arith.divf %155, %156 : vector<2x128xf32>
    %158 = vector.extract_strided_slice %138 {offsets = [0, 256], sizes = [2, 128], strides = [1, 1]} : vector<2x384xf32> to vector<2x128xf32>
    %159 = vector.extract_strided_slice %141 {offsets = [0, 256], sizes = [2, 128], strides = [1, 1]} : vector<2x384xf32> to vector<2x128xf32>
    %160 = arith.mulf %149, %159 : vector<2x128xf32>
    %161 = arith.addf %158, %160 : vector<2x128xf32>
    %162 = math.tanh %161 : vector<2x128xf32>
    %cst_40 = arith.constant 1.000000e+00 : f32
    %163 = vector.broadcast %cst_40 : f32 to vector<2x128xf32>
    %164 = arith.subf %163, %157 : vector<2x128xf32>
    %165 = arith.mulf %164, %162 : vector<2x128xf32>
    %166 = arith.mulf %157, %105 : vector<2x128xf32>
    %167 = arith.addf %165, %166 : vector<2x128xf32>
    %cst_41 = arith.constant dense<0.000000e+00> : vector<2x384xf32>
    %168 = tpu.matmul %167, %8, %cst_41 {dimension_numbers = #tpu.dot_dimension_numbers<[1], [0], [0], [1], [0, 0, 1, 1], [], []>} : vector<2x128xf32>, vector<128x384xf32>, vector<2x384xf32> -> vector<2x384xf32>
    %169 = vector.broadcast %9 : vector<1x384xf32> to vector<2x384xf32>
    %170 = arith.addf %168, %169 : vector<2x384xf32>
    %cst_42 = arith.constant dense<0.000000e+00> : vector<2x384xf32>
    %171 = tpu.matmul %137, %10, %cst_42 {dimension_numbers = #tpu.dot_dimension_numbers<[1], [0], [0], [1], [0, 0, 1, 1], [], []>} : vector<2x128xf32>, vector<128x384xf32>, vector<2x384xf32> -> vector<2x384xf32>
    %172 = vector.broadcast %11 : vector<1x384xf32> to vector<2x384xf32>
    %173 = arith.addf %171, %172 : vector<2x384xf32>
    %174 = vector.extract_strided_slice %170 {offsets = [0, 0], sizes = [2, 128], strides = [1, 1]} : vector<2x384xf32> to vector<2x128xf32>
    %175 = vector.extract_strided_slice %173 {offsets = [0, 0], sizes = [2, 128], strides = [1, 1]} : vector<2x384xf32> to vector<2x128xf32>
    %176 = arith.addf %174, %175 : vector<2x128xf32>
    %177 = arith.negf %176 : vector<2x128xf32>
    %178 = math.exp %177 : vector<2x128xf32>
    %cst_43 = arith.constant 1.000000e+00 : f32
    %179 = vector.broadcast %cst_43 : f32 to vector<2x128xf32>
    %180 = arith.addf %179, %178 : vector<2x128xf32>
    %181 = arith.divf %179, %180 : vector<2x128xf32>
    %182 = vector.extract_strided_slice %170 {offsets = [0, 128], sizes = [2, 128], strides = [1, 1]} : vector<2x384xf32> to vector<2x128xf32>
    %183 = vector.extract_strided_slice %173 {offsets = [0, 128], sizes = [2, 128], strides = [1, 1]} : vector<2x384xf32> to vector<2x128xf32>
    %184 = arith.addf %182, %183 : vector<2x128xf32>
    %185 = arith.negf %184 : vector<2x128xf32>
    %186 = math.exp %185 : vector<2x128xf32>
    %cst_44 = arith.constant 1.000000e+00 : f32
    %187 = vector.broadcast %cst_44 : f32 to vector<2x128xf32>
    %188 = arith.addf %187, %186 : vector<2x128xf32>
    %189 = arith.divf %187, %188 : vector<2x128xf32>
    %190 = vector.extract_strided_slice %170 {offsets = [0, 256], sizes = [2, 128], strides = [1, 1]} : vector<2x384xf32> to vector<2x128xf32>
    %191 = vector.extract_strided_slice %173 {offsets = [0, 256], sizes = [2, 128], strides = [1, 1]} : vector<2x384xf32> to vector<2x128xf32>
    %192 = arith.mulf %181, %191 : vector<2x128xf32>
    %193 = arith.addf %190, %192 : vector<2x128xf32>
    %194 = math.tanh %193 : vector<2x128xf32>
    %cst_45 = arith.constant 1.000000e+00 : f32
    %195 = vector.broadcast %cst_45 : f32 to vector<2x128xf32>
    %196 = arith.subf %195, %189 : vector<2x128xf32>
    %197 = arith.mulf %196, %194 : vector<2x128xf32>
    %198 = arith.mulf %189, %137 : vector<2x128xf32>
    %199 = arith.addf %197, %198 : vector<2x128xf32>
    %200 = vector.extract_strided_slice %5 {offsets = [6, 0], sizes = [2, 384], strides = [1, 1]} : vector<16x384xf32> to vector<2x384xf32>
    %cst_46 = arith.constant dense<0.000000e+00> : vector<2x384xf32>
    %201 = tpu.matmul %167, %6, %cst_46 {dimension_numbers = #tpu.dot_dimension_numbers<[1], [0], [0], [1], [0, 0, 1, 1], [], []>} : vector<2x128xf32>, vector<128x384xf32>, vector<2x384xf32> -> vector<2x384xf32>
    %202 = vector.broadcast %7 : vector<1x384xf32> to vector<2x384xf32>
    %203 = arith.addf %201, %202 : vector<2x384xf32>
    %204 = vector.extract_strided_slice %200 {offsets = [0, 0], sizes = [2, 128], strides = [1, 1]} : vector<2x384xf32> to vector<2x128xf32>
    %205 = vector.extract_strided_slice %203 {offsets = [0, 0], sizes = [2, 128], strides = [1, 1]} : vector<2x384xf32> to vector<2x128xf32>
    %206 = arith.addf %204, %205 : vector<2x128xf32>
    %207 = arith.negf %206 : vector<2x128xf32>
    %208 = math.exp %207 : vector<2x128xf32>
    %cst_47 = arith.constant 1.000000e+00 : f32
    %209 = vector.broadcast %cst_47 : f32 to vector<2x128xf32>
    %210 = arith.addf %209, %208 : vector<2x128xf32>
    %211 = arith.divf %209, %210 : vector<2x128xf32>
    %212 = vector.extract_strided_slice %200 {offsets = [0, 128], sizes = [2, 128], strides = [1, 1]} : vector<2x384xf32> to vector<2x128xf32>
    %213 = vector.extract_strided_slice %203 {offsets = [0, 128], sizes = [2, 128], strides = [1, 1]} : vector<2x384xf32> to vector<2x128xf32>
    %214 = arith.addf %212, %213 : vector<2x128xf32>
    %215 = arith.negf %214 : vector<2x128xf32>
    %216 = math.exp %215 : vector<2x128xf32>
    %cst_48 = arith.constant 1.000000e+00 : f32
    %217 = vector.broadcast %cst_48 : f32 to vector<2x128xf32>
    %218 = arith.addf %217, %216 : vector<2x128xf32>
    %219 = arith.divf %217, %218 : vector<2x128xf32>
    %220 = vector.extract_strided_slice %200 {offsets = [0, 256], sizes = [2, 128], strides = [1, 1]} : vector<2x384xf32> to vector<2x128xf32>
    %221 = vector.extract_strided_slice %203 {offsets = [0, 256], sizes = [2, 128], strides = [1, 1]} : vector<2x384xf32> to vector<2x128xf32>
    %222 = arith.mulf %211, %221 : vector<2x128xf32>
    %223 = arith.addf %220, %222 : vector<2x128xf32>
    %224 = math.tanh %223 : vector<2x128xf32>
    %cst_49 = arith.constant 1.000000e+00 : f32
    %225 = vector.broadcast %cst_49 : f32 to vector<2x128xf32>
    %226 = arith.subf %225, %219 : vector<2x128xf32>
    %227 = arith.mulf %226, %224 : vector<2x128xf32>
    %228 = arith.mulf %219, %167 : vector<2x128xf32>
    %229 = arith.addf %227, %228 : vector<2x128xf32>
    %cst_50 = arith.constant dense<0.000000e+00> : vector<2x384xf32>
    %230 = tpu.matmul %229, %8, %cst_50 {dimension_numbers = #tpu.dot_dimension_numbers<[1], [0], [0], [1], [0, 0, 1, 1], [], []>} : vector<2x128xf32>, vector<128x384xf32>, vector<2x384xf32> -> vector<2x384xf32>
    %231 = vector.broadcast %9 : vector<1x384xf32> to vector<2x384xf32>
    %232 = arith.addf %230, %231 : vector<2x384xf32>
    %cst_51 = arith.constant dense<0.000000e+00> : vector<2x384xf32>
    %233 = tpu.matmul %199, %10, %cst_51 {dimension_numbers = #tpu.dot_dimension_numbers<[1], [0], [0], [1], [0, 0, 1, 1], [], []>} : vector<2x128xf32>, vector<128x384xf32>, vector<2x384xf32> -> vector<2x384xf32>
    %234 = vector.broadcast %11 : vector<1x384xf32> to vector<2x384xf32>
    %235 = arith.addf %233, %234 : vector<2x384xf32>
    %236 = vector.extract_strided_slice %232 {offsets = [0, 0], sizes = [2, 128], strides = [1, 1]} : vector<2x384xf32> to vector<2x128xf32>
    %237 = vector.extract_strided_slice %235 {offsets = [0, 0], sizes = [2, 128], strides = [1, 1]} : vector<2x384xf32> to vector<2x128xf32>
    %238 = arith.addf %236, %237 : vector<2x128xf32>
    %239 = arith.negf %238 : vector<2x128xf32>
    %240 = math.exp %239 : vector<2x128xf32>
    %cst_52 = arith.constant 1.000000e+00 : f32
    %241 = vector.broadcast %cst_52 : f32 to vector<2x128xf32>
    %242 = arith.addf %241, %240 : vector<2x128xf32>
    %243 = arith.divf %241, %242 : vector<2x128xf32>
    %244 = vector.extract_strided_slice %232 {offsets = [0, 128], sizes = [2, 128], strides = [1, 1]} : vector<2x384xf32> to vector<2x128xf32>
    %245 = vector.extract_strided_slice %235 {offsets = [0, 128], sizes = [2, 128], strides = [1, 1]} : vector<2x384xf32> to vector<2x128xf32>
    %246 = arith.addf %244, %245 : vector<2x128xf32>
    %247 = arith.negf %246 : vector<2x128xf32>
    %248 = math.exp %247 : vector<2x128xf32>
    %cst_53 = arith.constant 1.000000e+00 : f32
    %249 = vector.broadcast %cst_53 : f32 to vector<2x128xf32>
    %250 = arith.addf %249, %248 : vector<2x128xf32>
    %251 = arith.divf %249, %250 : vector<2x128xf32>
    %252 = vector.extract_strided_slice %232 {offsets = [0, 256], sizes = [2, 128], strides = [1, 1]} : vector<2x384xf32> to vector<2x128xf32>
    %253 = vector.extract_strided_slice %235 {offsets = [0, 256], sizes = [2, 128], strides = [1, 1]} : vector<2x384xf32> to vector<2x128xf32>
    %254 = arith.mulf %243, %253 : vector<2x128xf32>
    %255 = arith.addf %252, %254 : vector<2x128xf32>
    %256 = math.tanh %255 : vector<2x128xf32>
    %cst_54 = arith.constant 1.000000e+00 : f32
    %257 = vector.broadcast %cst_54 : f32 to vector<2x128xf32>
    %258 = arith.subf %257, %251 : vector<2x128xf32>
    %259 = arith.mulf %258, %256 : vector<2x128xf32>
    %260 = arith.mulf %251, %199 : vector<2x128xf32>
    %261 = arith.addf %259, %260 : vector<2x128xf32>
    %262 = vector.extract_strided_slice %5 {offsets = [8, 0], sizes = [2, 384], strides = [1, 1]} : vector<16x384xf32> to vector<2x384xf32>
    %cst_55 = arith.constant dense<0.000000e+00> : vector<2x384xf32>
    %263 = tpu.matmul %229, %6, %cst_55 {dimension_numbers = #tpu.dot_dimension_numbers<[1], [0], [0], [1], [0, 0, 1, 1], [], []>} : vector<2x128xf32>, vector<128x384xf32>, vector<2x384xf32> -> vector<2x384xf32>
    %264 = vector.broadcast %7 : vector<1x384xf32> to vector<2x384xf32>
    %265 = arith.addf %263, %264 : vector<2x384xf32>
    %266 = vector.extract_strided_slice %262 {offsets = [0, 0], sizes = [2, 128], strides = [1, 1]} : vector<2x384xf32> to vector<2x128xf32>
    %267 = vector.extract_strided_slice %265 {offsets = [0, 0], sizes = [2, 128], strides = [1, 1]} : vector<2x384xf32> to vector<2x128xf32>
    %268 = arith.addf %266, %267 : vector<2x128xf32>
    %269 = arith.negf %268 : vector<2x128xf32>
    %270 = math.exp %269 : vector<2x128xf32>
    %cst_56 = arith.constant 1.000000e+00 : f32
    %271 = vector.broadcast %cst_56 : f32 to vector<2x128xf32>
    %272 = arith.addf %271, %270 : vector<2x128xf32>
    %273 = arith.divf %271, %272 : vector<2x128xf32>
    %274 = vector.extract_strided_slice %262 {offsets = [0, 128], sizes = [2, 128], strides = [1, 1]} : vector<2x384xf32> to vector<2x128xf32>
    %275 = vector.extract_strided_slice %265 {offsets = [0, 128], sizes = [2, 128], strides = [1, 1]} : vector<2x384xf32> to vector<2x128xf32>
    %276 = arith.addf %274, %275 : vector<2x128xf32>
    %277 = arith.negf %276 : vector<2x128xf32>
    %278 = math.exp %277 : vector<2x128xf32>
    %cst_57 = arith.constant 1.000000e+00 : f32
    %279 = vector.broadcast %cst_57 : f32 to vector<2x128xf32>
    %280 = arith.addf %279, %278 : vector<2x128xf32>
    %281 = arith.divf %279, %280 : vector<2x128xf32>
    %282 = vector.extract_strided_slice %262 {offsets = [0, 256], sizes = [2, 128], strides = [1, 1]} : vector<2x384xf32> to vector<2x128xf32>
    %283 = vector.extract_strided_slice %265 {offsets = [0, 256], sizes = [2, 128], strides = [1, 1]} : vector<2x384xf32> to vector<2x128xf32>
    %284 = arith.mulf %273, %283 : vector<2x128xf32>
    %285 = arith.addf %282, %284 : vector<2x128xf32>
    %286 = math.tanh %285 : vector<2x128xf32>
    %cst_58 = arith.constant 1.000000e+00 : f32
    %287 = vector.broadcast %cst_58 : f32 to vector<2x128xf32>
    %288 = arith.subf %287, %281 : vector<2x128xf32>
    %289 = arith.mulf %288, %286 : vector<2x128xf32>
    %290 = arith.mulf %281, %229 : vector<2x128xf32>
    %291 = arith.addf %289, %290 : vector<2x128xf32>
    %cst_59 = arith.constant dense<0.000000e+00> : vector<2x384xf32>
    %292 = tpu.matmul %291, %8, %cst_59 {dimension_numbers = #tpu.dot_dimension_numbers<[1], [0], [0], [1], [0, 0, 1, 1], [], []>} : vector<2x128xf32>, vector<128x384xf32>, vector<2x384xf32> -> vector<2x384xf32>
    %293 = vector.broadcast %9 : vector<1x384xf32> to vector<2x384xf32>
    %294 = arith.addf %292, %293 : vector<2x384xf32>
    %cst_60 = arith.constant dense<0.000000e+00> : vector<2x384xf32>
    %295 = tpu.matmul %261, %10, %cst_60 {dimension_numbers = #tpu.dot_dimension_numbers<[1], [0], [0], [1], [0, 0, 1, 1], [], []>} : vector<2x128xf32>, vector<128x384xf32>, vector<2x384xf32> -> vector<2x384xf32>
    %296 = vector.broadcast %11 : vector<1x384xf32> to vector<2x384xf32>
    %297 = arith.addf %295, %296 : vector<2x384xf32>
    %298 = vector.extract_strided_slice %294 {offsets = [0, 0], sizes = [2, 128], strides = [1, 1]} : vector<2x384xf32> to vector<2x128xf32>
    %299 = vector.extract_strided_slice %297 {offsets = [0, 0], sizes = [2, 128], strides = [1, 1]} : vector<2x384xf32> to vector<2x128xf32>
    %300 = arith.addf %298, %299 : vector<2x128xf32>
    %301 = arith.negf %300 : vector<2x128xf32>
    %302 = math.exp %301 : vector<2x128xf32>
    %cst_61 = arith.constant 1.000000e+00 : f32
    %303 = vector.broadcast %cst_61 : f32 to vector<2x128xf32>
    %304 = arith.addf %303, %302 : vector<2x128xf32>
    %305 = arith.divf %303, %304 : vector<2x128xf32>
    %306 = vector.extract_strided_slice %294 {offsets = [0, 128], sizes = [2, 128], strides = [1, 1]} : vector<2x384xf32> to vector<2x128xf32>
    %307 = vector.extract_strided_slice %297 {offsets = [0, 128], sizes = [2, 128], strides = [1, 1]} : vector<2x384xf32> to vector<2x128xf32>
    %308 = arith.addf %306, %307 : vector<2x128xf32>
    %309 = arith.negf %308 : vector<2x128xf32>
    %310 = math.exp %309 : vector<2x128xf32>
    %cst_62 = arith.constant 1.000000e+00 : f32
    %311 = vector.broadcast %cst_62 : f32 to vector<2x128xf32>
    %312 = arith.addf %311, %310 : vector<2x128xf32>
    %313 = arith.divf %311, %312 : vector<2x128xf32>
    %314 = vector.extract_strided_slice %294 {offsets = [0, 256], sizes = [2, 128], strides = [1, 1]} : vector<2x384xf32> to vector<2x128xf32>
    %315 = vector.extract_strided_slice %297 {offsets = [0, 256], sizes = [2, 128], strides = [1, 1]} : vector<2x384xf32> to vector<2x128xf32>
    %316 = arith.mulf %305, %315 : vector<2x128xf32>
    %317 = arith.addf %314, %316 : vector<2x128xf32>
    %318 = math.tanh %317 : vector<2x128xf32>
    %cst_63 = arith.constant 1.000000e+00 : f32
    %319 = vector.broadcast %cst_63 : f32 to vector<2x128xf32>
    %320 = arith.subf %319, %313 : vector<2x128xf32>
    %321 = arith.mulf %320, %318 : vector<2x128xf32>
    %322 = arith.mulf %313, %261 : vector<2x128xf32>
    %323 = arith.addf %321, %322 : vector<2x128xf32>
    %324 = vector.extract_strided_slice %5 {offsets = [10, 0], sizes = [2, 384], strides = [1, 1]} : vector<16x384xf32> to vector<2x384xf32>
    %cst_64 = arith.constant dense<0.000000e+00> : vector<2x384xf32>
    %325 = tpu.matmul %291, %6, %cst_64 {dimension_numbers = #tpu.dot_dimension_numbers<[1], [0], [0], [1], [0, 0, 1, 1], [], []>} : vector<2x128xf32>, vector<128x384xf32>, vector<2x384xf32> -> vector<2x384xf32>
    %326 = vector.broadcast %7 : vector<1x384xf32> to vector<2x384xf32>
    %327 = arith.addf %325, %326 : vector<2x384xf32>
    %328 = vector.extract_strided_slice %324 {offsets = [0, 0], sizes = [2, 128], strides = [1, 1]} : vector<2x384xf32> to vector<2x128xf32>
    %329 = vector.extract_strided_slice %327 {offsets = [0, 0], sizes = [2, 128], strides = [1, 1]} : vector<2x384xf32> to vector<2x128xf32>
    %330 = arith.addf %328, %329 : vector<2x128xf32>
    %331 = arith.negf %330 : vector<2x128xf32>
    %332 = math.exp %331 : vector<2x128xf32>
    %cst_65 = arith.constant 1.000000e+00 : f32
    %333 = vector.broadcast %cst_65 : f32 to vector<2x128xf32>
    %334 = arith.addf %333, %332 : vector<2x128xf32>
    %335 = arith.divf %333, %334 : vector<2x128xf32>
    %336 = vector.extract_strided_slice %324 {offsets = [0, 128], sizes = [2, 128], strides = [1, 1]} : vector<2x384xf32> to vector<2x128xf32>
    %337 = vector.extract_strided_slice %327 {offsets = [0, 128], sizes = [2, 128], strides = [1, 1]} : vector<2x384xf32> to vector<2x128xf32>
    %338 = arith.addf %336, %337 : vector<2x128xf32>
    %339 = arith.negf %338 : vector<2x128xf32>
    %340 = math.exp %339 : vector<2x128xf32>
    %cst_66 = arith.constant 1.000000e+00 : f32
    %341 = vector.broadcast %cst_66 : f32 to vector<2x128xf32>
    %342 = arith.addf %341, %340 : vector<2x128xf32>
    %343 = arith.divf %341, %342 : vector<2x128xf32>
    %344 = vector.extract_strided_slice %324 {offsets = [0, 256], sizes = [2, 128], strides = [1, 1]} : vector<2x384xf32> to vector<2x128xf32>
    %345 = vector.extract_strided_slice %327 {offsets = [0, 256], sizes = [2, 128], strides = [1, 1]} : vector<2x384xf32> to vector<2x128xf32>
    %346 = arith.mulf %335, %345 : vector<2x128xf32>
    %347 = arith.addf %344, %346 : vector<2x128xf32>
    %348 = math.tanh %347 : vector<2x128xf32>
    %cst_67 = arith.constant 1.000000e+00 : f32
    %349 = vector.broadcast %cst_67 : f32 to vector<2x128xf32>
    %350 = arith.subf %349, %343 : vector<2x128xf32>
    %351 = arith.mulf %350, %348 : vector<2x128xf32>
    %352 = arith.mulf %343, %291 : vector<2x128xf32>
    %353 = arith.addf %351, %352 : vector<2x128xf32>
    %cst_68 = arith.constant dense<0.000000e+00> : vector<2x384xf32>
    %354 = tpu.matmul %353, %8, %cst_68 {dimension_numbers = #tpu.dot_dimension_numbers<[1], [0], [0], [1], [0, 0, 1, 1], [], []>} : vector<2x128xf32>, vector<128x384xf32>, vector<2x384xf32> -> vector<2x384xf32>
    %355 = vector.broadcast %9 : vector<1x384xf32> to vector<2x384xf32>
    %356 = arith.addf %354, %355 : vector<2x384xf32>
    %cst_69 = arith.constant dense<0.000000e+00> : vector<2x384xf32>
    %357 = tpu.matmul %323, %10, %cst_69 {dimension_numbers = #tpu.dot_dimension_numbers<[1], [0], [0], [1], [0, 0, 1, 1], [], []>} : vector<2x128xf32>, vector<128x384xf32>, vector<2x384xf32> -> vector<2x384xf32>
    %358 = vector.broadcast %11 : vector<1x384xf32> to vector<2x384xf32>
    %359 = arith.addf %357, %358 : vector<2x384xf32>
    %360 = vector.extract_strided_slice %356 {offsets = [0, 0], sizes = [2, 128], strides = [1, 1]} : vector<2x384xf32> to vector<2x128xf32>
    %361 = vector.extract_strided_slice %359 {offsets = [0, 0], sizes = [2, 128], strides = [1, 1]} : vector<2x384xf32> to vector<2x128xf32>
    %362 = arith.addf %360, %361 : vector<2x128xf32>
    %363 = arith.negf %362 : vector<2x128xf32>
    %364 = math.exp %363 : vector<2x128xf32>
    %cst_70 = arith.constant 1.000000e+00 : f32
    %365 = vector.broadcast %cst_70 : f32 to vector<2x128xf32>
    %366 = arith.addf %365, %364 : vector<2x128xf32>
    %367 = arith.divf %365, %366 : vector<2x128xf32>
    %368 = vector.extract_strided_slice %356 {offsets = [0, 128], sizes = [2, 128], strides = [1, 1]} : vector<2x384xf32> to vector<2x128xf32>
    %369 = vector.extract_strided_slice %359 {offsets = [0, 128], sizes = [2, 128], strides = [1, 1]} : vector<2x384xf32> to vector<2x128xf32>
    %370 = arith.addf %368, %369 : vector<2x128xf32>
    %371 = arith.negf %370 : vector<2x128xf32>
    %372 = math.exp %371 : vector<2x128xf32>
    %cst_71 = arith.constant 1.000000e+00 : f32
    %373 = vector.broadcast %cst_71 : f32 to vector<2x128xf32>
    %374 = arith.addf %373, %372 : vector<2x128xf32>
    %375 = arith.divf %373, %374 : vector<2x128xf32>
    %376 = vector.extract_strided_slice %356 {offsets = [0, 256], sizes = [2, 128], strides = [1, 1]} : vector<2x384xf32> to vector<2x128xf32>
    %377 = vector.extract_strided_slice %359 {offsets = [0, 256], sizes = [2, 128], strides = [1, 1]} : vector<2x384xf32> to vector<2x128xf32>
    %378 = arith.mulf %367, %377 : vector<2x128xf32>
    %379 = arith.addf %376, %378 : vector<2x128xf32>
    %380 = math.tanh %379 : vector<2x128xf32>
    %cst_72 = arith.constant 1.000000e+00 : f32
    %381 = vector.broadcast %cst_72 : f32 to vector<2x128xf32>
    %382 = arith.subf %381, %375 : vector<2x128xf32>
    %383 = arith.mulf %382, %380 : vector<2x128xf32>
    %384 = arith.mulf %375, %323 : vector<2x128xf32>
    %385 = arith.addf %383, %384 : vector<2x128xf32>
    %386 = vector.extract_strided_slice %5 {offsets = [12, 0], sizes = [2, 384], strides = [1, 1]} : vector<16x384xf32> to vector<2x384xf32>
    %cst_73 = arith.constant dense<0.000000e+00> : vector<2x384xf32>
    %387 = tpu.matmul %353, %6, %cst_73 {dimension_numbers = #tpu.dot_dimension_numbers<[1], [0], [0], [1], [0, 0, 1, 1], [], []>} : vector<2x128xf32>, vector<128x384xf32>, vector<2x384xf32> -> vector<2x384xf32>
    %388 = vector.broadcast %7 : vector<1x384xf32> to vector<2x384xf32>
    %389 = arith.addf %387, %388 : vector<2x384xf32>
    %390 = vector.extract_strided_slice %386 {offsets = [0, 0], sizes = [2, 128], strides = [1, 1]} : vector<2x384xf32> to vector<2x128xf32>
    %391 = vector.extract_strided_slice %389 {offsets = [0, 0], sizes = [2, 128], strides = [1, 1]} : vector<2x384xf32> to vector<2x128xf32>
    %392 = arith.addf %390, %391 : vector<2x128xf32>
    %393 = arith.negf %392 : vector<2x128xf32>
    %394 = math.exp %393 : vector<2x128xf32>
    %cst_74 = arith.constant 1.000000e+00 : f32
    %395 = vector.broadcast %cst_74 : f32 to vector<2x128xf32>
    %396 = arith.addf %395, %394 : vector<2x128xf32>
    %397 = arith.divf %395, %396 : vector<2x128xf32>
    %398 = vector.extract_strided_slice %386 {offsets = [0, 128], sizes = [2, 128], strides = [1, 1]} : vector<2x384xf32> to vector<2x128xf32>
    %399 = vector.extract_strided_slice %389 {offsets = [0, 128], sizes = [2, 128], strides = [1, 1]} : vector<2x384xf32> to vector<2x128xf32>
    %400 = arith.addf %398, %399 : vector<2x128xf32>
    %401 = arith.negf %400 : vector<2x128xf32>
    %402 = math.exp %401 : vector<2x128xf32>
    %cst_75 = arith.constant 1.000000e+00 : f32
    %403 = vector.broadcast %cst_75 : f32 to vector<2x128xf32>
    %404 = arith.addf %403, %402 : vector<2x128xf32>
    %405 = arith.divf %403, %404 : vector<2x128xf32>
    %406 = vector.extract_strided_slice %386 {offsets = [0, 256], sizes = [2, 128], strides = [1, 1]} : vector<2x384xf32> to vector<2x128xf32>
    %407 = vector.extract_strided_slice %389 {offsets = [0, 256], sizes = [2, 128], strides = [1, 1]} : vector<2x384xf32> to vector<2x128xf32>
    %408 = arith.mulf %397, %407 : vector<2x128xf32>
    %409 = arith.addf %406, %408 : vector<2x128xf32>
    %410 = math.tanh %409 : vector<2x128xf32>
    %cst_76 = arith.constant 1.000000e+00 : f32
    %411 = vector.broadcast %cst_76 : f32 to vector<2x128xf32>
    %412 = arith.subf %411, %405 : vector<2x128xf32>
    %413 = arith.mulf %412, %410 : vector<2x128xf32>
    %414 = arith.mulf %405, %353 : vector<2x128xf32>
    %415 = arith.addf %413, %414 : vector<2x128xf32>
    %cst_77 = arith.constant dense<0.000000e+00> : vector<2x384xf32>
    %416 = tpu.matmul %415, %8, %cst_77 {dimension_numbers = #tpu.dot_dimension_numbers<[1], [0], [0], [1], [0, 0, 1, 1], [], []>} : vector<2x128xf32>, vector<128x384xf32>, vector<2x384xf32> -> vector<2x384xf32>
    %417 = vector.broadcast %9 : vector<1x384xf32> to vector<2x384xf32>
    %418 = arith.addf %416, %417 : vector<2x384xf32>
    %cst_78 = arith.constant dense<0.000000e+00> : vector<2x384xf32>
    %419 = tpu.matmul %385, %10, %cst_78 {dimension_numbers = #tpu.dot_dimension_numbers<[1], [0], [0], [1], [0, 0, 1, 1], [], []>} : vector<2x128xf32>, vector<128x384xf32>, vector<2x384xf32> -> vector<2x384xf32>
    %420 = vector.broadcast %11 : vector<1x384xf32> to vector<2x384xf32>
    %421 = arith.addf %419, %420 : vector<2x384xf32>
    %422 = vector.extract_strided_slice %418 {offsets = [0, 0], sizes = [2, 128], strides = [1, 1]} : vector<2x384xf32> to vector<2x128xf32>
    %423 = vector.extract_strided_slice %421 {offsets = [0, 0], sizes = [2, 128], strides = [1, 1]} : vector<2x384xf32> to vector<2x128xf32>
    %424 = arith.addf %422, %423 : vector<2x128xf32>
    %425 = arith.negf %424 : vector<2x128xf32>
    %426 = math.exp %425 : vector<2x128xf32>
    %cst_79 = arith.constant 1.000000e+00 : f32
    %427 = vector.broadcast %cst_79 : f32 to vector<2x128xf32>
    %428 = arith.addf %427, %426 : vector<2x128xf32>
    %429 = arith.divf %427, %428 : vector<2x128xf32>
    %430 = vector.extract_strided_slice %418 {offsets = [0, 128], sizes = [2, 128], strides = [1, 1]} : vector<2x384xf32> to vector<2x128xf32>
    %431 = vector.extract_strided_slice %421 {offsets = [0, 128], sizes = [2, 128], strides = [1, 1]} : vector<2x384xf32> to vector<2x128xf32>
    %432 = arith.addf %430, %431 : vector<2x128xf32>
    %433 = arith.negf %432 : vector<2x128xf32>
    %434 = math.exp %433 : vector<2x128xf32>
    %cst_80 = arith.constant 1.000000e+00 : f32
    %435 = vector.broadcast %cst_80 : f32 to vector<2x128xf32>
    %436 = arith.addf %435, %434 : vector<2x128xf32>
    %437 = arith.divf %435, %436 : vector<2x128xf32>
    %438 = vector.extract_strided_slice %418 {offsets = [0, 256], sizes = [2, 128], strides = [1, 1]} : vector<2x384xf32> to vector<2x128xf32>
    %439 = vector.extract_strided_slice %421 {offsets = [0, 256], sizes = [2, 128], strides = [1, 1]} : vector<2x384xf32> to vector<2x128xf32>
    %440 = arith.mulf %429, %439 : vector<2x128xf32>
    %441 = arith.addf %438, %440 : vector<2x128xf32>
    %442 = math.tanh %441 : vector<2x128xf32>
    %cst_81 = arith.constant 1.000000e+00 : f32
    %443 = vector.broadcast %cst_81 : f32 to vector<2x128xf32>
    %444 = arith.subf %443, %437 : vector<2x128xf32>
    %445 = arith.mulf %444, %442 : vector<2x128xf32>
    %446 = arith.mulf %437, %385 : vector<2x128xf32>
    %447 = arith.addf %445, %446 : vector<2x128xf32>
    %448 = vector.extract_strided_slice %5 {offsets = [14, 0], sizes = [2, 384], strides = [1, 1]} : vector<16x384xf32> to vector<2x384xf32>
    %cst_82 = arith.constant dense<0.000000e+00> : vector<2x384xf32>
    %449 = tpu.matmul %415, %6, %cst_82 {dimension_numbers = #tpu.dot_dimension_numbers<[1], [0], [0], [1], [0, 0, 1, 1], [], []>} : vector<2x128xf32>, vector<128x384xf32>, vector<2x384xf32> -> vector<2x384xf32>
    %450 = vector.broadcast %7 : vector<1x384xf32> to vector<2x384xf32>
    %451 = arith.addf %449, %450 : vector<2x384xf32>
    %452 = vector.extract_strided_slice %448 {offsets = [0, 0], sizes = [2, 128], strides = [1, 1]} : vector<2x384xf32> to vector<2x128xf32>
    %453 = vector.extract_strided_slice %451 {offsets = [0, 0], sizes = [2, 128], strides = [1, 1]} : vector<2x384xf32> to vector<2x128xf32>
    %454 = arith.addf %452, %453 : vector<2x128xf32>
    %455 = arith.negf %454 : vector<2x128xf32>
    %456 = math.exp %455 : vector<2x128xf32>
    %cst_83 = arith.constant 1.000000e+00 : f32
    %457 = vector.broadcast %cst_83 : f32 to vector<2x128xf32>
    %458 = arith.addf %457, %456 : vector<2x128xf32>
    %459 = arith.divf %457, %458 : vector<2x128xf32>
    %460 = vector.extract_strided_slice %448 {offsets = [0, 128], sizes = [2, 128], strides = [1, 1]} : vector<2x384xf32> to vector<2x128xf32>
    %461 = vector.extract_strided_slice %451 {offsets = [0, 128], sizes = [2, 128], strides = [1, 1]} : vector<2x384xf32> to vector<2x128xf32>
    %462 = arith.addf %460, %461 : vector<2x128xf32>
    %463 = arith.negf %462 : vector<2x128xf32>
    %464 = math.exp %463 : vector<2x128xf32>
    %cst_84 = arith.constant 1.000000e+00 : f32
    %465 = vector.broadcast %cst_84 : f32 to vector<2x128xf32>
    %466 = arith.addf %465, %464 : vector<2x128xf32>
    %467 = arith.divf %465, %466 : vector<2x128xf32>
    %468 = vector.extract_strided_slice %448 {offsets = [0, 256], sizes = [2, 128], strides = [1, 1]} : vector<2x384xf32> to vector<2x128xf32>
    %469 = vector.extract_strided_slice %451 {offsets = [0, 256], sizes = [2, 128], strides = [1, 1]} : vector<2x384xf32> to vector<2x128xf32>
    %470 = arith.mulf %459, %469 : vector<2x128xf32>
    %471 = arith.addf %468, %470 : vector<2x128xf32>
    %472 = math.tanh %471 : vector<2x128xf32>
    %cst_85 = arith.constant 1.000000e+00 : f32
    %473 = vector.broadcast %cst_85 : f32 to vector<2x128xf32>
    %474 = arith.subf %473, %467 : vector<2x128xf32>
    %475 = arith.mulf %474, %472 : vector<2x128xf32>
    %476 = arith.mulf %467, %415 : vector<2x128xf32>
    %477 = arith.addf %475, %476 : vector<2x128xf32>
    %cst_86 = arith.constant dense<0.000000e+00> : vector<2x384xf32>
    %478 = tpu.matmul %477, %8, %cst_86 {dimension_numbers = #tpu.dot_dimension_numbers<[1], [0], [0], [1], [0, 0, 1, 1], [], []>} : vector<2x128xf32>, vector<128x384xf32>, vector<2x384xf32> -> vector<2x384xf32>
    %479 = vector.broadcast %9 : vector<1x384xf32> to vector<2x384xf32>
    %480 = arith.addf %478, %479 : vector<2x384xf32>
    %cst_87 = arith.constant dense<0.000000e+00> : vector<2x384xf32>
    %481 = tpu.matmul %447, %10, %cst_87 {dimension_numbers = #tpu.dot_dimension_numbers<[1], [0], [0], [1], [0, 0, 1, 1], [], []>} : vector<2x128xf32>, vector<128x384xf32>, vector<2x384xf32> -> vector<2x384xf32>
    %482 = vector.broadcast %11 : vector<1x384xf32> to vector<2x384xf32>
    %483 = arith.addf %481, %482 : vector<2x384xf32>
    %484 = vector.extract_strided_slice %480 {offsets = [0, 0], sizes = [2, 128], strides = [1, 1]} : vector<2x384xf32> to vector<2x128xf32>
    %485 = vector.extract_strided_slice %483 {offsets = [0, 0], sizes = [2, 128], strides = [1, 1]} : vector<2x384xf32> to vector<2x128xf32>
    %486 = arith.addf %484, %485 : vector<2x128xf32>
    %487 = arith.negf %486 : vector<2x128xf32>
    %488 = math.exp %487 : vector<2x128xf32>
    %cst_88 = arith.constant 1.000000e+00 : f32
    %489 = vector.broadcast %cst_88 : f32 to vector<2x128xf32>
    %490 = arith.addf %489, %488 : vector<2x128xf32>
    %491 = arith.divf %489, %490 : vector<2x128xf32>
    %492 = vector.extract_strided_slice %480 {offsets = [0, 128], sizes = [2, 128], strides = [1, 1]} : vector<2x384xf32> to vector<2x128xf32>
    %493 = vector.extract_strided_slice %483 {offsets = [0, 128], sizes = [2, 128], strides = [1, 1]} : vector<2x384xf32> to vector<2x128xf32>
    %494 = arith.addf %492, %493 : vector<2x128xf32>
    %495 = arith.negf %494 : vector<2x128xf32>
    %496 = math.exp %495 : vector<2x128xf32>
    %cst_89 = arith.constant 1.000000e+00 : f32
    %497 = vector.broadcast %cst_89 : f32 to vector<2x128xf32>
    %498 = arith.addf %497, %496 : vector<2x128xf32>
    %499 = arith.divf %497, %498 : vector<2x128xf32>
    %500 = vector.extract_strided_slice %480 {offsets = [0, 256], sizes = [2, 128], strides = [1, 1]} : vector<2x384xf32> to vector<2x128xf32>
    %501 = vector.extract_strided_slice %483 {offsets = [0, 256], sizes = [2, 128], strides = [1, 1]} : vector<2x384xf32> to vector<2x128xf32>
    %502 = arith.mulf %491, %501 : vector<2x128xf32>
    %503 = arith.addf %500, %502 : vector<2x128xf32>
    %504 = math.tanh %503 : vector<2x128xf32>
    %cst_90 = arith.constant 1.000000e+00 : f32
    %505 = vector.broadcast %cst_90 : f32 to vector<2x128xf32>
    %506 = arith.subf %505, %499 : vector<2x128xf32>
    %507 = arith.mulf %506, %504 : vector<2x128xf32>
    %508 = arith.mulf %499, %447 : vector<2x128xf32>
    %509 = arith.addf %507, %508 : vector<2x128xf32>
    %c0_91 = arith.constant 0 : index
    %c0_92 = arith.constant 0 : index
    %510 = vector.load %arg9[%c0_91, %c0_92] : memref<1x128xf32, #tpu.memory_space<vmem>>, vector<1x128xf32>
    %511 = vector.broadcast %510 : vector<1x128xf32> to vector<2x128xf32>
    %512 = arith.mulf %509, %511 : vector<2x128xf32>
    %cst_93 = arith.constant dense<0.000000e+00> : vector<2xf32>
    %513 = vector.multi_reduction <add>, %512, %cst_93 [1] : vector<2x128xf32> to vector<2xf32>
    %514 = vector.shape_cast %513 : vector<2xf32> to vector<2x1xf32>
    %c0_94 = arith.constant 0 : index
    %c0_95 = arith.constant 0 : index
    %515 = vector.load %arg10[%c0_94, %c0_95] : memref<1x1xf32, #tpu.memory_space<vmem>>, vector<1x1xf32>
    %516 = vector.broadcast %515 : vector<1x1xf32> to vector<2x1xf32>
    %517 = arith.addf %514, %516 : vector<2x1xf32>
    %c0_96 = arith.constant 0 : index
    %c0_97 = arith.constant 0 : index
    %518 = vector.load %arg11[%c0_96, %c0_97] : memref<2x1xf32, #tpu.memory_space<vmem>>, vector<2x1xf32>
    tpu.vector_store %arg11[%c0_96, %c0_97], %517 {strides = array<i32>} : memref<2x1xf32, #tpu.memory_space<vmem>>, vector<2x1xf32>,
    return
  }
}

</mosaic_0001>

<bundles_post_ra>
// kernel: tpu_custom_call.1
= control target key start
LH: loop header
LB: loop body
LE: loop exit
PB: predicated region body
PF: predicated region fallthrough
CT: control target
= control target key end

     0   :  { %s8599_s0 = inlined_call_operand.vmem [shape: f32[16,4], index: 0, kind: input, shape index: {}]   ;;  %s8600_s1 = inlined_call_operand.vmem [shape: f32[4,384], index: 1, kind: input, shape index: {}]   ;;  %s8601_s2 = inlined_call_operand.hbm [shape: f32[128,384], index: 2, kind: input, shape index: {}]   ;;  %s8602_s3 = inlined_call_operand.vmem [shape: f32[1,384], index: 3, kind: input, shape index: {}]   ;;  %s8603_s4 = inlined_call_operand.vmem [shape: f32[1,384], index: 4, kind: input, shape index: {}]   ;;  %s8604_s5 = inlined_call_operand.hbm [shape: f32[128,384], index: 5, kind: input, shape index: {}]   ;;  %s8605_s6 = inlined_call_operand.hbm [shape: f32[128,384], index: 6, kind: input, shape index: {}]   ;;  %s8606_s7 = inlined_call_operand.vmem [shape: f32[1,384], index: 7, kind: input, shape index: {}]   ;;  %s8607_s8 = inlined_call_operand.vmem [shape: f32[1,384], index: 8, kind: input, shape index: {}]   ;;  %s8608_s9 = inlined_call_operand.vmem [shape: f32[1,128], index: 9, kind: input, shape index: {}]   ;;  %s8609_s10 = inlined_call_operand.<no memory space> [shape: f32[1,1], index: 10, kind: input, shape index: {}]   ;;  %s8610_s11 = inlined_call_operand.vmem [shape: f32[2,1], index: 11, kind: output, shape index: {}]  }
   0x1   :  { %v16_v0 = vstv %s8609_s10 }
   0x2   :  { %17 = vst [vmem:[#allocation2] sm:$0x1] %v16_v0 }
   0x3   :  { %18 = vsyncpa [#allocation4], 0 }
   0x4   :  { %19 = vsyncpa [#allocation6], 0  ;;  %s7228_s19 = smov [#allocation5]   ;;  %s7229_s21 = smov [#allocation3]  }
   0x5   :  { %s45_s20 = sshll.u32 %s7228_s19, 4  ;;  %s29_s22 = sshll.u32 %s7229_s21, 4  ;;  %s46_s20 = int_to_ptr.vmem [resolvable:$true] %s45_s20  ;;  %s7299_s22 = int_to_ptr.vmem [resolvable:$true] %s29_s22 }
   0x6   :  { %s7158_s25 = scalar_lea.hbm %s8604_s5, 6144 }
   0x7   :  { %p7159_p0 = scmp.ne.s32.totalorder %s8604_s5, %s7158_s25  ;;  %p7162_p1 = scmp.lt.u32.totalorder %s7158_s25, %s8604_s5 }
   0x9   :  { %p7164_p2 = pnand %p7162_p1, %p7159_p0 }
   0xb   :  { %7167 = shalt.err (!%p7164_p2)
}
   0xc   :  { %s7168_s29 = scalar_lea.vmem %s46_s20, 6144  ;;  %p7173_p4 = scmp.lt.s32.totalorder %s46_s20, %s46_s20 }
   0xd   :  { %p7169_p3 = scmp.ne.s32.totalorder %s46_s20, %s7168_s29  ;;  %p7174_p5 = scmp.lt.s32.totalorder %s7168_s29, %s7168_s29 }
   0xf   :  { %p7175_p6 = por %p7174_p5, %p7173_p4 }
  0x11   :  { %p7176_p7 = pnand %p7175_p6, %p7169_p3 }
  0x13   :  { %7179 = shalt.err (!%p7176_p7)
}
  0x14   :  { %s7230_s30 = smov 384   ;;  %s7231_s12 = smov 24  }
  0x15   :  { %51 = dma.hbm_to_vmem [thread:$0]  %s8604_s5, 6144, %s46_s20, [#allocation6], %s7230_s30, %s7230_s30, %s7231_s12  }
  0x16   :  { %s7180_s17 = scalar_lea.hbm %s8601_s2, 6144 }
  0x17   :  { %p7181_p8 = scmp.ne.s32.totalorder %s8601_s2, %s7180_s17  ;;  %p7184_p9 = scmp.lt.u32.totalorder %s7180_s17, %s8601_s2 }
  0x19   :  { %p7186_p10 = pnand %p7184_p9, %p7181_p8 }
  0x1b   :  { %7189 = shalt.err (!%p7186_p10)
}
  0x1c   :  { %s7190_s24 = scalar_lea.vmem %s7299_s22, 6144  ;;  %p7195_p12 = scmp.lt.s32.totalorder %s7299_s22, %s7299_s22 }
  0x1d   :  { %p7191_p11 = scmp.ne.s32.totalorder %s7299_s22, %s7190_s24  ;;  %p7196_p13 = scmp.lt.s32.totalorder %s7190_s24, %s7190_s24 }
  0x1f   :  { %p7197_p0 = por %p7196_p13, %p7195_p12 }
  0x21   :  { %p7198_p1 = pnand %p7197_p0, %p7191_p11 }
  0x23   :  { %7201 = shalt.err (!%p7198_p1)
}
  0x24   :  { %35 = dma.hbm_to_vmem [thread:$0]  %s8601_s2, 6144, %s7299_s22, [#allocation4], %s7230_s30, %s7230_s30, %s7231_s12  }
  0x25   :  { %s7232_s25 = smov [#allocation7]   ;;  %s7202_s10 = scalar_lea.hbm %s8605_s6, 6144 }
  0x26   :  { %s57_s26 = sshll.u32 %s7232_s25, 4  ;;  %p7203_p2 = scmp.ne.s32.totalorder %s8605_s6, %s7202_s10  ;;  %s58_s26 = int_to_ptr.vmem [resolvable:$true] %s57_s26 }
  0x27   :  { %p7206_p3 = scmp.lt.u32.totalorder %s7202_s10, %s8605_s6 }
  0x29   :  { %p7208_p4 = pnand %p7206_p3, %p7203_p2 }
  0x2b   :  { %7211 = shalt.err (!%p7208_p4)
}
  0x2c   :  { %s7212_s16 = scalar_lea.vmem %s58_s26, 6144  ;;  %p7217_p6 = scmp.lt.s32.totalorder %s58_s26, %s58_s26 }
  0x2d   :  { %p7213_p5 = scmp.ne.s32.totalorder %s58_s26, %s7212_s16  ;;  %p7218_p7 = scmp.lt.s32.totalorder %s7212_s16, %s7212_s16 }
  0x2f   :  { %p7219_p8 = por %p7218_p7, %p7217_p6 }
  0x31   :  { %p7220_p9 = pnand %p7219_p8, %p7213_p5 }
  0x33   :  { %7223 = shalt.err (!%p7220_p9)
}
  0x34   :  { %63 = dma.hbm_to_vmem [thread:$0]  %s8605_s6, 6144, %s58_s26, [#allocation6], %s7230_s30, %s7230_s30, %s7231_s12  }
  0x35   :  { %7224 = dma.done.wait [#allocation4], 6144  }
  0x36   :  { %7225 = vsyncadd [#allocation4], 4294961152 }
  0x37   :  { %7226 = dma.done.wait [#allocation6], 12288  }
  0x38   :  { %7227 = vsyncadd [#allocation6], 4294955008  ;;  %v8611_v1 = vmov 0.0   ;;  %v83_v2 = vld [vmem:[%s8600_s1] sm:$0xff]  ;;  %vm112_vm0 = vcmask 1043456   ;;  %vm105_vm1 = vcmask 31744  }
  0x39   :  { %183 = vmatprep.mubr.f32.mxu0 %v8611_v1  ;;  %v81_v3 = vld [vmem:[%s8599_s0] sm:$0xff]  ;;  %v272_v4 = vld [vmem:[#allocation3 + $0x8] sm:$0xff]  ;;  %v104_v5 = vcombine.high %v83_v2, %v83_v2  ;;  %v281_v12 = vld [vmem:[#allocation3 + $0x50] sm:$0xff]  ;;  %v8613_v34 = vmov 0.0|0.0   ;;  %vm7235_vm2 = vmmov 0   ;;  %vm4280_vm3 = vcmask 1041408  }
  0x3a   :  { %v275_v6 = vld [vmem:[#allocation3 + $0x20] sm:$0xff]  ;;  %v274_v8 = vld [vmem:[#allocation3 + $0x18] sm:$0xff]  ;;  %4754 = vmatprep.mubr.msk.f32.mxu1 %vm105_vm1, %v81_v3  ;;  %v277_v14 = vld [vmem:[#allocation3 + $0x30] sm:$0xff]  ;;  %vm4292_vm4 = vcmask 1024  }
  0x3b   :  { %v271_v7 = vld [vmem:[#allocation3] sm:$0xff]  ;;  %v7359_v9 = vpack.c.bf16 %v275_v6, %v272_v4  ;;  %v278_v11 = vld [vmem:[#allocation3 + $0x38] sm:$0xff]  ;;  %4300 = vmatprep.subr.msk.mxu0 %vm112_vm0, %v104_v5  ;;  %v280_v15 = vld [vmem:[#allocation3 + $0x48] sm:$0xff] }
  0x3c   :  { %v7361_v10 = vpack.c.bf16 %v274_v8, %v271_v7  ;;  %v7364_v13 = vpack.c.bf16 %v281_v12, %v278_v11  ;;  %4301 = vmatpush1.msk.msra.mxu0 %vm112_vm0, %v83_v2  ;;  %v284_v16 = vld [vmem:[#allocation3 + $0x68] sm:$0xff]  ;;  %v287_v17 = vld [vmem:[#allocation3 + $0x80] sm:$0xff]  ;;  %v7370_v18 = vpack.c.bf16 %v280_v15, %v277_v14  ;;  %v286_v21 = vld [vmem:[#allocation3 + $0x78] sm:$0xff] }
  0x3d   :  { %4302 = vmatmul.mubr.msk.f32.vlgmr.msra.gmra.mrb[0].mxu0 %vm105_vm1, %v81_v3  ;;  %5598 = vmatprep.subr.bf16.mxu0 %v7359_v9  ;;  %v7374_v19 = vpack.c.bf16 %v287_v17, %v284_v16  ;;  %v283_v20 = vld [vmem:[#allocation3 + $0x60] sm:$0xff]  ;;  %v290_v22 = vld [vmem:[#allocation3 + $0x98] sm:$0xff]  ;;  %v293_v23 = vld [vmem:[#allocation3 + $0xb0] sm:$0xff] }
  0x3e   :  { %5600 = vmatpush1.bf16.msra.mxu0 %v7361_v10  ;;  %189 = vmatprep.mubr.f32.mxu0 %v8611_v1  ;;  %v84_v24 = vld [vmem:[%s8600_s1 + $0x8] sm:$0xf]  ;;  %v7380_v25 = vpack.c.bf16 %v286_v21, %v283_v20  ;;  %v289_v26 = vld [vmem:[#allocation3 + $0x90] sm:$0xff]  ;;  %v7387_v28 = vpack.c.bf16 %v293_v23, %v290_v22  ;;  %v282_v37 = vld [vmem:[#allocation3 + $0x58] sm:$0xff] }
  0x3f   :  { %5602 = vmatprep.subr.bf16.mxu0 %v7364_v13  ;;  %4752 = vmatprep.subr.msk.mxu1 %vm112_vm0, %v84_v24  ;;  %v82_v27 = vld [vmem:[%s8599_s0 + $0x8] sm:$0xff]  ;;  %v273_v30 = vld [vmem:[#allocation3 + $0x10] sm:$0xff]  ;;  %v298_v42 = vld [vmem:[#allocation3 + $0xd8] sm:$0xff] }
  0x40   :  { %v292_v29 = vld [vmem:[#allocation3 + $0xa8] sm:$0xff]  ;;  %4753 = vmatpush3.msk.msra.mxu1 %vm112_vm0, %v84_v24  ;;  %v299_v33 = vld [vmem:[#allocation3 + $0xe0] sm:$0xff]  ;;  %v285_v43 = vld [vmem:[#allocation3 + $0x70] sm:$0xff] }
  0x41   :  { %v276_v31 = vld [vmem:[#allocation3 + $0x28] sm:$0xff]  ;;  %4303 = vmatmul.mubr.msk.f32.gmra.mrb[2].mxu0 %vm105_vm1, %v82_v27  ;;  %5629 = vmatprep.subr.bf16.mxu1 %v8613_v34  ;;  %v279_v36 = vld [vmem:[#allocation3 + $0x40] sm:$0xff]  ;;  %v7397_v38 = vpack.c.bf16 %v292_v29, %v289_v26  ;;  %v302_v45 = vld [vmem:[#allocation3 + $0xf8] sm:$0xff] }
  0x42   :  { %5604 = vmatpush1.bf16.msra.mxu0 %v7370_v18  ;;  %v296_v32 = vld [vmem:[#allocation3 + $0xc8] sm:$0xff]  ;;  %v7392_v35 = vpack.c.bf16 %v276_v31, %v273_v30  ;;  %4755 = vmatmul.mubr.msk.f32.vlgmr.msra.gmra.mrb[0].mxu1 %vm105_vm1, %v82_v27  ;;  %v295_v39 = vld [vmem:[#allocation3 + $0xc0] sm:$0xff]  ;;  %v7400_v40 = vpack.c.bf16 %v282_v37, %v279_v36  ;;  %v305_v46 = vld [vmem:[#allocation3 + $0x110] sm:$0xff] }
  0x43   :  { %5606 = vmatprep.subr.bf16.mxu0 %v7374_v19  ;;  %498 = vmatprep.mubr.f32.mxu0 %v8611_v1  ;;  %8748 = vst [vmem:[#allocation10_spill] sm:$0xff] %v7397_v38  ;;  %v7403_v41 = vpack.c.bf16 %v299_v33, %v296_v32  ;;  %v288_v44 = vld [vmem:[#allocation3 + $0x88] sm:$0xff]  ;;  %v7409_v47 = vpack.c.bf16 %v298_v42, %v295_v39  ;;  %v301_v48 = vld [vmem:[#allocation3 + $0xf0] sm:$0xff]  ;;  %v291_v52 = vld [vmem:[#allocation3 + $0xa0] sm:$0xff] }
  0x44   :  { %5631 = vmatpush3.bf16.msra.mxu1 %v7392_v35  ;;  %4789 = vmatprep.mubr.msk.f32.mxu1 %vm7235_vm2, %v8611_v1  ;;  %v7412_v49 = vpack.c.bf16 %v288_v44, %v285_v43  ;;  %v7415_v50 = vpack.c.bf16 %v305_v46, %v302_v45  ;;  %v304_v51 = vld [vmem:[#allocation3 + $0x108] sm:$0xff]  ;;  %v294_v53 = vld [vmem:[#allocation3 + $0xb8] sm:$0xff]  ;;  %v311_v55 = vld [vmem:[#allocation3 + $0x140] sm:$0xff] }
  0x45   :  { %8749 = vst [vmem:[#allocation11_spill] sm:$0xff] %v7403_v41  ;;  %5632 = vmatprep.subr.bf16.mxu1 %v8613_v34  ;;  %8750 = vst [vmem:[#allocation12_spill] sm:$0xff] %v7409_v47  ;;  %v308_v54 = vld [vmem:[#allocation3 + $0x128] sm:$0xff]  ;;  %v7419_v56 = vpack.c.bf16 %v304_v51, %v301_v48  ;;  %v307_v57 = vld [vmem:[#allocation3 + $0x120] sm:$0xff]  ;;  %v7422_v58 = vpack.c.bf16 %v294_v53, %v291_v52 }
  0x46   :  { %5608 = vmatpush1.bf16.msra.mxu0 %v7380_v25  ;;  %8751 = vst [vmem:[#allocation13_spill] sm:$0xff] %v7415_v50  ;;  %v7425_v59 = vpack.c.bf16 %v311_v55, %v308_v54  ;;  %v310_v60 = vld [vmem:[#allocation3 + $0x138] sm:$0xff]  ;;  %v297_v61 = vld [vmem:[#allocation3 + $0xd0] sm:$0xff]  ;;  %v300_v62 = vld [vmem:[#allocation3 + $0xe8] sm:$0xff] }
  0x47   :  { %5610 = vmatprep.subr.bf16.mxu0 %v7387_v28  ;;  %8752 = vst [vmem:[#allocation14_spill] sm:$0xff] %v7419_v56  ;;  %8753 = vst [vmem:[#allocation15_spill] sm:$0xff] %v7422_v58  ;;  %v314_v63 = vld [vmem:[#allocation3 + $0x158] sm:$0xff]  ;;  %v317_v0 = vld [vmem:[#allocation3 + $0x170] sm:$0xff]  ;;  %v7429_v2 = vpack.c.bf16 %v310_v60, %v307_v57  ;;  %v7432_v4 = vpack.c.bf16 %v300_v62, %v297_v61 }
  0x48   :  { %5634 = vmatpush3.bf16.msra.mxu1 %v7400_v40  ;;  %8754 = vst [vmem:[#allocation16_spill] sm:$0xff] %v7425_v59  ;;  %v313_v3 = vld [vmem:[#allocation3 + $0x150] sm:$0xff]  ;;  %v7435_v5 = vpack.c.bf16 %v317_v0, %v314_v63  ;;  %v316_v6 = vld [vmem:[#allocation3 + $0x168] sm:$0xff]  ;;  %v303_v7 = vld [vmem:[#allocation3 + $0x100] sm:$0xff] }
  0x49   :  { %5635 = vmatprep.subr.bf16.mxu1 %v8613_v34  ;;  %8755 = vst [vmem:[#allocation17_spill] sm:$0xff] %v7429_v2  ;;  %8756 = vst [vmem:[#allocation18_spill] sm:$0xff] %v7432_v4  ;;  %v306_v8 = vld [vmem:[#allocation3 + $0x118] sm:$0xff]  ;;  %v7439_v11 = vpack.c.bf16 %v316_v6, %v313_v3  ;;  %v309_v14 = vld [vmem:[#allocation3 + $0x130] sm:$0xff] }
  0x4a   :  { %5612 = vmatpush1.bf16.msra.mxu0 %v7397_v38  ;;  %8757 = vst [vmem:[#allocation19_spill] sm:$0xff] %v7435_v5  ;;  %v7442_v12 = vpack.c.bf16 %v306_v8, %v303_v7  ;;  %v312_v15 = vld [vmem:[#allocation3 + $0x148] sm:$0xff]  ;;  %v315_v17 = vld [vmem:[#allocation3 + $0x160] sm:$0xff]  ;;  %v318_v20 = vld [vmem:[#allocation3 + $0x178] sm:$0xff] }
  0x4b   :  { %5614 = vmatprep.subr.bf16.mxu0 %v7403_v41  ;;  %8758 = vst [vmem:[#allocation20_spill] sm:$0xff] %v7439_v11  ;;  %v7448_v16 = vpack.c.bf16 %v312_v15, %v309_v14  ;;  %v7453_v21 = vpack.c.bf16 %v318_v20, %v315_v17  ;;  %v321_v22 = vld [vmem:[#allocation5 + $0x8] sm:$0xff]  ;;  %v324_v23 = vld [vmem:[#allocation5 + $0x20] sm:$0xff]  ;;  %v323_v27 = vld [vmem:[#allocation5 + $0x18] sm:$0xff] }
  0x4c   :  { %5637 = vmatpush3.bf16.msra.mxu1 %v7412_v49  ;;  %8759 = vst [vmem:[#allocation21_spill] sm:$0xff] %v7442_v12  ;;  %v7462_v24 = vpack.c.bf16 %v324_v23, %v321_v22  ;;  %v320_v26 = vld [vmem:[#allocation5] sm:$0xff]  ;;  %v322_v29 = vld [vmem:[#allocation5 + $0x10] sm:$0xff]  ;;  %v325_v31 = vld [vmem:[#allocation5 + $0x28] sm:$0xff] }
  0x4d   :  { %5638 = vmatprep.subr.bf16.mxu1 %v8613_v34  ;;  %8760 = vst [vmem:[#allocation22_spill] sm:$0xff] %v7448_v16  ;;  %8761 = vst [vmem:[#allocation23_spill] sm:$0xff] %v7453_v21  ;;  %v7464_v30 = vpack.c.bf16 %v323_v27, %v320_v26  ;;  %v7467_v32 = vpack.c.bf16 %v325_v31, %v322_v29  ;;  %v327_v33 = vld [vmem:[#allocation5 + $0x38] sm:$0xff]  ;;  %v330_v36 = vld [vmem:[#allocation5 + $0x50] sm:$0xff] }
  0x4e   :  { %5616 = vmatpush1.bf16.msra.mxu0 %v7409_v47  ;;  %8762 = vst [vmem:[#allocation24_spill] sm:$0xff] %v7462_v24  ;;  %v7471_v37 = vpack.c.bf16 %v330_v36, %v327_v33  ;;  %v326_v39 = vld [vmem:[#allocation5 + $0x30] sm:$0xff]  ;;  %v329_v42 = vld [vmem:[#allocation5 + $0x48] sm:$0xff]  ;;  %v328_v43 = vld [vmem:[#allocation5 + $0x40] sm:$0xff] }
  0x4f   :  { %5618 = vmatprep.subr.bf16.mxu0 %v7415_v50  ;;  %8763 = vst [vmem:[#allocation25_spill] sm:$0xff] %v7464_v30  ;;  %8764 = vst [vmem:[#allocation26_spill] sm:$0xff] %v7467_v32  ;;  %v7474_v44 = vpack.c.bf16 %v329_v42, %v326_v39  ;;  %v331_v45 = vld [vmem:[#allocation5 + $0x58] sm:$0xff]  ;;  %v333_v48 = vld [vmem:[#allocation5 + $0x68] sm:$0xff] }
  0x50   :  { %5640 = vmatpush3.bf16.msra.mxu1 %v7422_v58  ;;  %8765 = vst [vmem:[#allocation27_spill] sm:$0xff] %v7471_v37  ;;  %v7477_v46 = vpack.c.bf16 %v331_v45, %v328_v43  ;;  %v336_v51 = vld [vmem:[#allocation5 + $0x80] sm:$0xff]  ;;  %v335_v54 = vld [vmem:[#allocation5 + $0x78] sm:$0xff]  ;;  %v334_v55 = vld [vmem:[#allocation5 + $0x70] sm:$0xff] }
  0x51   :  { %5641 = vmatprep.subr.bf16.mxu1 %v8613_v34  ;;  %8766 = vst [vmem:[#allocation28_spill] sm:$0xff] %v7474_v44  ;;  %v332_v52 = vld [vmem:[#allocation5 + $0x60] sm:$0xff]  ;;  %v7480_v53 = vpack.c.bf16 %v336_v51, %v333_v48  ;;  %v337_v57 = vld [vmem:[#allocation5 + $0x88] sm:$0xff]  ;;  %v339_v62 = vld [vmem:[#allocation5 + $0x98] sm:$0xff] }
  0x52   :  { %5620 = vmatpush1.bf16.msra.mxu0 %v7419_v56  ;;  %8767 = vst [vmem:[#allocation29_spill] sm:$0xff] %v7477_v46  ;;  %v7483_v60 = vpack.c.bf16 %v335_v54, %v332_v52  ;;  %v7485_v61 = vpack.c.bf16 %v337_v57, %v334_v55  ;;  %v342_v63 = vld [vmem:[#allocation5 + $0xb0] sm:$0xff]  ;;  %v341_v6 = vld [vmem:[#allocation5 + $0xa8] sm:$0xff]  ;;  %v340_v7 = vld [vmem:[#allocation5 + $0xa0] sm:$0xff] }
  0x53   :  { %5622 = vmatprep.subr.bf16.mxu0 %v7425_v59  ;;  %8768 = vst [vmem:[#allocation30_spill] sm:$0xff] %v7480_v53  ;;  %v7491_v0 = vpack.c.bf16 %v342_v63, %v339_v62  ;;  %v338_v3 = vld [vmem:[#allocation5 + $0x90] sm:$0xff]  ;;  %v343_v14 = vld [vmem:[#allocation5 + $0xb8] sm:$0xff]  ;;  %v345_v17 = vld [vmem:[#allocation5 + $0xc8] sm:$0xff] }
  0x54   :  { %5643 = vmatpush3.bf16.msra.mxu1 %v7432_v4  ;;  %8769 = vst [vmem:[#allocation31_spill] sm:$0xff] %v7483_v60  ;;  %8770 = vst [vmem:[#allocation32_spill] sm:$0xff] %v7485_v61  ;;  %v7494_v8 = vpack.c.bf16 %v341_v6, %v338_v3  ;;  %v7497_v15 = vpack.c.bf16 %v343_v14, %v340_v7  ;;  %v348_v20 = vld [vmem:[#allocation5 + $0xe0] sm:$0xff]  ;;  %v347_v26 = vld [vmem:[#allocation5 + $0xd8] sm:$0xff] }
  0x55   :  { %5644 = vmatprep.subr.bf16.mxu1 %v8613_v34  ;;  %8771 = vst [vmem:[#allocation33_spill] sm:$0xff] %v7491_v0  ;;  %v7501_v22 = vpack.c.bf16 %v348_v20, %v345_v17  ;;  %v344_v23 = vld [vmem:[#allocation5 + $0xc0] sm:$0xff]  ;;  %v346_v27 = vld [vmem:[#allocation5 + $0xd0] sm:$0xff]  ;;  %v349_v31 = vld [vmem:[#allocation5 + $0xe8] sm:$0xff] }
  0x56   :  { %5624 = vmatpush1.bf16.msra.mxu0 %v7429_v2  ;;  %8772 = vst [vmem:[#allocation34_spill] sm:$0xff] %v7494_v8  ;;  %8773 = vst [vmem:[#allocation35_spill] sm:$0xff] %v7497_v15  ;;  %v7504_v29 = vpack.c.bf16 %v347_v26, %v344_v23  ;;  %v7507_v33 = vpack.c.bf16 %v349_v31, %v346_v27  ;;  %v351_v36 = vld [vmem:[#allocation5 + $0xf8] sm:$0xff]  ;;  %v354_v39 = vld [vmem:[#allocation5 + $0x110] sm:$0xff] }
  0x57   :  { %5626 = vmatprep.subr.bf16.mxu0 %v7435_v5  ;;  %8774 = vst [vmem:[#allocation36_spill] sm:$0xff] %v7501_v22  ;;  %v7511_v42 = vpack.c.bf16 %v354_v39, %v351_v36  ;;  %v350_v43 = vld [vmem:[#allocation5 + $0xf0] sm:$0xff]  ;;  %v353_v45 = vld [vmem:[#allocation5 + $0x108] sm:$0xff]  ;;  %v352_v48 = vld [vmem:[#allocation5 + $0x100] sm:$0xff] }
  0x58   :  { %5646 = vmatpush3.bf16.msra.mxu1 %v7442_v12  ;;  %8775 = vst [vmem:[#allocation37_spill] sm:$0xff] %v7504_v29  ;;  %8776 = vst [vmem:[#allocation38_spill] sm:$0xff] %v7507_v33  ;;  %v7514_v51 = vpack.c.bf16 %v353_v45, %v350_v43  ;;  %v355_v52 = vld [vmem:[#allocation5 + $0x118] sm:$0xff]  ;;  %v357_v54 = vld [vmem:[#allocation5 + $0x128] sm:$0xff] }
  0x59   :  { %5647 = vmatprep.subr.bf16.mxu1 %v8613_v34  ;;  %8777 = vst [vmem:[#allocation39_spill] sm:$0xff] %v7511_v42  ;;  %v360_v55 = vld [vmem:[#allocation5 + $0x140] sm:$0xff]  ;;  %v7517_v57 = vpack.c.bf16 %v355_v52, %v352_v48  ;;  %v359_v3 = vld [vmem:[#allocation5 + $0x138] sm:$0xff]  ;;  %v358_v6 = vld [vmem:[#allocation5 + $0x130] sm:$0xff] }
  0x5a   :  { %5628 = vmatpush1.bf16.msra.mxu0 %v7439_v11  ;;  %8778 = vst [vmem:[#allocation40_spill] sm:$0xff] %v7514_v51  ;;  %v7519_v62 = vpack.c.bf16 %v360_v55, %v357_v54  ;;  %v356_v63 = vld [vmem:[#allocation5 + $0x120] sm:$0xff]  ;;  %v361_v14 = vld [vmem:[#allocation5 + $0x148] sm:$0xff]  ;;  %v363_v17 = vld [vmem:[#allocation5 + $0x158] sm:$0xff]  ;;  %v87_v55 = vlaneseq }
  0x5b   :  { %5654 = vmatprep.subr.bf16.mxu0 %v7462_v24  ;;  %8779 = vst [vmem:[#allocation41_spill] sm:$0xff] %v7517_v57  ;;  %v7522_v7 = vpack.c.bf16 %v359_v3, %v356_v63  ;;  %v366_v20 = vld [vmem:[#allocation5 + $0x170] sm:$0xff]  ;;  %v7526_v23 = vpack.c.bf16 %v361_v14, %v358_v6  ;;  %v365_v31 = vld [vmem:[#allocation5 + $0x168] sm:$0xff]  ;;  %v364_v36 = vld [vmem:[#allocation5 + $0x160] sm:$0xff] }
  0x5c   :  { %5649 = vmatpush3.bf16.msra.mxu1 %v7448_v16  ;;  %8780 = vst [vmem:[#allocation42_spill] sm:$0xff] %v7519_v62  ;;  %v7528_v26 = vpack.c.bf16 %v366_v20, %v363_v17  ;;  %v362_v27 = vld [vmem:[#allocation5 + $0x150] sm:$0xff]  ;;  %v367_v39 = vld [vmem:[#allocation5 + $0x178] sm:$0xff]  ;;  %v370_v43 = vld [vmem:[#allocation7 + $0x8] sm:$0xff]  ;;  %v88_v63 = vshrl.u32 %v87_v55, 7 }
  0x5d   :  { %499 = vmatmul.mubr.f32.vlgmr.msra.gmra.mrb[4].mxu0 %v8611_v1  ;;  %5650 = vmatprep.subr.bf16.mxu1 %v8613_v34  ;;  %8781 = vst [vmem:[#allocation43_spill] sm:$0xff] %v7522_v7  ;;  %8782 = vst [vmem:[#allocation44_spill] sm:$0xff] %v7526_v23  ;;  %v373_v45 = vld [vmem:[#allocation7 + $0x20] sm:$0xff]  ;;  %v7532_v48 = vpack.c.bf16 %v365_v31, %v362_v27  ;;  %v7536_v52 = vpack.c.bf16 %v367_v39, %v364_v36 }
  0x5e   :  { %676 = vmatprep.mubr.f32.mxu0 %v8611_v1  ;;  %5656 = vmatpush1.bf16.msra.mxu0 %v7464_v30  ;;  %8783 = vst [vmem:[#allocation45_spill] sm:$0xff] %v7528_v26  ;;  %v7538_v54 = vpack.c.bf16 %v373_v45, %v370_v43  ;;  %v7545_v14 = vsub.s32 2, %v88_v63  ;;  %v7547_v17 = vsub.s32 0, %v88_v63  ;;  %v85_v20 = vld [vmem:[%s8602_s3] sm:$0x7]  ;;  %v7552_v27 = vsub.s32 1, %v88_v63 }
  0x5f   :  { %5658 = vmatprep.subr.bf16.mxu0 %v7471_v37  ;;  %8784 = vst [vmem:[#allocation46_spill] sm:$0xff] %v7532_v48  ;;  %8785 = vst [vmem:[#allocation47_spill] sm:$0xff] %v7536_v52  ;;  %v319_v63 = vld [vmem:[%s8603_s4] sm:$0x7] }
  0x60   :  { %5652 = vmatpush3.bf16.msra.mxu1 %v7453_v21  ;;  %8786 = vst [vmem:[#allocation48_spill] sm:$0xff] %v7538_v54  ;;  %8787 = vst [vmem:[#allocation49_spill] sm:$0xff] %v7547_v17  ;;  %v98_v31 = vrot.slane %v85_v20, %v7545_v14  ;;  %v90_v36 = vrot.slane %v85_v20, %v7547_v17  ;;  %v94_v39 = vrot.slane %v85_v20, %v7552_v27 }
  0x61   :  { %5685 = vmatprep.subr.bf16.mxu1 %v8613_v34  ;;  %8788 = vst [vmem:[#allocation50_spill] sm:$0xff] %v7552_v27 }
  0x62   :  { %5660 = vmatpush1.bf16.msra.mxu0 %v7474_v44 }
  0x63   :  { %4790 = vmatmul.mubr.f32.vlgmr.msra.gmra.mrb[2].mxu1 %v8611_v1  ;;  %5662 = vmatprep.subr.bf16.mxu0 %v7480_v53 }
  0x64   :  { %4824 = vmatprep.mubr.msk.f32.mxu1 %vm7235_vm2, %v8611_v1  ;;  %5687 = vmatpush3.bf16.msra.mxu1 %v7467_v32 }
  0x65   :  { %5688 = vmatprep.subr.bf16.mxu1 %v8613_v34 }
  0x66   :  { %5664 = vmatpush1.bf16.msra.mxu0 %v7483_v60 }
  0x67   :  { %5666 = vmatprep.subr.bf16.mxu0 %v7491_v0 }
  0x68   :  { %5690 = vmatpush3.bf16.msra.mxu1 %v7477_v46 }
  0x69   :  { %5691 = vmatprep.subr.bf16.mxu1 %v8613_v34 }
  0x6a   :  { %5668 = vmatpush1.bf16.msra.mxu0 %v7494_v8 }
  0x6b   :  { %5670 = vmatprep.subr.bf16.mxu0 %v7501_v22 }
  0x6c   :  { %5693 = vmatpush3.bf16.msra.mxu1 %v7485_v61 }
  0x6d   :  { %5694 = vmatprep.subr.bf16.mxu1 %v8613_v34 }
  0x6e   :  { %5672 = vmatpush1.bf16.msra.mxu0 %v7504_v29 }
  0x6f   :  { %5674 = vmatprep.subr.bf16.mxu0 %v7511_v42 }
  0x70   :  { %5696 = vmatpush3.bf16.msra.mxu1 %v7497_v15 }
  0x71   :  { %5697 = vmatprep.subr.bf16.mxu1 %v8613_v34 }
  0x72   :  { %5676 = vmatpush1.bf16.msra.mxu0 %v7514_v51 }
  0x73   :  { %5678 = vmatprep.subr.bf16.mxu0 %v7519_v62 }
  0x74   :  { %5699 = vmatpush3.bf16.msra.mxu1 %v7507_v33 }
  0x75   :  { %5700 = vmatprep.subr.bf16.mxu1 %v8613_v34 }
  0x76   :  { %5680 = vmatpush1.bf16.msra.mxu0 %v7522_v7 }
  0x77   :  { %5682 = vmatprep.subr.bf16.mxu0 %v7528_v26  ;;  %v7570_v26 = vrot.slane %v319_v63, %v7552_v27 }
  0x78   :  { %5702 = vmatpush3.bf16.msra.mxu1 %v7517_v57 }
  0x79   :  { %5703 = vmatprep.subr.bf16.mxu1 %v8613_v34  ;;  %8792 = vst [vmem:[#allocation54_spill] sm:$0xff] %v7570_v26 }
  0x7a   :  { %5684 = vmatpush1.bf16.msra.mxu0 %v7532_v48  ;;  %v7567_v48 = vrot.slane %v319_v63, %v7547_v17 }
  0x7b   :  { %5710 = vmatprep.subr.bf16.mxu0 %v7538_v54 }
  0x7c   :  { %5705 = vmatpush3.bf16.msra.mxu1 %v7526_v23 }
  0x7d   :  { %5706 = vmatprep.subr.bf16.mxu1 %v8613_v34 }
  0x80   :  { %5708 = vmatpush3.bf16.msra.mxu1 %v7536_v52 }
  0x81   :  { %5741 = vmatprep.subr.bf16.mxu1 %v8613_v34 }
 0x110   :  { %v185_v3 = vpop.f32.mrb[0].mxu0 }
 0x111   :  { %v187_v6 = vpop.f32.mrb[1].mxu0 }
 0x114   :  { %v191_v43 = vpop.f32.mrb[2].mxu0 }
 0x115   :  { %v7557_v45 = vadd.f32 %v191_v43, %v90_v36  ;;  %v193_v55 = vpop.f32.mrb[3].mxu0  ;;  %v4756_v1 = vpop.f32.mrb[0].mxu1  ;;  %v7572_v43 = vadd.f32 %v185_v3, %v90_v36  ;;  %v7581_v36 = vrot.slane %v319_v63, %v7545_v14 }
 0x116   :  { %v7559_v34 = vadd.f32 %v193_v55, %v94_v39  ;;  %v7561_v54 = vadd.f32 %v4756_v1, %v98_v31  ;;  %v262_v52 = vpop.f32.mrb[1].mxu1 }
 0x117   :  { %8789 = vst [vmem:[#allocation51_spill] sm:$0xff] %v7557_v45  ;;  %8793 = vst [vmem:[#allocation55_spill] sm:$0xff] %v7572_v43 }
 0x118   :  { %8790 = vst [vmem:[#allocation52_spill] sm:$0xff] %v7559_v34  ;;  %8791 = vst [vmem:[#allocation53_spill] sm:$0xff] %v7561_v54  ;;  %v7577_v34 = vadd.f32 %v187_v6, %v94_v39  ;;  %v7584_v39 = vadd.f32 %v262_v52, %v98_v31  ;;  %v375_v31 = vld [vmem:[#allocation7 + $0x30] sm:$0xff] }
 0x119   :  { %8795 = vst [vmem:[#allocation57_spill] sm:$0xff] %v7581_v36 }
 0x11a   :  { %8794 = vst [vmem:[#allocation56_spill] sm:$0xff] %v7577_v34  ;;  %8796 = vst [vmem:[#allocation58_spill] sm:$0xff] %v7584_v39 }
 0x130   :  { %v500_v20 = vpop.f32.mrb[4].mxu0 }
 0x131   :  { %v501_v45 = vadd.f32 %v500_v20, %v7567_v48  ;;  %v502_v55 = vpop.f32.mrb[5].mxu0 }
 0x132   :  { %v503_v1 = vadd.f32 %v502_v55, %v7570_v26 }
 0x133   :  { %v575_v54 = vadd.f32 %v501_v45, %v7572_v43  ;;  %v379_v43 = vld [vmem:[#allocation7 + $0x50] sm:$0xff] }
 0x134   :  { %v582_v7 = vadd.f32 %v503_v1, %v7577_v34  ;;  %v371_v1 = vld [vmem:[#allocation7 + $0x10] sm:$0xff]  ;;  %v376_v34 = vld [vmem:[#allocation7 + $0x38] sm:$0xff] }
 0x135   :  { %v4307_v23 = vmul.f32 -1.442695, %v575_v54 }
 0x136   :  { %v571_v17 = vpop.f32.mrb[2].mxu1  ;;  %v4308_v27 = vmul.f32 -1.442695, %v582_v7  ;;  %v369_v7 = vld [vmem:[#allocation7] sm:$0xff] }
 0x137   :  { %6998 = vpow2.f32 %v4307_v23  ;;  %v4791_v62 = vpop.f32.mrb[3].mxu1  ;;  %v572_v45 = vadd.f32 %v571_v17, %v7581_v36  ;;  %v385_v36 = vld [vmem:[#allocation7 + $0x80] sm:$0xff] }
 0x138   :  { %7000 = vpow2.f32 %v4308_v27 }
 0x141   :  { %v6999_v57 = vpop.eup %6998 }
 0x142   :  { %v579_v3 = vadd.f32 1.0, %v6999_v57  ;;  %v7001_v20 = vpop.eup %7000  ;;  %v372_v57 = vld [vmem:[#allocation7 + $0x18] sm:$0xff] }
 0x143   :  { %v586_v55 = vadd.f32 1.0, %v7001_v20  ;;  %v7587_v17 = vpack.c.bf16 %v372_v57, %v369_v7  ;;  %v383_v57 = vld [vmem:[#allocation7 + $0x70] sm:$0xff] }
 0x144   :  { %7002 = vrcp.f32 %v579_v3  ;;  %v374_v3 = vld [vmem:[#allocation7 + $0x28] sm:$0xff] }
 0x145   :  { %7004 = vrcp.f32 %v586_v55  ;;  %8797 = vst [vmem:[#allocation59_spill] sm:$0xff] %v7587_v17  ;;  %v7589_v52 = vpack.c.bf16 %v374_v3, %v371_v1  ;;  %v386_v1 = vld [vmem:[#allocation7 + $0x88] sm:$0xff]  ;;  %v388_v3 = vld [vmem:[#allocation7 + $0x98] sm:$0xff] }
 0x147   :  { %8798 = vst [vmem:[#allocation60_spill] sm:$0xff] %v7589_v52 }
 0x14e   :  { %v7003_v6 = vpop.eup %7002 }
 0x14f   :  { %v589_v54 = vmul.f32 %v7003_v6, %v572_v45  ;;  %v7005_v62 = vpop.eup %7004  ;;  %v7593_v45 = vpack.c.bf16 %v379_v43, %v376_v34  ;;  %v378_v6 = vld [vmem:[#allocation7 + $0x48] sm:$0xff]  ;;  %v8802_v34 = vmov 0.0|0.0  }
 0x150   :  { %v592_v27 = vsub.f32 1.0, %v7005_v62  ;;  %v594_v26 = vmul.f32 0.0, %v7005_v62  ;;  %v7599_v62 = vpack.c.bf16 %v378_v6, %v375_v31  ;;  %v7614_v6 = vpack.c.bf16 %v386_v1, %v383_v57  ;;  %v393_v57 = vld [vmem:[#allocation7 + $0xc0] sm:$0xff] }
 0x151   :  { %v590_v23 = vadd.f32 %v589_v54, %v7584_v39  ;;  %8799 = vst [vmem:[#allocation61_spill] sm:$0xff] %v7593_v45  ;;  %v377_v54 = vld [vmem:[#allocation7 + $0x40] sm:$0xff]  ;;  %v382_v39 = vld [vmem:[#allocation7 + $0x68] sm:$0xff] }
 0x152   :  { %8800 = vst [vmem:[#allocation62_spill] sm:$0xff] %v7599_v62  ;;  %v7605_v43 = vpack.c.bf16 %v385_v36, %v382_v39  ;;  %8806 = vst [vmem:[#allocation66_spill] sm:$0xff] %v7614_v6  ;;  %v387_v36 = vld [vmem:[#allocation7 + $0x90] sm:$0xff] }
 0x153   :  { %7006 = vtanh.f32 %v590_v23  ;;  %v380_v23 = vld [vmem:[#allocation7 + $0x58] sm:$0xff] }
 0x154   :  { %v7601_v7 = vpack.c.bf16 %v380_v23, %v377_v54  ;;  %8803 = vst [vmem:[#allocation64_spill] sm:$0xff] %v7605_v43  ;;  %v390_v54 = vld [vmem:[#allocation7 + $0xa8] sm:$0xff]  ;;  %v389_v23 = vld [vmem:[#allocation7 + $0xa0] sm:$0xff] }
 0x156   :  { %8801 = vst [vmem:[#allocation63_spill] sm:$0xff] %v7601_v7 }
 0x15d   :  { %v7007_v63 = vpop.eup %7006 }
 0x15e   :  { %v593_v20 = vmul.f32 %v7007_v63, %v592_v27  ;;  %v384_v27 = vld [vmem:[#allocation7 + $0x78] sm:$0xff]  ;;  %v391_v63 = vld [vmem:[#allocation7 + $0xb0] sm:$0xff] }
 0x15f   :  { %v7618_v39 = vpack.c.bf16 %v391_v63, %v388_v3  ;;  %v396_v3 = vld [vmem:[#allocation7 + $0xd8] sm:$0xff]  ;;  %v395_v63 = vld [vmem:[#allocation7 + $0xd0] sm:$0xff] }
 0x160   :  { %v7591_v55 = vadd.f32 %v594_v26, %v593_v20  ;;  %v381_v26 = vld [vmem:[#allocation7 + $0x60] sm:$0xff]  ;;  %v8804_v20 = vmov 0.0  }
 0x161   :  { %v7612_v31 = vpack.c.bf16 %v384_v27, %v381_v26  ;;  %8807 = vst [vmem:[#allocation67_spill] sm:$0xff] %v7618_v39  ;;  %v7622_v26 = vpack.c.bf16 %v390_v54, %v387_v36  ;;  %v7632_v36 = vpack.c.bf16 %v396_v3, %v393_v57  ;;  %v399_v54 = vld [vmem:[#allocation7 + $0xf0] sm:$0xff]  ;;  %v405_v3 = vld [vmem:[#allocation7 + $0x120] sm:$0xff] }
 0x162   :  { %677 = vmatmul.mubr.f32.vlgmr.msra.gmra.mrb[6].mxu0 %v7591_v55  ;;  %4825 = vmatmul.mubr.f32.vlgmr.msra.gmra.mrb[4].mxu1 %v7591_v55 }
 0x163   :  { %5712 = vmatpush1.bf16.msra.mxu0 %v7587_v17  ;;  %5743 = vmatpush3.bf16.msra.mxu1 %v7589_v52  ;;  %8805 = vst [vmem:[#allocation65_spill] sm:$0xff] %v7612_v31  ;;  %v394_v52 = vld [vmem:[#allocation7 + $0xc8] sm:$0xff]  ;;  %v397_v17 = vld [vmem:[#allocation7 + $0xe0] sm:$0xff]  ;;  %8808 = vst [vmem:[#allocation68_spill] sm:$0xff] %v7622_v26 }
 0x164   :  { %5714 = vmatprep.subr.bf16.mxu0 %v7593_v45  ;;  %5744 = vmatprep.subr.bf16.mxu1 %v8802_v34  ;;  %v392_v45 = vld [vmem:[#allocation7 + $0xb8] sm:$0xff]  ;;  %v7628_v1 = vpack.c.bf16 %v397_v17, %v394_v52  ;;  %v402_v52 = vld [vmem:[#allocation7 + $0x108] sm:$0xff] }
 0x165   :  { %833 = vmatprep.mubr.f32.mxu0 %v8804_v20  ;;  %4859 = vmatprep.mubr.msk.f32.mxu1 %vm7235_vm2, %v8804_v20  ;;  %v7624_v27 = vpack.c.bf16 %v392_v45, %v389_v23  ;;  %v401_v23 = vld [vmem:[#allocation7 + $0x100] sm:$0xff]  ;;  %v7642_v57 = vpack.c.bf16 %v402_v52, %v399_v54  ;;  %v411_v52 = vld [vmem:[#allocation7 + $0x150] sm:$0xff] }
 0x166   :  { %8810 = vst [vmem:[#allocation70_spill] sm:$0xff] %v7628_v1 }
 0x167   :  { %5716 = vmatpush1.bf16.msra.mxu0 %v7599_v62  ;;  %5746 = vmatpush3.bf16.msra.mxu1 %v7601_v7  ;;  %8809 = vst [vmem:[#allocation69_spill] sm:$0xff] %v7624_v27  ;;  %v400_v7 = vld [vmem:[#allocation7 + $0xf8] sm:$0xff]  ;;  %v403_v62 = vld [vmem:[#allocation7 + $0x110] sm:$0xff]  ;;  %8812 = vst [vmem:[#allocation72_spill] sm:$0xff] %v7642_v57 }
 0x168   :  { %5718 = vmatprep.subr.bf16.mxu0 %v7605_v43  ;;  %5747 = vmatprep.subr.bf16.mxu1 %v8802_v34  ;;  %v398_v43 = vld [vmem:[#allocation7 + $0xe8] sm:$0xff]  ;;  %v7638_v17 = vpack.c.bf16 %v403_v62, %v400_v7  ;;  %v408_v7 = vld [vmem:[#allocation7 + $0x138] sm:$0xff] }
 0x169   :  { %v7634_v45 = vpack.c.bf16 %v398_v43, %v395_v63  ;;  %v407_v63 = vld [vmem:[#allocation7 + $0x130] sm:$0xff]  ;;  %v7652_v54 = vpack.c.bf16 %v408_v7, %v405_v3  ;;  %v8817_v7 = vld [vmem:[#allocation45_spill] sm:$0xff] }
 0x16a   :  { %8811 = vst [vmem:[#allocation71_spill] sm:$0xff] %v7638_v17 }
 0x16b   :  { %5720 = vmatpush1.bf16.msra.mxu0 %v7612_v31  ;;  %5749 = vmatpush3.bf16.msra.mxu1 %v7614_v6  ;;  %v406_v6 = vld [vmem:[#allocation7 + $0x128] sm:$0xff]  ;;  %v409_v31 = vld [vmem:[#allocation7 + $0x140] sm:$0xff] }
 0x16c   :  { %5722 = vmatprep.subr.bf16.mxu0 %v7618_v39  ;;  %5750 = vmatprep.subr.bf16.mxu1 %v8802_v34  ;;  %v404_v39 = vld [vmem:[#allocation7 + $0x118] sm:$0xff]  ;;  %v7648_v62 = vpack.c.bf16 %v409_v31, %v406_v6  ;;  %v414_v6 = vld [vmem:[#allocation7 + $0x168] sm:$0xff] }
 0x16d   :  { %v7644_v43 = vpack.c.bf16 %v404_v39, %v401_v23  ;;  %v413_v23 = vld [vmem:[#allocation7 + $0x160] sm:$0xff] }
 0x16f   :  { %5724 = vmatpush1.bf16.msra.mxu0 %v7622_v26  ;;  %5752 = vmatpush3.bf16.msra.mxu1 %v7624_v27  ;;  %v412_v27 = vld [vmem:[#allocation7 + $0x158] sm:$0xff]  ;;  %v415_v26 = vld [vmem:[#allocation7 + $0x170] sm:$0xff] }
 0x170   :  { %5726 = vmatprep.subr.bf16.mxu0 %v7628_v1  ;;  %5753 = vmatprep.subr.bf16.mxu1 %v8802_v34  ;;  %v410_v1 = vld [vmem:[#allocation7 + $0x148] sm:$0xff]  ;;  %v7658_v31 = vpack.c.bf16 %v415_v26, %v412_v27  ;;  %v8813_v26 = vld [vmem:[#allocation41_spill] sm:$0xff]  ;;  %v8814_v27 = vld [vmem:[#allocation42_spill] sm:$0xff] }
 0x171   :  { %v7654_v39 = vpack.c.bf16 %v410_v1, %v407_v63  ;;  %v8815_v1 = vld [vmem:[#allocation43_spill] sm:$0xff]  ;;  %v8818_v63 = vld [vmem:[#allocation46_spill] sm:$0xff] }
 0x173   :  { %5728 = vmatpush1.bf16.msra.mxu0 %v7632_v36  ;;  %5755 = vmatpush3.bf16.msra.mxu1 %v7634_v45 }
 0x174   :  { %5730 = vmatprep.subr.bf16.mxu0 %v7638_v17  ;;  %5756 = vmatprep.subr.bf16.mxu1 %v8802_v34  ;;  %v416_v17 = vld [vmem:[#allocation7 + $0x178] sm:$0xff] }
 0x175   :  { %v7664_v3 = vpack.c.bf16 %v416_v17, %v413_v23  ;;  %v8816_v17 = vld [vmem:[#allocation44_spill] sm:$0xff] }
 0x177   :  { %5732 = vmatpush1.bf16.msra.mxu0 %v7642_v57  ;;  %5758 = vmatpush3.bf16.msra.mxu1 %v7644_v43  ;;  %v7662_v57 = vpack.c.bf16 %v414_v6, %v411_v52  ;;  %v8819_v52 = vld [vmem:[#allocation47_spill] sm:$0xff]  ;;  %v8820_v6 = vld [vmem:[#allocation48_spill] sm:$0xff] }
 0x178   :  { %5734 = vmatprep.subr.bf16.mxu0 %v7648_v62  ;;  %5759 = vmatprep.subr.bf16.mxu1 %v8802_v34 }
 0x17b   :  { %5736 = vmatpush1.bf16.msra.mxu0 %v7652_v54  ;;  %5761 = vmatpush3.bf16.msra.mxu1 %v7654_v39 }
 0x17c   :  { %5738 = vmatprep.subr.bf16.mxu0 %v7658_v31  ;;  %5762 = vmatprep.subr.bf16.mxu1 %v8802_v34 }
 0x17f   :  { %5740 = vmatpush1.bf16.msra.mxu0 %v7662_v57  ;;  %5764 = vmatpush3.bf16.msra.mxu1 %v7664_v3 }
 0x180   :  { %5766 = vmatprep.subr.bf16.mxu0 %v7359_v9  ;;  %5797 = vmatprep.subr.bf16.mxu1 %v8802_v34 }
 0x182   :  { %834 = vmatmul.mubr.f32.vlgmr.msra.gmra.mrb[6].mxu0 %v8804_v20  ;;  %4860 = vmatmul.mubr.f32.vlgmr.msra.gmra.mrb[6].mxu1 %v8804_v20 }
 0x183   :  { %5768 = vmatpush1.bf16.msra.mxu0 %v7361_v10  ;;  %5799 = vmatpush3.bf16.msra.mxu1 %v7392_v35 }
 0x184   :  { %5770 = vmatprep.subr.bf16.mxu0 %v7364_v13  ;;  %5800 = vmatprep.subr.bf16.mxu1 %v8802_v34 }
 0x185   :  { %995 = vmatprep.mubr.f32.mxu0 %v8804_v20  ;;  %4894 = vmatprep.mubr.msk.f32.mxu1 %vm7235_vm2, %v8804_v20 }
 0x187   :  { %5772 = vmatpush1.bf16.msra.mxu0 %v7370_v18  ;;  %5802 = vmatpush3.bf16.msra.mxu1 %v7400_v40 }
 0x188   :  { %5774 = vmatprep.subr.bf16.mxu0 %v7374_v19  ;;  %5803 = vmatprep.subr.bf16.mxu1 %v8802_v34 }
 0x18b   :  { %5776 = vmatpush1.bf16.msra.mxu0 %v7380_v25  ;;  %5805 = vmatpush3.bf16.msra.mxu1 %v7412_v49 }
 0x18c   :  { %5778 = vmatprep.subr.bf16.mxu0 %v7387_v28  ;;  %5806 = vmatprep.subr.bf16.mxu1 %v8802_v34 }
 0x18f   :  { %5780 = vmatpush1.bf16.msra.mxu0 %v7397_v38  ;;  %5808 = vmatpush3.bf16.msra.mxu1 %v7422_v58 }
 0x190   :  { %5782 = vmatprep.subr.bf16.mxu0 %v7403_v41  ;;  %5809 = vmatprep.subr.bf16.mxu1 %v8802_v34 }
 0x193   :  { %5784 = vmatpush1.bf16.msra.mxu0 %v7409_v47  ;;  %5811 = vmatpush3.bf16.msra.mxu1 %v7432_v4 }
 0x194   :  { %5786 = vmatprep.subr.bf16.mxu0 %v7415_v50  ;;  %5812 = vmatprep.subr.bf16.mxu1 %v8802_v34 }
 0x197   :  { %5788 = vmatpush1.bf16.msra.mxu0 %v7419_v56  ;;  %5814 = vmatpush3.bf16.msra.mxu1 %v7442_v12 }
 0x198   :  { %5790 = vmatprep.subr.bf16.mxu0 %v7425_v59  ;;  %5815 = vmatprep.subr.bf16.mxu1 %v8802_v34 }
 0x19b   :  { %5792 = vmatpush1.bf16.msra.mxu0 %v7429_v2  ;;  %5817 = vmatpush3.bf16.msra.mxu1 %v7448_v16 }
 0x19c   :  { %5794 = vmatprep.subr.bf16.mxu0 %v7435_v5  ;;  %5818 = vmatprep.subr.bf16.mxu1 %v8802_v34 }
 0x19f   :  { %5796 = vmatpush1.bf16.msra.mxu0 %v7439_v11  ;;  %5820 = vmatpush3.bf16.msra.mxu1 %v7453_v21 }
 0x1a0   :  { %5822 = vmatprep.subr.bf16.mxu0 %v7462_v24  ;;  %5853 = vmatprep.subr.bf16.mxu1 %v8802_v34 }
 0x1a2   :  { %996 = vmatmul.mubr.f32.vlgmr.msra.gmra.mrb[8].mxu0 %v7591_v55  ;;  %4895 = vmatmul.mubr.f32.vlgmr.msra.gmra.mrb[8].mxu1 %v7591_v55 }
 0x1a3   :  { %5824 = vmatpush1.bf16.msra.mxu0 %v7464_v30  ;;  %5855 = vmatpush3.bf16.msra.mxu1 %v7467_v32 }
 0x1a4   :  { %5826 = vmatprep.subr.bf16.mxu0 %v7471_v37  ;;  %5856 = vmatprep.subr.bf16.mxu1 %v8802_v34 }
 0x1a5   :  { %1172 = vmatprep.mubr.f32.mxu0 %v8804_v20  ;;  %4929 = vmatprep.mubr.msk.f32.mxu1 %vm7235_vm2, %v8804_v20 }
 0x1a7   :  { %5828 = vmatpush1.bf16.msra.mxu0 %v7474_v44  ;;  %5858 = vmatpush3.bf16.msra.mxu1 %v7477_v46 }
 0x1a8   :  { %5830 = vmatprep.subr.bf16.mxu0 %v7480_v53  ;;  %5859 = vmatprep.subr.bf16.mxu1 %v8802_v34 }
 0x1ab   :  { %5832 = vmatpush1.bf16.msra.mxu0 %v7483_v60  ;;  %5861 = vmatpush3.bf16.msra.mxu1 %v7485_v61 }
 0x1ac   :  { %5834 = vmatprep.subr.bf16.mxu0 %v7491_v0  ;;  %5862 = vmatprep.subr.bf16.mxu1 %v8802_v34 }
 0x1af   :  { %5836 = vmatpush1.bf16.msra.mxu0 %v7494_v8  ;;  %5864 = vmatpush3.bf16.msra.mxu1 %v7497_v15 }
 0x1b0   :  { %5838 = vmatprep.subr.bf16.mxu0 %v7501_v22  ;;  %5865 = vmatprep.subr.bf16.mxu1 %v8802_v34 }
 0x1b3   :  { %5840 = vmatpush1.bf16.msra.mxu0 %v7504_v29  ;;  %5867 = vmatpush3.bf16.msra.mxu1 %v7507_v33 }
 0x1b4   :  { %5842 = vmatprep.subr.bf16.mxu0 %v7511_v42  ;;  %5868 = vmatprep.subr.bf16.mxu1 %v8802_v34 }
 0x1b7   :  { %5844 = vmatpush1.bf16.msra.mxu0 %v7514_v51  ;;  %5870 = vmatpush3.bf16.msra.mxu1 %v8813_v26  ;;  %v8822_v51 = vld [vmem:[#allocation50_spill] sm:$0xff] }
 0x1b8   :  { %5846 = vmatprep.subr.bf16.mxu0 %v8814_v27  ;;  %5871 = vmatprep.subr.bf16.mxu1 %v8802_v34 }
 0x1bb   :  { %5848 = vmatpush1.bf16.msra.mxu0 %v8815_v1  ;;  %5873 = vmatpush3.bf16.msra.mxu1 %v8816_v17  ;;  %v417_v1 = vld [vmem:[%s8607_s8] sm:$0x7] }
 0x1bc   :  { %5850 = vmatprep.subr.bf16.mxu0 %v8817_v7  ;;  %5874 = vmatprep.subr.bf16.mxu1 %v8802_v34  ;;  %v368_v7 = vld [vmem:[%s8606_s7] sm:$0x7] }
 0x1bd   :  { %v8821_v17 = vld [vmem:[#allocation49_spill] sm:$0xff] }
 0x1be   :  { %v600_v26 = vrot.slane %v368_v7, %v8821_v17 }
 0x1bf   :  { %5852 = vmatpush1.bf16.msra.mxu0 %v8818_v63  ;;  %5876 = vmatpush3.bf16.msra.mxu1 %v8819_v52  ;;  %v757_v63 = vrot.slane %v417_v1, %v8821_v17  ;;  %v604_v52 = vrot.slane %v368_v7, %v8822_v51 }
 0x1c0   :  { %5878 = vmatprep.subr.bf16.mxu0 %v8820_v6  ;;  %5909 = vmatprep.subr.bf16.mxu1 %v8802_v34  ;;  %v761_v6 = vrot.slane %v417_v1, %v8822_v51  ;;  %v7763_v51 = vrot.slane %v417_v1, %v7545_v14 }
 0x1c1   :  { %v7756_v42 = vadd.f32 %v757_v63, %v600_v26  ;;  %v7766_v63 = vrot.slane %v368_v7, %v7545_v14 }
 0x1c2   :  { %v7758_v33 = vadd.f32 %v761_v6, %v604_v52  ;;  %8825 = vst [vmem:[#allocation73_spill] sm:$0xff] %v7763_v51 }
 0x1c3   :  { %8823 = vst [vmem:[#allocation49_spill] sm:$0xff] %v7756_v42 }
 0x1c4   :  { %8824 = vst [vmem:[#allocation50_spill] sm:$0xff] %v7758_v33 }
 0x235   :  { %v749_v23 = vpop.f32.mrb[4].mxu1 }
 0x236   :  { %v4826_v27 = vpop.f32.mrb[5].mxu1 }
 0x255   :  { %v835_v27 = vpop.f32.mrb[6].mxu0  ;;  %v906_v29 = vpop.f32.mrb[6].mxu1 }
 0x256   :  { %v6942_v22 = vadd.f32 %v7756_v42, %v835_v27  ;;  %v837_v15 = vpop.f32.mrb[7].mxu0  ;;  %v4861_v8 = vpop.f32.mrb[7].mxu1  ;;  %v907_v6 = vadd.f32 %v906_v29, %v7763_v51  ;;  %v8828_v29 = vld [vmem:[#allocation56_spill] sm:$0xff] }
 0x257   :  { %v6944_v61 = vadd.f32 %v7758_v33, %v837_v15 }
 0x258   :  { %v4309_v0 = vmul.f32 -1.442695, %v6942_v22  ;;  %v750_v22 = vadd.f32 %v749_v23, %v7766_v63 }
 0x259   :  { %v4310_v60 = vmul.f32 -1.442695, %v6944_v61 }
 0x25a   :  { %7008 = vpow2.f32 %v4309_v0 }
 0x25b   :  { %7010 = vpow2.f32 %v4310_v60 }
 0x264   :  { %v7009_v17 = vpop.eup %7008 }
 0x265   :  { %v914_v53 = vadd.f32 1.0, %v7009_v17  ;;  %v7011_v26 = vpop.eup %7010  ;;  %v8826_v17 = vld [vmem:[#allocation54_spill] sm:$0xff] }
 0x266   :  { %v921_v52 = vadd.f32 1.0, %v7011_v26  ;;  %v8827_v26 = vld [vmem:[#allocation55_spill] sm:$0xff] }
 0x267   :  { %7012 = vrcp.f32 %v914_v53 }
 0x268   :  { %7014 = vrcp.f32 %v921_v52 }
 0x271   :  { %v7013_v8 = vpop.eup %7012 }
 0x272   :  { %v924_v0 = vmul.f32 %v7013_v8, %v907_v6  ;;  %v7015_v46 = vpop.eup %7014 }
 0x273   :  { %v927_v6 = vsub.f32 1.0, %v7015_v46 }
 0x274   :  { %v925_v61 = vadd.f32 %v924_v0, %v750_v22  ;;  %v929_v0 = vmul.f32 0.0, %v7015_v46 }
 0x275   :  { %v997_v60 = vpop.f32.mrb[8].mxu0  ;;  %v1068_v15 = vpop.f32.mrb[8].mxu1 }
 0x276   :  { %7016 = vtanh.f32 %v925_v61  ;;  %v998_v53 = vadd.f32 %v997_v60, %v7567_v48  ;;  %v999_v1 = vpop.f32.mrb[9].mxu0  ;;  %v4896_v27 = vpop.f32.mrb[9].mxu1 }
 0x277   :  { %v1000_v33 = vadd.f32 %v999_v1, %v8826_v17 }
 0x278   :  { %v1073_v14 = vrot.slane %v998_v53, 6 }
 0x279   :  { %v1083_v7 = vrot.slane %v1000_v33, 6  ;;  %v8829_v33 = vld [vmem:[#allocation57_spill] sm:$0xff] }
 0x27a   :  { %v1075_v42 = vadd.f32 %v1073_v14, %v8827_v26  ;;  %v1069_v14 = vadd.f32 %v1068_v15, %v8829_v33  ;;  %v8830_v26 = vld [vmem:[#allocation58_spill] sm:$0xff]  ;;  %v8831_v15 = vld [vmem:[#allocation59_spill] sm:$0xff] }
 0x27b   :  { %v1085_v51 = vadd.f32 %v1083_v7, %v8828_v29 }
 0x27c   :  { %v4311_v23 = vmul.f32 -1.442695, %v1075_v42  ;;  %v1093_v7 = vrot.slane %v1069_v14, 6  ;;  %v1101_v42 = vrot.slane %v7591_v55, 6  ;;  %v8832_v55 = vld [vmem:[#allocation60_spill] sm:$0xff]  ;;  %v8837_v14 = vld [vmem:[#allocation65_spill] sm:$0xff] }
 0x27d   :  { %v4312_v52 = vmul.f32 -1.442695, %v1085_v51 }
 0x27e   :  { %7018 = vpow2.f32 %v4311_v23 }
 0x27f   :  { %7020 = vpow2.f32 %v4312_v52 }
 0x280   :  { %v7017_v8 = vpop.eup %7016 }
 0x281   :  { %v928_v22 = vmul.f32 %v7017_v8, %v927_v6 }
 0x283   :  { %v7774_v61 = vadd.f32 %v929_v0, %v928_v22 }
 0x288   :  { %v7019_v60 = vpop.eup %7018 }
 0x289   :  { %v7021_v27 = vpop.eup %7020  ;;  %v1079_v1 = vadd.f32 1.0, %v7019_v60 }
 0x28a   :  { %v1089_v53 = vadd.f32 1.0, %v7021_v27  ;;  %v8834_v27 = vld [vmem:[#allocation62_spill] sm:$0xff] }
 0x28b   :  { %7022 = vrcp.f32 %v1079_v1  ;;  %v8835_v1 = vld [vmem:[#allocation63_spill] sm:$0xff] }
 0x28c   :  { %7024 = vrcp.f32 %v1089_v53  ;;  %v8836_v53 = vld [vmem:[#allocation64_spill] sm:$0xff] }
 0x295   :  { %v7023_v29 = vpop.eup %7022 }
 0x296   :  { %v7025_v51 = vpop.eup %7024  ;;  %v1095_v23 = vmul.f32 %v7023_v29, %v1093_v7  ;;  %v8833_v29 = vld [vmem:[#allocation61_spill] sm:$0xff]  ;;  %v8838_v7 = vld [vmem:[#allocation66_spill] sm:$0xff] }
 0x297   :  { %v1103_v52 = vmul.f32 %v7025_v51, %v1101_v42  ;;  %v1098_v46 = vsub.f32 1.0, %v7025_v51  ;;  %v8839_v42 = vld [vmem:[#allocation67_spill] sm:$0xff]  ;;  %v8840_v51 = vld [vmem:[#allocation68_spill] sm:$0xff] }
 0x298   :  { %v1096_v6 = vadd.f32 %v1095_v23, %v8830_v26  ;;  %v8841_v23 = vld [vmem:[#allocation69_spill] sm:$0xff] }
 0x29a   :  { %7026 = vtanh.f32 %v1096_v6  ;;  %v8843_v6 = vld [vmem:[#allocation71_spill] sm:$0xff] }
 0x2a4   :  { %v7027_v8 = vpop.eup %7026 }
 0x2a5   :  { %v1099_v22 = vmul.f32 %v7027_v8, %v1098_v46  ;;  %v8844_v46 = vld [vmem:[#allocation72_spill] sm:$0xff]  ;;  %v8845_v8 = vld [vmem:[#allocation29_spill] sm:$0xff] }
 0x2a7   :  { %v7779_v0 = vadd.f32 %v1103_v52, %v1099_v22  ;;  %v8842_v52 = vld [vmem:[#allocation70_spill] sm:$0xff] }
 0x2a8   :  { %v8846_v22 = vld [vmem:[#allocation30_spill] sm:$0xff] }
 0x2a9   :  { %v7782_v60 = vrot.slane %v7779_v0, 2 }
 0x2ab   :  { %1173 = vmatmul.mubr.f32.vlgmr.msra.gmra.mrb[10].mxu0 %v7782_v60  ;;  %4930 = vmatmul.mubr.f32.vlgmr.msra.gmra.mrb[10].mxu1 %v7782_v60 }
 0x2ac   :  { %5880 = vmatpush1.bf16.msra.mxu0 %v8831_v15  ;;  %5911 = vmatpush3.bf16.msra.mxu1 %v8832_v55 }
 0x2ad   :  { %5882 = vmatprep.subr.bf16.mxu0 %v8833_v29  ;;  %5912 = vmatprep.subr.bf16.mxu1 %v8802_v34 }
 0x2ae   :  { %1313 = vmatprep.mubr.f32.mxu0 %v8804_v20  ;;  %4964 = vmatprep.mubr.msk.f32.mxu1 %vm7235_vm2, %v8804_v20 }
 0x2b0   :  { %5884 = vmatpush1.bf16.msra.mxu0 %v8834_v27  ;;  %5914 = vmatpush3.bf16.msra.mxu1 %v8835_v1 }
 0x2b1   :  { %5886 = vmatprep.subr.bf16.mxu0 %v8836_v53  ;;  %5915 = vmatprep.subr.bf16.mxu1 %v8802_v34 }
 0x2b4   :  { %5888 = vmatpush1.bf16.msra.mxu0 %v8837_v14  ;;  %5917 = vmatpush3.bf16.msra.mxu1 %v8838_v7 }
 0x2b5   :  { %5890 = vmatprep.subr.bf16.mxu0 %v8839_v42  ;;  %5918 = vmatprep.subr.bf16.mxu1 %v8802_v34 }
 0x2b8   :  { %5892 = vmatpush1.bf16.msra.mxu0 %v8840_v51  ;;  %5920 = vmatpush3.bf16.msra.mxu1 %v8841_v23 }
 0x2b9   :  { %5894 = vmatprep.subr.bf16.mxu0 %v8842_v52  ;;  %5921 = vmatprep.subr.bf16.mxu1 %v8802_v34 }
 0x2bc   :  { %5896 = vmatpush1.bf16.msra.mxu0 %v7632_v36  ;;  %5923 = vmatpush3.bf16.msra.mxu1 %v7634_v45 }
 0x2bd   :  { %5898 = vmatprep.subr.bf16.mxu0 %v8843_v6  ;;  %5924 = vmatprep.subr.bf16.mxu1 %v8802_v34 }
 0x2c0   :  { %5900 = vmatpush1.bf16.msra.mxu0 %v8844_v46  ;;  %5926 = vmatpush3.bf16.msra.mxu1 %v7644_v43 }
 0x2c1   :  { %5902 = vmatprep.subr.bf16.mxu0 %v7648_v62  ;;  %5927 = vmatprep.subr.bf16.mxu1 %v8802_v34 }
 0x2c4   :  { %5904 = vmatpush1.bf16.msra.mxu0 %v7652_v54  ;;  %5929 = vmatpush3.bf16.msra.mxu1 %v7654_v39 }
 0x2c5   :  { %5906 = vmatprep.subr.bf16.mxu0 %v7658_v31  ;;  %5930 = vmatprep.subr.bf16.mxu1 %v8802_v34 }
 0x2c8   :  { %5908 = vmatpush1.bf16.msra.mxu0 %v7662_v57  ;;  %5932 = vmatpush3.bf16.msra.mxu1 %v7664_v3 }
 0x2c9   :  { %5934 = vmatprep.subr.bf16.mxu0 %v7359_v9  ;;  %5965 = vmatprep.subr.bf16.mxu1 %v8802_v34 }
 0x2cb   :  { %1314 = vmatmul.mubr.f32.vlgmr.msra.gmra.mrb[10].mxu0 %v7774_v61  ;;  %4965 = vmatmul.mubr.f32.vlgmr.msra.gmra.mrb[12].mxu1 %v7774_v61 }
 0x2cc   :  { %5936 = vmatpush1.bf16.msra.mxu0 %v7361_v10  ;;  %5967 = vmatpush3.bf16.msra.mxu1 %v7392_v35 }
 0x2cd   :  { %5938 = vmatprep.subr.bf16.mxu0 %v7364_v13  ;;  %5968 = vmatprep.subr.bf16.mxu1 %v8802_v34 }
 0x2ce   :  { %1475 = vmatprep.mubr.f32.mxu0 %v8804_v20  ;;  %4999 = vmatprep.mubr.msk.f32.mxu1 %vm7235_vm2, %v8804_v20 }
 0x2d0   :  { %5940 = vmatpush1.bf16.msra.mxu0 %v7370_v18  ;;  %5970 = vmatpush3.bf16.msra.mxu1 %v7400_v40 }
 0x2d1   :  { %5942 = vmatprep.subr.bf16.mxu0 %v7374_v19  ;;  %5971 = vmatprep.subr.bf16.mxu1 %v8802_v34 }
 0x2d4   :  { %5944 = vmatpush1.bf16.msra.mxu0 %v7380_v25  ;;  %5973 = vmatpush3.bf16.msra.mxu1 %v7412_v49 }
 0x2d5   :  { %5946 = vmatprep.subr.bf16.mxu0 %v7387_v28  ;;  %5974 = vmatprep.subr.bf16.mxu1 %v8802_v34 }
 0x2d8   :  { %5948 = vmatpush1.bf16.msra.mxu0 %v7397_v38  ;;  %5976 = vmatpush3.bf16.msra.mxu1 %v7422_v58 }
 0x2d9   :  { %5950 = vmatprep.subr.bf16.mxu0 %v7403_v41  ;;  %5977 = vmatprep.subr.bf16.mxu1 %v8802_v34 }
 0x2dc   :  { %5952 = vmatpush1.bf16.msra.mxu0 %v7409_v47  ;;  %5979 = vmatpush3.bf16.msra.mxu1 %v7432_v4 }
 0x2dd   :  { %5954 = vmatprep.subr.bf16.mxu0 %v7415_v50  ;;  %5980 = vmatprep.subr.bf16.mxu1 %v8802_v34  ;;  %v8867_v50 = vld [vmem:[#allocation73_spill] sm:$0xff] }
 0x2e0   :  { %5956 = vmatpush1.bf16.msra.mxu0 %v7419_v56  ;;  %5982 = vmatpush3.bf16.msra.mxu1 %v7442_v12 }
 0x2e1   :  { %5958 = vmatprep.subr.bf16.mxu0 %v7425_v59  ;;  %5983 = vmatprep.subr.bf16.mxu1 %v8802_v34 }
 0x2e4   :  { %5960 = vmatpush1.bf16.msra.mxu0 %v7429_v2  ;;  %5985 = vmatpush3.bf16.msra.mxu1 %v7448_v16 }
 0x2e5   :  { %5962 = vmatprep.subr.bf16.mxu0 %v7435_v5  ;;  %5986 = vmatprep.subr.bf16.mxu1 %v8802_v34  ;;  %v8865_v5 = vld [vmem:[#allocation49_spill] sm:$0xff] }
 0x2e8   :  { %5964 = vmatpush1.bf16.msra.mxu0 %v7439_v11  ;;  %5988 = vmatpush3.bf16.msra.mxu1 %v7453_v21  ;;  %v8852_v21 = vld [vmem:[#allocation36_spill] sm:$0xff] }
 0x2e9   :  { %5990 = vmatprep.subr.bf16.mxu0 %v7462_v24  ;;  %6021 = vmatprep.subr.bf16.mxu1 %v8802_v34  ;;  %v8851_v24 = vld [vmem:[#allocation35_spill] sm:$0xff] }
 0x2eb   :  { %1476 = vmatmul.mubr.f32.vlgmr.msra.gmra.mrb[12].mxu0 %v7782_v60  ;;  %5000 = vmatmul.mubr.f32.vlgmr.msra.gmra.mrb[14].mxu1 %v7782_v60  ;;  %v8847_v60 = vld [vmem:[#allocation31_spill] sm:$0xff] }
 0x2ec   :  { %5992 = vmatpush1.bf16.msra.mxu0 %v7464_v30  ;;  %6023 = vmatpush3.bf16.msra.mxu1 %v7467_v32  ;;  %v8848_v32 = vld [vmem:[#allocation32_spill] sm:$0xff]  ;;  %v8850_v30 = vld [vmem:[#allocation34_spill] sm:$0xff] }
 0x2ed   :  { %5994 = vmatprep.subr.bf16.mxu0 %v7471_v37  ;;  %6024 = vmatprep.subr.bf16.mxu1 %v8802_v34  ;;  %v8849_v37 = vld [vmem:[#allocation33_spill] sm:$0xff] }
 0x2ee   :  { %1651 = vmatprep.mubr.f32.mxu0 %v8804_v20  ;;  %5034 = vmatprep.mubr.msk.f32.mxu1 %vm7235_vm2, %v8804_v20 }
 0x2f0   :  { %5996 = vmatpush1.bf16.msra.mxu0 %v7474_v44  ;;  %6026 = vmatpush3.bf16.msra.mxu1 %v8845_v8  ;;  %v8853_v8 = vld [vmem:[#allocation37_spill] sm:$0xff]  ;;  %v8855_v44 = vld [vmem:[#allocation39_spill] sm:$0xff] }
 0x2f1   :  { %5998 = vmatprep.subr.bf16.mxu0 %v8846_v22  ;;  %6027 = vmatprep.subr.bf16.mxu1 %v8802_v34  ;;  %v8854_v22 = vld [vmem:[#allocation38_spill] sm:$0xff] }
 0x2f4   :  { %6000 = vmatpush1.bf16.msra.mxu0 %v8847_v60  ;;  %6029 = vmatpush3.bf16.msra.mxu1 %v8848_v32  ;;  %v8856_v32 = vld [vmem:[#allocation40_spill] sm:$0xff]  ;;  %v8858_v60 = vld [vmem:[#allocation42_spill] sm:$0xff] }
 0x2f5   :  { %6002 = vmatprep.subr.bf16.mxu0 %v8849_v37  ;;  %6030 = vmatprep.subr.bf16.mxu1 %v8802_v34  ;;  %v8857_v37 = vld [vmem:[#allocation41_spill] sm:$0xff] }
 0x2f8   :  { %6004 = vmatpush1.bf16.msra.mxu0 %v8850_v30  ;;  %6032 = vmatpush3.bf16.msra.mxu1 %v8851_v24  ;;  %v8859_v24 = vld [vmem:[#allocation43_spill] sm:$0xff]  ;;  %v8861_v30 = vld [vmem:[#allocation45_spill] sm:$0xff] }
 0x2f9   :  { %6006 = vmatprep.subr.bf16.mxu0 %v8852_v21  ;;  %6033 = vmatprep.subr.bf16.mxu1 %v8802_v34  ;;  %v8860_v21 = vld [vmem:[#allocation44_spill] sm:$0xff] }
 0x2fc   :  { %6008 = vmatpush1.bf16.msra.mxu0 %v8853_v8  ;;  %6035 = vmatpush3.bf16.msra.mxu1 %v8854_v22  ;;  %v8862_v22 = vld [vmem:[#allocation46_spill] sm:$0xff]  ;;  %v8864_v8 = vld [vmem:[#allocation48_spill] sm:$0xff] }
 0x2fd   :  { %6010 = vmatprep.subr.bf16.mxu0 %v8855_v44  ;;  %6036 = vmatprep.subr.bf16.mxu1 %v8802_v34  ;;  %v8863_v44 = vld [vmem:[#allocation47_spill] sm:$0xff] }
 0x300   :  { %6012 = vmatpush1.bf16.msra.mxu0 %v8856_v32  ;;  %6038 = vmatpush3.bf16.msra.mxu1 %v8857_v37 }
 0x301   :  { %6014 = vmatprep.subr.bf16.mxu0 %v8858_v60  ;;  %6039 = vmatprep.subr.bf16.mxu1 %v8802_v34 }
 0x304   :  { %6016 = vmatpush1.bf16.msra.mxu0 %v8859_v24  ;;  %6041 = vmatpush3.bf16.msra.mxu1 %v8860_v21 }
 0x305   :  { %6018 = vmatprep.subr.bf16.mxu0 %v8861_v30  ;;  %6042 = vmatprep.subr.bf16.mxu1 %v8802_v34  ;;  %v8866_v30 = vld [vmem:[#allocation50_spill] sm:$0xff] }
 0x308   :  { %6020 = vmatpush1.bf16.msra.mxu0 %v8862_v22  ;;  %6044 = vmatpush3.bf16.msra.mxu1 %v8863_v44 }
 0x309   :  { %6046 = vmatprep.subr.bf16.mxu0 %v8864_v8  ;;  %6077 = vmatprep.subr.bf16.mxu1 %v8802_v34 }
 0x37e   :  { %v1245_v37 = vpop.f32.mrb[10].mxu1 }
 0x37f   :  { %v4931_v60 = vpop.f32.mrb[11].mxu1  ;;  %v1246_v47 = vadd.f32 %v1245_v37, %v7766_v63 }
 0x39e   :  { %v1315_v32 = vpop.f32.mrb[10].mxu0  ;;  %v1386_v11 = vpop.f32.mrb[12].mxu1 }
 0x39f   :  { %v6946_v24 = vadd.f32 %v8865_v5, %v1315_v32  ;;  %v1317_v16 = vpop.f32.mrb[11].mxu0  ;;  %v4966_v21 = vpop.f32.mrb[13].mxu1  ;;  %v1387_v4 = vadd.f32 %v1386_v11, %v8867_v50  ;;  %v8869_v11 = vld [vmem:[#allocation56_spill] sm:$0xff] }
 0x3a0   :  { %v6948_v59 = vadd.f32 %v8866_v30, %v1317_v16 }
 0x3a1   :  { %v4313_v2 = vmul.f32 -1.442695, %v6946_v24 }
 0x3a2   :  { %v4314_v12 = vmul.f32 -1.442695, %v6948_v59 }
 0x3a3   :  { %7028 = vpow2.f32 %v4313_v2 }
 0x3a4   :  { %7030 = vpow2.f32 %v4314_v12 }
 0x3ad   :  { %v7029_v22 = vpop.eup %7028 }
 0x3ae   :  { %v1394_v44 = vadd.f32 1.0, %v7029_v22  ;;  %v7031_v8 = vpop.eup %7030 }
 0x3af   :  { %v1401_v56 = vadd.f32 1.0, %v7031_v8  ;;  %v8868_v8 = vld [vmem:[#allocation55_spill] sm:$0xff] }
 0x3b0   :  { %7032 = vrcp.f32 %v1394_v44 }
 0x3b1   :  { %7034 = vrcp.f32 %v1401_v56 }
 0x3ba   :  { %v7033_v60 = vpop.eup %7032 }
 0x3bb   :  { %v1404_v41 = vmul.f32 %v7033_v60, %v1387_v4  ;;  %v7035_v5 = vpop.eup %7034 }
 0x3bc   :  { %v1409_v60 = vmul.f32 %v7035_v5, %v7774_v61 }
 0x3bd   :  { %v1405_v32 = vadd.f32 %v1404_v41, %v1246_v47  ;;  %v1407_v41 = vsub.f32 1.0, %v7035_v5 }
 0x3be   :  { %v1477_v21 = vpop.f32.mrb[12].mxu0  ;;  %v1548_v24 = vpop.f32.mrb[14].mxu1 }
 0x3bf   :  { %7036 = vtanh.f32 %v1405_v32  ;;  %v1478_v2 = vadd.f32 %v1477_v21, %v7567_v48  ;;  %v1479_v59 = vpop.f32.mrb[13].mxu0  ;;  %v5001_v12 = vpop.f32.mrb[15].mxu1 }
 0x3c0   :  { %v1480_v16 = vadd.f32 %v1479_v59, %v8826_v17 }
 0x3c1   :  { %v1553_v44 = vrot.slane %v1478_v2, 4 }
 0x3c2   :  { %v1563_v22 = vrot.slane %v1480_v16, 4  ;;  %v1549_v16 = vadd.f32 %v1548_v24, %v8829_v33  ;;  %v8871_v24 = vld [vmem:[#allocation12_spill] sm:$0xff] }
 0x3c3   :  { %v1555_v30 = vadd.f32 %v1553_v44, %v8868_v8 }
 0x3c4   :  { %v1565_v50 = vadd.f32 %v1563_v22, %v8869_v11  ;;  %v1573_v44 = vrot.slane %v1549_v16, 4  ;;  %v8876_v16 = vld [vmem:[#allocation16_spill] sm:$0xff] }
 0x3c5   :  { %v4315_v37 = vmul.f32 -1.442695, %v1555_v30 }
 0x3c6   :  { %v4316_v4 = vmul.f32 -1.442695, %v1565_v50  ;;  %v1580_v50 = vrot.slane %v7779_v0, 6  ;;  %v8870_v0 = vld [vmem:[#allocation11_spill] sm:$0xff] }
 0x3c7   :  { %7038 = vpow2.f32 %v4315_v37 }
 0x3c8   :  { %7040 = vpow2.f32 %v4316_v4 }
 0x3c9   :  { %v7037_v47 = vpop.eup %7036 }
 0x3ca   :  { %v1408_v56 = vmul.f32 %v7037_v47, %v1407_v41 }
 0x3cc   :  { %v7904_v32 = vadd.f32 %v1409_v60, %v1408_v56 }
 0x3d1   :  { %v7039_v21 = vpop.eup %7038 }
 0x3d2   :  { %v7041_v59 = vpop.eup %7040  ;;  %v1559_v2 = vadd.f32 1.0, %v7039_v21  ;;  %v8872_v21 = vld [vmem:[#allocation18_spill] sm:$0xff] }
 0x3d3   :  { %v1569_v12 = vadd.f32 1.0, %v7041_v59  ;;  %v8873_v59 = vld [vmem:[#allocation13_spill] sm:$0xff] }
 0x3d4   :  { %7042 = vrcp.f32 %v1559_v2  ;;  %v8874_v2 = vld [vmem:[#allocation14_spill] sm:$0xff] }
 0x3d5   :  { %7044 = vrcp.f32 %v1569_v12  ;;  %v8875_v12 = vld [vmem:[#allocation21_spill] sm:$0xff] }
 0x3de   :  { %v7043_v30 = vpop.eup %7042 }
 0x3df   :  { %v7045_v22 = vpop.eup %7044  ;;  %v1575_v37 = vmul.f32 %v7043_v30, %v1573_v44  ;;  %v8877_v44 = vld [vmem:[#allocation17_spill] sm:$0xff]  ;;  %v8878_v30 = vld [vmem:[#allocation22_spill] sm:$0xff] }
 0x3e0   :  { %v1582_v4 = vmul.f32 %v7045_v22, %v1580_v50  ;;  %v1578_v5 = vsub.f32 1.0, %v7045_v22  ;;  %v8879_v50 = vld [vmem:[#allocation19_spill] sm:$0xff]  ;;  %v8880_v22 = vld [vmem:[#allocation20_spill] sm:$0xff] }
 0x3e1   :  { %v1576_v41 = vadd.f32 %v1575_v37, %v8830_v26  ;;  %v8881_v37 = vld [vmem:[#allocation23_spill] sm:$0xff] }
 0x3e3   :  { %7046 = vtanh.f32 %v1576_v41  ;;  %v8883_v41 = vld [vmem:[#allocation25_spill] sm:$0xff] }
 0x3ed   :  { %v7047_v61 = vpop.eup %7046 }
 0x3ee   :  { %v1579_v47 = vmul.f32 %v7047_v61, %v1578_v5  ;;  %v8884_v5 = vld [vmem:[#allocation26_spill] sm:$0xff]  ;;  %v8885_v61 = vld [vmem:[#allocation27_spill] sm:$0xff] }
 0x3f0   :  { %v7909_v56 = vadd.f32 %v1582_v4, %v1579_v47  ;;  %v8882_v4 = vld [vmem:[#allocation24_spill] sm:$0xff] }
 0x3f1   :  { %v8886_v47 = vld [vmem:[#allocation28_spill] sm:$0xff] }
 0x3f2   :  { %v7912_v60 = vrot.slane %v7909_v56, 4 }
 0x3f4   :  { %1652 = vmatmul.mubr.f32.vlgmr.msra.gmra.mrb[14].mxu0 %v7912_v60  ;;  %5035 = vmatmul.mubr.f32.vlgmr.msra.gmra.mrb[16].mxu1 %v7912_v60 }
 0x3f5   :  { %6048 = vmatpush1.bf16.msra.mxu0 %v8831_v15  ;;  %6079 = vmatpush3.bf16.msra.mxu1 %v8832_v55 }
 0x3f6   :  { %6050 = vmatprep.subr.bf16.mxu0 %v8833_v29  ;;  %6080 = vmatprep.subr.bf16.mxu1 %v8802_v34 }
 0x3f7   :  { %1792 = vmatprep.mubr.f32.mxu0 %v8804_v20  ;;  %5069 = vmatprep.mubr.msk.f32.mxu1 %vm7235_vm2, %v8804_v20 }
 0x3f9   :  { %6052 = vmatpush1.bf16.msra.mxu0 %v8834_v27  ;;  %6082 = vmatpush3.bf16.msra.mxu1 %v8835_v1 }
 0x3fa   :  { %6054 = vmatprep.subr.bf16.mxu0 %v8836_v53  ;;  %6083 = vmatprep.subr.bf16.mxu1 %v8802_v34 }
 0x3fd   :  { %6056 = vmatpush1.bf16.msra.mxu0 %v8837_v14  ;;  %6085 = vmatpush3.bf16.msra.mxu1 %v8838_v7 }
 0x3fe   :  { %6058 = vmatprep.subr.bf16.mxu0 %v8839_v42  ;;  %6086 = vmatprep.subr.bf16.mxu1 %v8802_v34 }
 0x401   :  { %6060 = vmatpush1.bf16.msra.mxu0 %v8840_v51  ;;  %6088 = vmatpush3.bf16.msra.mxu1 %v8841_v23 }
 0x402   :  { %6062 = vmatprep.subr.bf16.mxu0 %v8842_v52  ;;  %6089 = vmatprep.subr.bf16.mxu1 %v8802_v34 }
 0x405   :  { %6064 = vmatpush1.bf16.msra.mxu0 %v7632_v36  ;;  %6091 = vmatpush3.bf16.msra.mxu1 %v7634_v45 }
 0x406   :  { %6066 = vmatprep.subr.bf16.mxu0 %v8843_v6  ;;  %6092 = vmatprep.subr.bf16.mxu1 %v8802_v34 }
 0x409   :  { %6068 = vmatpush1.bf16.msra.mxu0 %v8844_v46  ;;  %6094 = vmatpush3.bf16.msra.mxu1 %v7644_v43 }
 0x40a   :  { %6070 = vmatprep.subr.bf16.mxu0 %v7648_v62  ;;  %6095 = vmatprep.subr.bf16.mxu1 %v8802_v34 }
 0x40d   :  { %6072 = vmatpush1.bf16.msra.mxu0 %v7652_v54  ;;  %6097 = vmatpush3.bf16.msra.mxu1 %v7654_v39 }
 0x40e   :  { %6074 = vmatprep.subr.bf16.mxu0 %v7658_v31  ;;  %6098 = vmatprep.subr.bf16.mxu1 %v8802_v34 }
 0x411   :  { %6076 = vmatpush1.bf16.msra.mxu0 %v7662_v57  ;;  %6100 = vmatpush3.bf16.msra.mxu1 %v7664_v3 }
 0x412   :  { %6102 = vmatprep.subr.bf16.mxu0 %v7359_v9  ;;  %6133 = vmatprep.subr.bf16.mxu1 %v8802_v34 }
 0x414   :  { %1793 = vmatmul.mubr.f32.vlgmr.msra.gmra.mrb[14].mxu0 %v7904_v32  ;;  %5070 = vmatmul.mubr.f32.vlgmr.msra.gmra.mrb[18].mxu1 %v7904_v32 }
 0x415   :  { %6104 = vmatpush1.bf16.msra.mxu0 %v7361_v10  ;;  %6135 = vmatpush3.bf16.msra.mxu1 %v7392_v35 }
 0x416   :  { %6106 = vmatprep.subr.bf16.mxu0 %v7364_v13  ;;  %6136 = vmatprep.subr.bf16.mxu1 %v8802_v34 }
 0x417   :  { %1954 = vmatprep.mubr.f32.mxu0 %v8804_v20  ;;  %5104 = vmatprep.mubr.msk.f32.mxu1 %vm7235_vm2, %v8804_v20 }
 0x419   :  { %6108 = vmatpush1.bf16.msra.mxu0 %v7370_v18  ;;  %6138 = vmatpush3.bf16.msra.mxu1 %v7400_v40 }
 0x41a   :  { %6110 = vmatprep.subr.bf16.mxu0 %v7374_v19  ;;  %6139 = vmatprep.subr.bf16.mxu1 %v8802_v34 }
 0x41d   :  { %6112 = vmatpush1.bf16.msra.mxu0 %v7380_v25  ;;  %6141 = vmatpush3.bf16.msra.mxu1 %v7412_v49 }
 0x41e   :  { %6114 = vmatprep.subr.bf16.mxu0 %v7387_v28  ;;  %6142 = vmatprep.subr.bf16.mxu1 %v8802_v34 }
 0x421   :  { %6116 = vmatpush1.bf16.msra.mxu0 %v7397_v38  ;;  %6144 = vmatpush3.bf16.msra.mxu1 %v7422_v58 }
 0x422   :  { %6118 = vmatprep.subr.bf16.mxu0 %v8870_v0  ;;  %6145 = vmatprep.subr.bf16.mxu1 %v8802_v34 }
 0x425   :  { %6120 = vmatpush1.bf16.msra.mxu0 %v8871_v24  ;;  %6147 = vmatpush3.bf16.msra.mxu1 %v8872_v21  ;;  %v8909_v24 = vld [vmem:[#allocation73_spill] sm:$0xff] }
 0x426   :  { %6122 = vmatprep.subr.bf16.mxu0 %v8873_v59  ;;  %6148 = vmatprep.subr.bf16.mxu1 %v8802_v34 }
 0x429   :  { %6124 = vmatpush1.bf16.msra.mxu0 %v8874_v2  ;;  %6150 = vmatpush3.bf16.msra.mxu1 %v8875_v12 }
 0x42a   :  { %6126 = vmatprep.subr.bf16.mxu0 %v8876_v16  ;;  %6151 = vmatprep.subr.bf16.mxu1 %v8802_v34 }
 0x42d   :  { %6128 = vmatpush1.bf16.msra.mxu0 %v8877_v44  ;;  %6153 = vmatpush3.bf16.msra.mxu1 %v8878_v30  ;;  %v8907_v44 = vld [vmem:[#allocation49_spill] sm:$0xff] }
 0x42e   :  { %6130 = vmatprep.subr.bf16.mxu0 %v8879_v50  ;;  %6154 = vmatprep.subr.bf16.mxu1 %v8802_v34  ;;  %v8894_v50 = vld [vmem:[#allocation36_spill] sm:$0xff] }
 0x431   :  { %6132 = vmatpush1.bf16.msra.mxu0 %v8880_v22  ;;  %6156 = vmatpush3.bf16.msra.mxu1 %v8881_v37  ;;  %v8888_v37 = vld [vmem:[#allocation30_spill] sm:$0xff]  ;;  %v8893_v22 = vld [vmem:[#allocation35_spill] sm:$0xff] }
 0x432   :  { %6158 = vmatprep.subr.bf16.mxu0 %v8882_v4  ;;  %6189 = vmatprep.subr.bf16.mxu1 %v8802_v34  ;;  %v8887_v4 = vld [vmem:[#allocation29_spill] sm:$0xff] }
 0x434   :  { %1955 = vmatmul.mubr.f32.vlgmr.msra.gmra.mrb[16].mxu0 %v7912_v60  ;;  %5105 = vmatmul.mubr.f32.vlgmr.msra.gmra.mrb[20].mxu1 %v7912_v60  ;;  %v8889_v60 = vld [vmem:[#allocation31_spill] sm:$0xff] }
 0x435   :  { %6160 = vmatpush1.bf16.msra.mxu0 %v8883_v41  ;;  %6191 = vmatpush3.bf16.msra.mxu1 %v8884_v5  ;;  %v8890_v5 = vld [vmem:[#allocation32_spill] sm:$0xff]  ;;  %v8892_v41 = vld [vmem:[#allocation34_spill] sm:$0xff] }
 0x436   :  { %6162 = vmatprep.subr.bf16.mxu0 %v8885_v61  ;;  %6192 = vmatprep.subr.bf16.mxu1 %v8802_v34  ;;  %v8891_v61 = vld [vmem:[#allocation33_spill] sm:$0xff] }
 0x437   :  { %2130 = vmatprep.mubr.f32.mxu0 %v8804_v20  ;;  %5139 = vmatprep.mubr.msk.f32.mxu1 %vm7235_vm2, %v8804_v20 }
 0x439   :  { %6164 = vmatpush1.bf16.msra.mxu0 %v8886_v47  ;;  %6194 = vmatpush3.bf16.msra.mxu1 %v8887_v4  ;;  %v8895_v4 = vld [vmem:[#allocation37_spill] sm:$0xff]  ;;  %v8897_v47 = vld [vmem:[#allocation39_spill] sm:$0xff] }
 0x43a   :  { %6166 = vmatprep.subr.bf16.mxu0 %v8888_v37  ;;  %6195 = vmatprep.subr.bf16.mxu1 %v8802_v34  ;;  %v8896_v37 = vld [vmem:[#allocation38_spill] sm:$0xff] }
 0x43d   :  { %6168 = vmatpush1.bf16.msra.mxu0 %v8889_v60  ;;  %6197 = vmatpush3.bf16.msra.mxu1 %v8890_v5  ;;  %v8898_v5 = vld [vmem:[#allocation40_spill] sm:$0xff]  ;;  %v8900_v60 = vld [vmem:[#allocation42_spill] sm:$0xff] }
 0x43e   :  { %6170 = vmatprep.subr.bf16.mxu0 %v8891_v61  ;;  %6198 = vmatprep.subr.bf16.mxu1 %v8802_v34  ;;  %v8899_v61 = vld [vmem:[#allocation41_spill] sm:$0xff] }
 0x441   :  { %6172 = vmatpush1.bf16.msra.mxu0 %v8892_v41  ;;  %6200 = vmatpush3.bf16.msra.mxu1 %v8893_v22  ;;  %v8901_v22 = vld [vmem:[#allocation43_spill] sm:$0xff]  ;;  %v8903_v41 = vld [vmem:[#allocation45_spill] sm:$0xff] }
 0x442   :  { %6174 = vmatprep.subr.bf16.mxu0 %v8894_v50  ;;  %6201 = vmatprep.subr.bf16.mxu1 %v8802_v34  ;;  %v8902_v50 = vld [vmem:[#allocation44_spill] sm:$0xff] }
 0x445   :  { %6176 = vmatpush1.bf16.msra.mxu0 %v8895_v4  ;;  %6203 = vmatpush3.bf16.msra.mxu1 %v8896_v37  ;;  %v8904_v37 = vld [vmem:[#allocation46_spill] sm:$0xff]  ;;  %v8906_v4 = vld [vmem:[#allocation48_spill] sm:$0xff] }
 0x446   :  { %6178 = vmatprep.subr.bf16.mxu0 %v8897_v47  ;;  %6204 = vmatprep.subr.bf16.mxu1 %v8802_v34  ;;  %v8905_v47 = vld [vmem:[#allocation47_spill] sm:$0xff] }
 0x449   :  { %6180 = vmatpush1.bf16.msra.mxu0 %v8898_v5  ;;  %6206 = vmatpush3.bf16.msra.mxu1 %v8899_v61 }
 0x44a   :  { %6182 = vmatprep.subr.bf16.mxu0 %v8900_v60  ;;  %6207 = vmatprep.subr.bf16.mxu1 %v8802_v34 }
 0x44d   :  { %6184 = vmatpush1.bf16.msra.mxu0 %v8901_v22  ;;  %6209 = vmatpush3.bf16.msra.mxu1 %v8902_v50 }
 0x44e   :  { %6186 = vmatprep.subr.bf16.mxu0 %v8903_v41  ;;  %6210 = vmatprep.subr.bf16.mxu1 %v8802_v34  ;;  %v8908_v41 = vld [vmem:[#allocation50_spill] sm:$0xff] }
 0x451   :  { %6188 = vmatpush1.bf16.msra.mxu0 %v8904_v37  ;;  %6212 = vmatpush3.bf16.msra.mxu1 %v8905_v47 }
 0x452   :  { %6214 = vmatprep.subr.bf16.mxu0 %v8906_v4  ;;  %6245 = vmatprep.subr.bf16.mxu1 %v8802_v34 }
 0x4c7   :  { %v1724_v61 = vpop.f32.mrb[16].mxu1 }
 0x4c8   :  { %v5036_v60 = vpop.f32.mrb[17].mxu1  ;;  %v1725_v58 = vadd.f32 %v1724_v61, %v7766_v63 }
 0x4e7   :  { %v1794_v5 = vpop.f32.mrb[14].mxu0  ;;  %v1865_v30 = vpop.f32.mrb[18].mxu1 }
 0x4e8   :  { %v6950_v22 = vadd.f32 %v8907_v44, %v1794_v5  ;;  %v1796_v16 = vpop.f32.mrb[15].mxu0  ;;  %v5071_v50 = vpop.f32.mrb[19].mxu1  ;;  %v1866_v0 = vadd.f32 %v1865_v30, %v8909_v24 }
 0x4e9   :  { %v6952_v2 = vadd.f32 %v8908_v41, %v1796_v16 }
 0x4ea   :  { %v4317_v12 = vmul.f32 -1.442695, %v6950_v22 }
 0x4eb   :  { %v4318_v59 = vmul.f32 -1.442695, %v6952_v2 }
 0x4ec   :  { %7048 = vpow2.f32 %v4317_v12 }
 0x4ed   :  { %7050 = vpow2.f32 %v4318_v59 }
 0x4f6   :  { %v7049_v37 = vpop.eup %7048 }
 0x4f7   :  { %v1873_v47 = vadd.f32 1.0, %v7049_v37  ;;  %v7051_v4 = vpop.eup %7050 }
 0x4f8   :  { %v1880_v21 = vadd.f32 1.0, %v7051_v4 }
 0x4f9   :  { %7052 = vrcp.f32 %v1873_v47 }
 0x4fa   :  { %7054 = vrcp.f32 %v1880_v21 }
 0x503   :  { %v7053_v60 = vpop.eup %7052 }
 0x504   :  { %v1883_v38 = vmul.f32 %v7053_v60, %v1866_v0  ;;  %v7055_v24 = vpop.eup %7054 }
 0x505   :  { %v1888_v60 = vmul.f32 %v7055_v24, %v7904_v32 }
 0x506   :  { %v1884_v5 = vadd.f32 %v1883_v38, %v1725_v58  ;;  %v1886_v38 = vsub.f32 1.0, %v7055_v24 }
 0x507   :  { %v1956_v50 = vpop.f32.mrb[16].mxu0  ;;  %v2027_v22 = vpop.f32.mrb[20].mxu1 }
 0x508   :  { %7056 = vtanh.f32 %v1884_v5  ;;  %v1957_v12 = vadd.f32 %v1956_v50, %v7567_v48  ;;  %v1958_v2 = vpop.f32.mrb[17].mxu0  ;;  %v5106_v59 = vpop.f32.mrb[21].mxu1 }
 0x509   :  { %v1959_v16 = vadd.f32 %v1958_v2, %v8826_v17 }
 0x50a   :  { %v2032_v37 = vrot.slane %v1957_v12, 2 }
 0x50b   :  { %v2042_v47 = vrot.slane %v1959_v16, 2 }
 0x50c   :  { %v2034_v4 = vadd.f32 %v2032_v37, %v8868_v8  ;;  %v2028_v8 = vadd.f32 %v2027_v22, %v8829_v33  ;;  %v2059_v37 = vrot.slane %v7909_v56, 6  ;;  %v8911_v56 = vld [vmem:[#allocation15_spill] sm:$0xff] }
 0x50d   :  { %v2044_v30 = vadd.f32 %v2042_v47, %v8869_v11  ;;  %v8912_v22 = vld [vmem:[#allocation11_spill] sm:$0xff] }
 0x50e   :  { %v4319_v61 = vmul.f32 -1.442695, %v2034_v4  ;;  %v2052_v11 = vrot.slane %v2028_v8, 2  ;;  %v8919_v8 = vld [vmem:[#allocation17_spill] sm:$0xff] }
 0x50f   :  { %v4320_v0 = vmul.f32 -1.442695, %v2044_v30 }
 0x510   :  { %7058 = vpow2.f32 %v4319_v61 }
 0x511   :  { %7060 = vpow2.f32 %v4320_v0 }
 0x512   :  { %v7057_v58 = vpop.eup %7056 }
 0x513   :  { %v1887_v21 = vmul.f32 %v7057_v58, %v1886_v38 }
 0x515   :  { %v8034_v5 = vadd.f32 %v1888_v60, %v1887_v21  ;;  %v8913_v21 = vld [vmem:[#allocation12_spill] sm:$0xff]  ;;  %v8914_v60 = vld [vmem:[#allocation18_spill] sm:$0xff] }
 0x51a   :  { %v7059_v50 = vpop.eup %7058 }
 0x51b   :  { %v7061_v2 = vpop.eup %7060  ;;  %v2038_v12 = vadd.f32 1.0, %v7059_v50  ;;  %v8915_v50 = vld [vmem:[#allocation13_spill] sm:$0xff] }
 0x51c   :  { %v2048_v59 = vadd.f32 1.0, %v7061_v2  ;;  %v8916_v2 = vld [vmem:[#allocation14_spill] sm:$0xff] }
 0x51d   :  { %7062 = vrcp.f32 %v2038_v12  ;;  %v8917_v12 = vld [vmem:[#allocation21_spill] sm:$0xff] }
 0x51e   :  { %7064 = vrcp.f32 %v2048_v59  ;;  %v8918_v59 = vld [vmem:[#allocation16_spill] sm:$0xff] }
 0x527   :  { %v7063_v16 = vpop.eup %7062 }
 0x528   :  { %v7065_v47 = vpop.eup %7064  ;;  %v2054_v4 = vmul.f32 %v7063_v16, %v2052_v11  ;;  %v8920_v11 = vld [vmem:[#allocation22_spill] sm:$0xff]  ;;  %v8921_v16 = vld [vmem:[#allocation19_spill] sm:$0xff] }
 0x529   :  { %v2061_v30 = vmul.f32 %v7065_v47, %v2059_v37  ;;  %v2057_v32 = vsub.f32 1.0, %v7065_v47  ;;  %v8922_v37 = vld [vmem:[#allocation20_spill] sm:$0xff]  ;;  %v8923_v47 = vld [vmem:[#allocation23_spill] sm:$0xff] }
 0x52a   :  { %v2055_v61 = vadd.f32 %v2054_v4, %v8830_v26  ;;  %v8910_v26 = vld [vmem:[#allocation10_spill] sm:$0xff]  ;;  %v8924_v4 = vld [vmem:[#allocation24_spill] sm:$0xff] }
 0x52c   :  { %7066 = vtanh.f32 %v2055_v61  ;;  %v8926_v61 = vld [vmem:[#allocation26_spill] sm:$0xff] }
 0x536   :  { %v7067_v24 = vpop.eup %7066 }
 0x537   :  { %v2058_v0 = vmul.f32 %v7067_v24, %v2057_v32  ;;  %v8927_v32 = vld [vmem:[#allocation27_spill] sm:$0xff]  ;;  %v8928_v24 = vld [vmem:[#allocation28_spill] sm:$0xff] }
 0x539   :  { %v2062_v38 = vadd.f32 %v2061_v30, %v2058_v0  ;;  %v8925_v30 = vld [vmem:[#allocation25_spill] sm:$0xff] }
 0x53a   :  { %v8929_v0 = vld [vmem:[#allocation29_spill] sm:$0xff] }
 0x53b   :  { %v8039_v58 = vrot.slane %v2062_v38, 6  ;;  %v8930_v38 = vld [vmem:[#allocation30_spill] sm:$0xff] }
 0x53d   :  { %2131 = vmatmul.mubr.f32.vlgmr.msra.gmra.mrb[18].mxu0 %v8039_v58  ;;  %5140 = vmatmul.mubr.f32.vlgmr.msra.gmra.mrb[22].mxu1 %v8039_v58 }
 0x53e   :  { %6216 = vmatpush1.bf16.msra.mxu0 %v8831_v15  ;;  %6247 = vmatpush3.bf16.msra.mxu1 %v8832_v55 }
 0x53f   :  { %6218 = vmatprep.subr.bf16.mxu0 %v8833_v29  ;;  %6248 = vmatprep.subr.bf16.mxu1 %v8802_v34 }
 0x540   :  { %2271 = vmatprep.mubr.f32.mxu0 %v8804_v20  ;;  %5174 = vmatprep.mubr.msk.f32.mxu1 %vm7235_vm2, %v8804_v20 }
 0x542   :  { %6220 = vmatpush1.bf16.msra.mxu0 %v8834_v27  ;;  %6250 = vmatpush3.bf16.msra.mxu1 %v8835_v1 }
 0x543   :  { %6222 = vmatprep.subr.bf16.mxu0 %v8836_v53  ;;  %6251 = vmatprep.subr.bf16.mxu1 %v8802_v34 }
 0x546   :  { %6224 = vmatpush1.bf16.msra.mxu0 %v8837_v14  ;;  %6253 = vmatpush3.bf16.msra.mxu1 %v8838_v7 }
 0x547   :  { %6226 = vmatprep.subr.bf16.mxu0 %v8839_v42  ;;  %6254 = vmatprep.subr.bf16.mxu1 %v8802_v34 }
 0x54a   :  { %6228 = vmatpush1.bf16.msra.mxu0 %v8840_v51  ;;  %6256 = vmatpush3.bf16.msra.mxu1 %v8841_v23 }
 0x54b   :  { %6230 = vmatprep.subr.bf16.mxu0 %v8842_v52  ;;  %6257 = vmatprep.subr.bf16.mxu1 %v8802_v34 }
 0x54e   :  { %6232 = vmatpush1.bf16.msra.mxu0 %v7632_v36  ;;  %6259 = vmatpush3.bf16.msra.mxu1 %v7634_v45 }
 0x54f   :  { %6234 = vmatprep.subr.bf16.mxu0 %v8843_v6  ;;  %6260 = vmatprep.subr.bf16.mxu1 %v8802_v34 }
 0x552   :  { %6236 = vmatpush1.bf16.msra.mxu0 %v8844_v46  ;;  %6262 = vmatpush3.bf16.msra.mxu1 %v7644_v43 }
 0x553   :  { %6238 = vmatprep.subr.bf16.mxu0 %v7648_v62  ;;  %6263 = vmatprep.subr.bf16.mxu1 %v8802_v34 }
 0x556   :  { %6240 = vmatpush1.bf16.msra.mxu0 %v7652_v54  ;;  %6265 = vmatpush3.bf16.msra.mxu1 %v7654_v39 }
 0x557   :  { %6242 = vmatprep.subr.bf16.mxu0 %v7658_v31  ;;  %6266 = vmatprep.subr.bf16.mxu1 %v8802_v34 }
 0x55a   :  { %6244 = vmatpush1.bf16.msra.mxu0 %v7662_v57  ;;  %6268 = vmatpush3.bf16.msra.mxu1 %v7664_v3 }
 0x55b   :  { %6270 = vmatprep.subr.bf16.mxu0 %v7359_v9  ;;  %6301 = vmatprep.subr.bf16.mxu1 %v8802_v34 }
 0x55d   :  { %2272 = vmatmul.mubr.f32.vlgmr.msra.gmra.mrb[18].mxu0 %v8034_v5  ;;  %5175 = vmatmul.mubr.f32.vlgmr.msra.gmra.mrb[24].mxu1 %v8034_v5 }
 0x55e   :  { %6272 = vmatpush1.bf16.msra.mxu0 %v7361_v10  ;;  %6303 = vmatpush3.bf16.msra.mxu1 %v7392_v35 }
 0x55f   :  { %6274 = vmatprep.subr.bf16.mxu0 %v7364_v13  ;;  %6304 = vmatprep.subr.bf16.mxu1 %v8802_v34 }
 0x560   :  { %2433 = vmatprep.mubr.f32.mxu0 %v8804_v20  ;;  %5209 = vmatprep.mubr.msk.f32.mxu1 %vm7235_vm2, %v8804_v20 }
 0x562   :  { %6276 = vmatpush1.bf16.msra.mxu0 %v7370_v18  ;;  %6306 = vmatpush3.bf16.msra.mxu1 %v7400_v40 }
 0x563   :  { %6278 = vmatprep.subr.bf16.mxu0 %v7374_v19  ;;  %6307 = vmatprep.subr.bf16.mxu1 %v8802_v34 }
 0x566   :  { %6280 = vmatpush1.bf16.msra.mxu0 %v7380_v25  ;;  %6309 = vmatpush3.bf16.msra.mxu1 %v7412_v49 }
 0x567   :  { %6282 = vmatprep.subr.bf16.mxu0 %v7387_v28  ;;  %6310 = vmatprep.subr.bf16.mxu1 %v8802_v34 }
 0x56a   :  { %6284 = vmatpush1.bf16.msra.mxu0 %v8910_v26  ;;  %6312 = vmatpush3.bf16.msra.mxu1 %v8911_v56 }
 0x56b   :  { %6286 = vmatprep.subr.bf16.mxu0 %v8912_v22  ;;  %6313 = vmatprep.subr.bf16.mxu1 %v8802_v34 }
 0x56e   :  { %6288 = vmatpush1.bf16.msra.mxu0 %v8913_v21  ;;  %6315 = vmatpush3.bf16.msra.mxu1 %v8914_v60 }
 0x56f   :  { %6290 = vmatprep.subr.bf16.mxu0 %v8915_v50  ;;  %6316 = vmatprep.subr.bf16.mxu1 %v8802_v34 }
 0x572   :  { %6292 = vmatpush1.bf16.msra.mxu0 %v8916_v2  ;;  %6318 = vmatpush3.bf16.msra.mxu1 %v8917_v12  ;;  %v8949_v2 = vld [vmem:[#allocation73_spill] sm:$0xff] }
 0x573   :  { %6294 = vmatprep.subr.bf16.mxu0 %v8918_v59  ;;  %6319 = vmatprep.subr.bf16.mxu1 %v8802_v34 }
 0x576   :  { %6296 = vmatpush1.bf16.msra.mxu0 %v8919_v8  ;;  %6321 = vmatpush3.bf16.msra.mxu1 %v8920_v11 }
 0x577   :  { %6298 = vmatprep.subr.bf16.mxu0 %v8921_v16  ;;  %6322 = vmatprep.subr.bf16.mxu1 %v8802_v34 }
 0x57a   :  { %6300 = vmatpush1.bf16.msra.mxu0 %v8922_v37  ;;  %6324 = vmatpush3.bf16.msra.mxu1 %v8923_v47  ;;  %v8935_v47 = vld [vmem:[#allocation35_spill] sm:$0xff]  ;;  %v8936_v37 = vld [vmem:[#allocation36_spill] sm:$0xff] }
 0x57b   :  { %6326 = vmatprep.subr.bf16.mxu0 %v8924_v4  ;;  %6357 = vmatprep.subr.bf16.mxu1 %v8802_v34  ;;  %v8934_v4 = vld [vmem:[#allocation34_spill] sm:$0xff] }
 0x57d   :  { %2434 = vmatmul.mubr.f32.vlgmr.msra.gmra.mrb[20].mxu0 %v8039_v58  ;;  %5210 = vmatmul.mubr.f32.vlgmr.msra.gmra.mrb[26].mxu1 %v8039_v58 }
 0x57e   :  { %6328 = vmatpush1.bf16.msra.mxu0 %v8925_v30  ;;  %6359 = vmatpush3.bf16.msra.mxu1 %v8926_v61  ;;  %v8931_v30 = vld [vmem:[#allocation31_spill] sm:$0xff]  ;;  %v8932_v61 = vld [vmem:[#allocation32_spill] sm:$0xff] }
 0x57f   :  { %6330 = vmatprep.subr.bf16.mxu0 %v8927_v32  ;;  %6360 = vmatprep.subr.bf16.mxu1 %v8802_v34  ;;  %v8933_v32 = vld [vmem:[#allocation33_spill] sm:$0xff] }
 0x580   :  { %2595 = vmatprep.mubr.f32.mxu0 %v8804_v20  ;;  %5244 = vmatprep.mubr.msk.f32.mxu1 %vm7235_vm2, %v8804_v20 }
 0x582   :  { %6332 = vmatpush1.bf16.msra.mxu0 %v8928_v24  ;;  %6362 = vmatpush3.bf16.msra.mxu1 %v8929_v0  ;;  %v8937_v0 = vld [vmem:[#allocation37_spill] sm:$0xff]  ;;  %v8939_v24 = vld [vmem:[#allocation39_spill] sm:$0xff] }
 0x583   :  { %6334 = vmatprep.subr.bf16.mxu0 %v8930_v38  ;;  %6363 = vmatprep.subr.bf16.mxu1 %v8802_v34  ;;  %v8938_v38 = vld [vmem:[#allocation38_spill] sm:$0xff] }
 0x586   :  { %6336 = vmatpush1.bf16.msra.mxu0 %v8931_v30  ;;  %6365 = vmatpush3.bf16.msra.mxu1 %v8932_v61  ;;  %v8940_v61 = vld [vmem:[#allocation40_spill] sm:$0xff]  ;;  %v8942_v30 = vld [vmem:[#allocation42_spill] sm:$0xff] }
 0x587   :  { %6338 = vmatprep.subr.bf16.mxu0 %v8933_v32  ;;  %6366 = vmatprep.subr.bf16.mxu1 %v8802_v34  ;;  %v8941_v32 = vld [vmem:[#allocation41_spill] sm:$0xff] }
 0x58a   :  { %6340 = vmatpush1.bf16.msra.mxu0 %v8934_v4  ;;  %6368 = vmatpush3.bf16.msra.mxu1 %v8935_v47  ;;  %v8943_v47 = vld [vmem:[#allocation43_spill] sm:$0xff]  ;;  %v8945_v4 = vld [vmem:[#allocation45_spill] sm:$0xff] }
 0x58b   :  { %6342 = vmatprep.subr.bf16.mxu0 %v8936_v37  ;;  %6369 = vmatprep.subr.bf16.mxu1 %v8802_v34  ;;  %v8944_v37 = vld [vmem:[#allocation44_spill] sm:$0xff] }
 0x58e   :  { %6344 = vmatpush1.bf16.msra.mxu0 %v8937_v0  ;;  %6371 = vmatpush3.bf16.msra.mxu1 %v8938_v38  ;;  %v8946_v38 = vld [vmem:[#allocation46_spill] sm:$0xff]  ;;  %v8948_v0 = vld [vmem:[#allocation48_spill] sm:$0xff] }
 0x58f   :  { %6346 = vmatprep.subr.bf16.mxu0 %v8939_v24  ;;  %6372 = vmatprep.subr.bf16.mxu1 %v8802_v34  ;;  %v8947_v24 = vld [vmem:[#allocation47_spill] sm:$0xff] }
 0x592   :  { %6348 = vmatpush1.bf16.msra.mxu0 %v8940_v61  ;;  %6374 = vmatpush3.bf16.msra.mxu1 %v8941_v32 }
 0x593   :  { %6350 = vmatprep.subr.bf16.mxu0 %v8942_v30  ;;  %6375 = vmatprep.subr.bf16.mxu1 %v8802_v34 }
 0x596   :  { %6352 = vmatpush1.bf16.msra.mxu0 %v8943_v47  ;;  %6377 = vmatpush3.bf16.msra.mxu1 %v8944_v37 }
 0x597   :  { %6354 = vmatprep.subr.bf16.mxu0 %v8945_v4  ;;  %6378 = vmatprep.subr.bf16.mxu1 %v8802_v34 }
 0x59a   :  { %6356 = vmatpush1.bf16.msra.mxu0 %v8946_v38  ;;  %6380 = vmatpush3.bf16.msra.mxu1 %v8947_v24 }
 0x59b   :  { %6382 = vmatprep.subr.bf16.mxu0 %v8948_v0  ;;  %6413 = vmatprep.subr.bf16.mxu1 %v8802_v34 }
 0x610   :  { %v2203_v32 = vpop.f32.mrb[22].mxu1 }
 0x611   :  { %v5141_v30 = vpop.f32.mrb[23].mxu1  ;;  %v2204_v60 = vadd.f32 %v2203_v32, %v7766_v63 }
 0x630   :  { %v2273_v61 = vpop.f32.mrb[18].mxu0  ;;  %v2344_v16 = vpop.f32.mrb[24].mxu1 }
 0x631   :  { %v6954_v47 = vadd.f32 %v8907_v44, %v2273_v61  ;;  %v2275_v11 = vpop.f32.mrb[19].mxu0  ;;  %v5176_v37 = vpop.f32.mrb[25].mxu1  ;;  %v2345_v50 = vadd.f32 %v2344_v16, %v8949_v2 }
 0x632   :  { %v6956_v4 = vadd.f32 %v8908_v41, %v2275_v11  ;;  %v8951_v41 = vld [vmem:[#allocation52_spill] sm:$0xff] }
 0x633   :  { %v4321_v8 = vmul.f32 -1.442695, %v6954_v47 }
 0x634   :  { %v4322_v59 = vmul.f32 -1.442695, %v6956_v4 }
 0x635   :  { %7068 = vpow2.f32 %v4321_v8 }
 0x636   :  { %7070 = vpow2.f32 %v4322_v59 }
 0x63f   :  { %v7069_v38 = vpop.eup %7068 }
 0x640   :  { %v2352_v24 = vadd.f32 1.0, %v7069_v38  ;;  %v7071_v0 = vpop.eup %7070 }
 0x641   :  { %v2359_v12 = vadd.f32 1.0, %v7071_v0 }
 0x642   :  { %7072 = vrcp.f32 %v2352_v24  ;;  %v8950_v24 = vld [vmem:[#allocation51_spill] sm:$0xff] }
 0x643   :  { %7074 = vrcp.f32 %v2359_v12 }
 0x64c   :  { %v7073_v30 = vpop.eup %7072 }
 0x64d   :  { %v2362_v21 = vmul.f32 %v7073_v30, %v2345_v50  ;;  %v7075_v2 = vpop.eup %7074 }
 0x64e   :  { %v2365_v50 = vsub.f32 1.0, %v7075_v2 }
 0x64f   :  { %v2363_v61 = vadd.f32 %v2362_v21, %v2204_v60  ;;  %v2367_v60 = vmul.f32 %v7075_v2, %v8034_v5 }
 0x650   :  { %v2435_v37 = vpop.f32.mrb[20].mxu0  ;;  %v2506_v47 = vpop.f32.mrb[26].mxu1 }
 0x651   :  { %7076 = vtanh.f32 %v2363_v61  ;;  %v2436_v8 = vadd.f32 %v2435_v37, %v7567_v48  ;;  %v2437_v11 = vpop.f32.mrb[21].mxu0  ;;  %v5211_v59 = vpop.f32.mrb[27].mxu1 }
 0x652   :  { %v2438_v4 = vadd.f32 %v2437_v11, %v8826_v17 }
 0x653   :  { %v2510_v38 = vadd.f32 %v2436_v8, %v8950_v24  ;;  %v2507_v8 = vadd.f32 %v2506_v47, %v8829_v33  ;;  %v8955_v47 = vld [vmem:[#allocation13_spill] sm:$0xff] }
 0x654   :  { %v2517_v16 = vadd.f32 %v2438_v4, %v8951_v41 }
 0x655   :  { %v4323_v0 = vmul.f32 -1.442695, %v2510_v38 }
 0x656   :  { %v4324_v32 = vmul.f32 -1.442695, %v2517_v16 }
 0x657   :  { %7078 = vpow2.f32 %v4323_v0  ;;  %v8952_v0 = vld [vmem:[#allocation53_spill] sm:$0xff] }
 0x658   :  { %7080 = vpow2.f32 %v4324_v32 }
 0x65b   :  { %v7077_v12 = vpop.eup %7076 }
 0x65c   :  { %v2366_v21 = vmul.f32 %v7077_v12, %v2365_v50 }
 0x65e   :  { %v8161_v30 = vadd.f32 %v2367_v60, %v2366_v21  ;;  %v8956_v21 = vld [vmem:[#allocation14_spill] sm:$0xff]  ;;  %v8957_v60 = vld [vmem:[#allocation21_spill] sm:$0xff] }
 0x661   :  { %v7079_v61 = vpop.eup %7078 }
 0x662   :  { %v2514_v37 = vadd.f32 1.0, %v7079_v61  ;;  %v7081_v11 = vpop.eup %7080  ;;  %v8958_v61 = vld [vmem:[#allocation16_spill] sm:$0xff] }
 0x663   :  { %v2521_v59 = vadd.f32 1.0, %v7081_v11  ;;  %v8960_v11 = vld [vmem:[#allocation22_spill] sm:$0xff] }
 0x664   :  { %7082 = vrcp.f32 %v2514_v37  ;;  %v8959_v37 = vld [vmem:[#allocation17_spill] sm:$0xff] }
 0x665   :  { %7084 = vrcp.f32 %v2521_v59  ;;  %v8961_v59 = vld [vmem:[#allocation19_spill] sm:$0xff] }
 0x66e   :  { %v7083_v38 = vpop.eup %7082 }
 0x66f   :  { %v2524_v4 = vmul.f32 %v7083_v38, %v2507_v8  ;;  %v7085_v41 = vpop.eup %7084  ;;  %v8962_v8 = vld [vmem:[#allocation20_spill] sm:$0xff]  ;;  %v8963_v38 = vld [vmem:[#allocation23_spill] sm:$0xff] }
 0x670   :  { %v2527_v50 = vsub.f32 1.0, %v7085_v41  ;;  %v2529_v2 = vmul.f32 %v7085_v41, %v8039_v58  ;;  %v8953_v41 = vld [vmem:[#allocation12_spill] sm:$0xff]  ;;  %v8954_v58 = vld [vmem:[#allocation18_spill] sm:$0xff] }
 0x671   :  { %v2525_v16 = vadd.f32 %v2524_v4, %v8952_v0  ;;  %v8964_v4 = vld [vmem:[#allocation24_spill] sm:$0xff] }
 0x673   :  { %7086 = vtanh.f32 %v2525_v16  ;;  %v8965_v16 = vld [vmem:[#allocation25_spill] sm:$0xff] }
 0x67d   :  { %v7087_v12 = vpop.eup %7086 }
 0x67e   :  { %v2528_v5 = vmul.f32 %v7087_v12, %v2527_v50  ;;  %v8966_v50 = vld [vmem:[#allocation26_spill] sm:$0xff]  ;;  %v8967_v12 = vld [vmem:[#allocation27_spill] sm:$0xff] }
 0x680   :  { %v8166_v32 = vadd.f32 %v2529_v2, %v2528_v5  ;;  %v8968_v5 = vld [vmem:[#allocation28_spill] sm:$0xff]  ;;  %v8969_v2 = vld [vmem:[#allocation29_spill] sm:$0xff] }
 0x682   :  { %2596 = vmatmul.mubr.f32.vlgmr.msra.gmra.mrb[22].mxu0 %v8166_v32  ;;  %5245 = vmatmul.mubr.f32.vlgmr.msra.gmra.mrb[28].mxu1 %v8166_v32 }
 0x683   :  { %6384 = vmatpush1.bf16.msra.mxu0 %v8831_v15  ;;  %6415 = vmatpush3.bf16.msra.mxu1 %v8832_v55 }
 0x684   :  { %6386 = vmatprep.subr.bf16.mxu0 %v8833_v29  ;;  %6416 = vmatprep.subr.bf16.mxu1 %v8802_v34 }
 0x685   :  { %2736 = vmatprep.mubr.f32.mxu0 %v8804_v20  ;;  %5279 = vmatprep.mubr.msk.f32.mxu1 %vm7235_vm2, %v8804_v20 }
 0x687   :  { %6388 = vmatpush1.bf16.msra.mxu0 %v8834_v27  ;;  %6418 = vmatpush3.bf16.msra.mxu1 %v8835_v1 }
 0x688   :  { %6390 = vmatprep.subr.bf16.mxu0 %v8836_v53  ;;  %6419 = vmatprep.subr.bf16.mxu1 %v8802_v34 }
 0x68b   :  { %6392 = vmatpush1.bf16.msra.mxu0 %v8837_v14  ;;  %6421 = vmatpush3.bf16.msra.mxu1 %v8838_v7 }
 0x68c   :  { %6394 = vmatprep.subr.bf16.mxu0 %v8839_v42  ;;  %6422 = vmatprep.subr.bf16.mxu1 %v8802_v34 }
 0x68f   :  { %6396 = vmatpush1.bf16.msra.mxu0 %v8840_v51  ;;  %6424 = vmatpush3.bf16.msra.mxu1 %v8841_v23 }
 0x690   :  { %6398 = vmatprep.subr.bf16.mxu0 %v8842_v52  ;;  %6425 = vmatprep.subr.bf16.mxu1 %v8802_v34 }
 0x693   :  { %6400 = vmatpush1.bf16.msra.mxu0 %v7632_v36  ;;  %6427 = vmatpush3.bf16.msra.mxu1 %v7634_v45 }
 0x694   :  { %6402 = vmatprep.subr.bf16.mxu0 %v8843_v6  ;;  %6428 = vmatprep.subr.bf16.mxu1 %v8802_v34 }
 0x697   :  { %6404 = vmatpush1.bf16.msra.mxu0 %v8844_v46  ;;  %6430 = vmatpush3.bf16.msra.mxu1 %v7644_v43 }
 0x698   :  { %6406 = vmatprep.subr.bf16.mxu0 %v7648_v62  ;;  %6431 = vmatprep.subr.bf16.mxu1 %v8802_v34 }
 0x69b   :  { %6408 = vmatpush1.bf16.msra.mxu0 %v7652_v54  ;;  %6433 = vmatpush3.bf16.msra.mxu1 %v7654_v39 }
 0x69c   :  { %6410 = vmatprep.subr.bf16.mxu0 %v7658_v31  ;;  %6434 = vmatprep.subr.bf16.mxu1 %v8802_v34 }
 0x69f   :  { %6412 = vmatpush1.bf16.msra.mxu0 %v7662_v57  ;;  %6436 = vmatpush3.bf16.msra.mxu1 %v7664_v3 }
 0x6a0   :  { %6438 = vmatprep.subr.bf16.mxu0 %v7359_v9  ;;  %6469 = vmatprep.subr.bf16.mxu1 %v8802_v34 }
 0x6a2   :  { %2737 = vmatmul.mubr.f32.vlgmr.msra.gmra.mrb[22].mxu0 %v8161_v30  ;;  %5280 = vmatmul.mubr.f32.vlgmr.msra.gmra.mrb[30].mxu1 %v8161_v30 }
 0x6a3   :  { %6440 = vmatpush1.bf16.msra.mxu0 %v7361_v10  ;;  %6471 = vmatpush3.bf16.msra.mxu1 %v7392_v35 }
 0x6a4   :  { %6442 = vmatprep.subr.bf16.mxu0 %v7364_v13  ;;  %6472 = vmatprep.subr.bf16.mxu1 %v8802_v34 }
 0x6a5   :  { %2898 = vmatprep.mubr.f32.mxu0 %v8804_v20  ;;  %5314 = vmatprep.mubr.msk.f32.mxu1 %vm7235_vm2, %v8804_v20 }
 0x6a7   :  { %6444 = vmatpush1.bf16.msra.mxu0 %v7370_v18  ;;  %6474 = vmatpush3.bf16.msra.mxu1 %v7400_v40 }
 0x6a8   :  { %6446 = vmatprep.subr.bf16.mxu0 %v7374_v19  ;;  %6475 = vmatprep.subr.bf16.mxu1 %v8802_v34 }
 0x6ab   :  { %6448 = vmatpush1.bf16.msra.mxu0 %v7380_v25  ;;  %6477 = vmatpush3.bf16.msra.mxu1 %v7412_v49 }
 0x6ac   :  { %6450 = vmatprep.subr.bf16.mxu0 %v7387_v28  ;;  %6478 = vmatprep.subr.bf16.mxu1 %v8802_v34 }
 0x6af   :  { %6452 = vmatpush1.bf16.msra.mxu0 %v8910_v26  ;;  %6480 = vmatpush3.bf16.msra.mxu1 %v8911_v56 }
 0x6b0   :  { %6454 = vmatprep.subr.bf16.mxu0 %v8912_v22  ;;  %6481 = vmatprep.subr.bf16.mxu1 %v8802_v34 }
 0x6b3   :  { %6456 = vmatpush1.bf16.msra.mxu0 %v8953_v41  ;;  %6483 = vmatpush3.bf16.msra.mxu1 %v8954_v58  ;;  %v8990_v58 = vld [vmem:[#allocation73_spill] sm:$0xff] }
 0x6b4   :  { %6458 = vmatprep.subr.bf16.mxu0 %v8955_v47  ;;  %6484 = vmatprep.subr.bf16.mxu1 %v8802_v34 }
 0x6b7   :  { %6460 = vmatpush1.bf16.msra.mxu0 %v8956_v21  ;;  %6486 = vmatpush3.bf16.msra.mxu1 %v8957_v60 }
 0x6b8   :  { %6462 = vmatprep.subr.bf16.mxu0 %v8958_v61  ;;  %6487 = vmatprep.subr.bf16.mxu1 %v8802_v34 }
 0x6bb   :  { %6464 = vmatpush1.bf16.msra.mxu0 %v8959_v37  ;;  %6489 = vmatpush3.bf16.msra.mxu1 %v8960_v11 }
 0x6bc   :  { %6466 = vmatprep.subr.bf16.mxu0 %v8961_v59  ;;  %6490 = vmatprep.subr.bf16.mxu1 %v8802_v34  ;;  %v8976_v59 = vld [vmem:[#allocation36_spill] sm:$0xff] }
 0x6bf   :  { %6468 = vmatpush1.bf16.msra.mxu0 %v8962_v8  ;;  %6492 = vmatpush3.bf16.msra.mxu1 %v8963_v38  ;;  %v8974_v38 = vld [vmem:[#allocation34_spill] sm:$0xff]  ;;  %v8975_v8 = vld [vmem:[#allocation35_spill] sm:$0xff] }
 0x6c0   :  { %6494 = vmatprep.subr.bf16.mxu0 %v8964_v4  ;;  %6525 = vmatprep.subr.bf16.mxu1 %v8802_v34  ;;  %v8970_v4 = vld [vmem:[#allocation30_spill] sm:$0xff] }
 0x6c2   :  { %2899 = vmatmul.mubr.f32.vlgmr.msra.gmra.mrb[24].mxu0 %v8166_v32  ;;  %5315 = vmatmul.mubr.f32.vlgmr.msra.gmra.mrb[32].mxu1 %v8166_v32 }
 0x6c3   :  { %6496 = vmatpush1.bf16.msra.mxu0 %v8965_v16  ;;  %6527 = vmatpush3.bf16.msra.mxu1 %v8966_v50  ;;  %v8971_v16 = vld [vmem:[#allocation31_spill] sm:$0xff]  ;;  %v8972_v50 = vld [vmem:[#allocation32_spill] sm:$0xff] }
 0x6c4   :  { %6498 = vmatprep.subr.bf16.mxu0 %v8967_v12  ;;  %6528 = vmatprep.subr.bf16.mxu1 %v8802_v34  ;;  %v8973_v12 = vld [vmem:[#allocation33_spill] sm:$0xff] }
 0x6c5   :  { %3075 = vmatprep.mubr.f32.mxu0 %v8804_v20  ;;  %5349 = vmatprep.mubr.msk.f32.mxu1 %vm7235_vm2, %v8804_v20 }
 0x6c7   :  { %6500 = vmatpush1.bf16.msra.mxu0 %v8968_v5  ;;  %6530 = vmatpush3.bf16.msra.mxu1 %v8969_v2  ;;  %v8977_v2 = vld [vmem:[#allocation37_spill] sm:$0xff]  ;;  %v8979_v5 = vld [vmem:[#allocation39_spill] sm:$0xff] }
 0x6c8   :  { %6502 = vmatprep.subr.bf16.mxu0 %v8970_v4  ;;  %6531 = vmatprep.subr.bf16.mxu1 %v8802_v34  ;;  %v8978_v4 = vld [vmem:[#allocation38_spill] sm:$0xff] }
 0x6cb   :  { %6504 = vmatpush1.bf16.msra.mxu0 %v8971_v16  ;;  %6533 = vmatpush3.bf16.msra.mxu1 %v8972_v50  ;;  %v8980_v50 = vld [vmem:[#allocation40_spill] sm:$0xff]  ;;  %v8982_v16 = vld [vmem:[#allocation42_spill] sm:$0xff] }
 0x6cc   :  { %6506 = vmatprep.subr.bf16.mxu0 %v8973_v12  ;;  %6534 = vmatprep.subr.bf16.mxu1 %v8802_v34  ;;  %v8981_v12 = vld [vmem:[#allocation41_spill] sm:$0xff] }
 0x6cf   :  { %6508 = vmatpush1.bf16.msra.mxu0 %v8974_v38  ;;  %6536 = vmatpush3.bf16.msra.mxu1 %v8975_v8  ;;  %v8983_v8 = vld [vmem:[#allocation43_spill] sm:$0xff]  ;;  %v8985_v38 = vld [vmem:[#allocation45_spill] sm:$0xff] }
 0x6d0   :  { %6510 = vmatprep.subr.bf16.mxu0 %v8976_v59  ;;  %6537 = vmatprep.subr.bf16.mxu1 %v8802_v34  ;;  %v8984_v59 = vld [vmem:[#allocation44_spill] sm:$0xff] }
 0x6d3   :  { %6512 = vmatpush1.bf16.msra.mxu0 %v8977_v2  ;;  %6539 = vmatpush3.bf16.msra.mxu1 %v8978_v4  ;;  %v8986_v4 = vld [vmem:[#allocation46_spill] sm:$0xff]  ;;  %v8988_v2 = vld [vmem:[#allocation48_spill] sm:$0xff] }
 0x6d4   :  { %6514 = vmatprep.subr.bf16.mxu0 %v8979_v5  ;;  %6540 = vmatprep.subr.bf16.mxu1 %v8802_v34  ;;  %v8987_v5 = vld [vmem:[#allocation47_spill] sm:$0xff] }
 0x6d7   :  { %6516 = vmatpush1.bf16.msra.mxu0 %v8980_v50  ;;  %6542 = vmatpush3.bf16.msra.mxu1 %v8981_v12 }
 0x6d8   :  { %6518 = vmatprep.subr.bf16.mxu0 %v8982_v16  ;;  %6543 = vmatprep.subr.bf16.mxu1 %v8802_v34 }
 0x6db   :  { %6520 = vmatpush1.bf16.msra.mxu0 %v8983_v8  ;;  %6545 = vmatpush3.bf16.msra.mxu1 %v8984_v59 }
 0x6dc   :  { %6522 = vmatprep.subr.bf16.mxu0 %v8985_v38  ;;  %6546 = vmatprep.subr.bf16.mxu1 %v8802_v34  ;;  %v8989_v38 = vld [vmem:[#allocation50_spill] sm:$0xff] }
 0x6df   :  { %6524 = vmatpush1.bf16.msra.mxu0 %v8986_v4  ;;  %6548 = vmatpush3.bf16.msra.mxu1 %v8987_v5 }
 0x6e0   :  { %6550 = vmatprep.subr.bf16.mxu0 %v8988_v2  ;;  %6581 = vmatprep.subr.bf16.mxu1 %v8802_v34 }
 0x755   :  { %v2668_v12 = vpop.f32.mrb[28].mxu1 }
 0x756   :  { %v5246_v16 = vpop.f32.mrb[29].mxu1  ;;  %v2669_v22 = vadd.f32 %v2668_v12, %v7766_v63 }
 0x775   :  { %v2738_v50 = vpop.f32.mrb[22].mxu0  ;;  %v2809_v11 = vpop.f32.mrb[30].mxu1 }
 0x776   :  { %v6958_v8 = vadd.f32 %v8907_v44, %v2738_v50  ;;  %v2740_v37 = vpop.f32.mrb[23].mxu0  ;;  %v5281_v59 = vpop.f32.mrb[31].mxu1  ;;  %v2810_v41 = vadd.f32 %v2809_v11, %v8990_v58  ;;  %v8991_v11 = vld [vmem:[#allocation52_spill] sm:$0xff] }
 0x777   :  { %v6960_v60 = vadd.f32 %v8989_v38, %v2740_v37 }
 0x778   :  { %v4325_v61 = vmul.f32 -1.442695, %v6958_v8 }
 0x779   :  { %v4326_v21 = vmul.f32 -1.442695, %v6960_v60 }
 0x77a   :  { %7088 = vpow2.f32 %v4325_v61 }
 0x77b   :  { %7090 = vpow2.f32 %v4326_v21 }
 0x784   :  { %v7089_v4 = vpop.eup %7088 }
 0x785   :  { %v2817_v5 = vadd.f32 1.0, %v7089_v4  ;;  %v7091_v2 = vpop.eup %7090 }
 0x786   :  { %v2824_v47 = vadd.f32 1.0, %v7091_v2 }
 0x787   :  { %7092 = vrcp.f32 %v2817_v5 }
 0x788   :  { %7094 = vrcp.f32 %v2824_v47 }
 0x791   :  { %v7093_v16 = vpop.eup %7092 }
 0x792   :  { %v2827_v56 = vmul.f32 %v7093_v16, %v2810_v41  ;;  %v7095_v38 = vpop.eup %7094 }
 0x793   :  { %v2832_v16 = vmul.f32 %v7095_v38, %v8161_v30 }
 0x794   :  { %v2828_v50 = vadd.f32 %v2827_v56, %v2669_v22  ;;  %v2830_v56 = vsub.f32 1.0, %v7095_v38 }
 0x795   :  { %v2900_v59 = vpop.f32.mrb[24].mxu0  ;;  %v2971_v8 = vpop.f32.mrb[32].mxu1 }
 0x796   :  { %7096 = vtanh.f32 %v2828_v50  ;;  %v2901_v61 = vadd.f32 %v2900_v59, %v7567_v48  ;;  %v2902_v60 = vpop.f32.mrb[25].mxu0  ;;  %v5316_v21 = vpop.f32.mrb[33].mxu1 }
 0x797   :  { %v2903_v37 = vadd.f32 %v2902_v60, %v8826_v17 }
 0x798   :  { %v2976_v4 = vrot.slane %v2901_v61, 6 }
 0x799   :  { %v2986_v5 = vrot.slane %v2903_v37, 6  ;;  %v2972_v37 = vadd.f32 %v2971_v8, %v8829_v33  ;;  %v8993_v8 = vld [vmem:[#allocation11_spill] sm:$0xff] }
 0x79a   :  { %v2978_v2 = vadd.f32 %v2976_v4, %v8950_v24 }
 0x79b   :  { %v2988_v58 = vadd.f32 %v2986_v5, %v8991_v11  ;;  %v2996_v4 = vrot.slane %v2972_v37, 6  ;;  %v8998_v37 = vld [vmem:[#allocation21_spill] sm:$0xff] }
 0x79c   :  { %v4327_v12 = vmul.f32 -1.442695, %v2978_v2 }
 0x79d   :  { %v4328_v41 = vmul.f32 -1.442695, %v2988_v58  ;;  %v3004_v58 = vrot.slane %v8166_v32, 6  ;;  %v8992_v32 = vld [vmem:[#allocation15_spill] sm:$0xff] }
 0x79e   :  { %7098 = vpow2.f32 %v4327_v12 }
 0x79f   :  { %7100 = vpow2.f32 %v4328_v41 }
 0x7a0   :  { %v7097_v22 = vpop.eup %7096 }
 0x7a1   :  { %v2831_v47 = vmul.f32 %v7097_v22, %v2830_v56 }
 0x7a3   :  { %v8288_v50 = vadd.f32 %v2832_v16, %v2831_v47 }
 0x7a8   :  { %v7099_v59 = vpop.eup %7098 }
 0x7a9   :  { %v7101_v60 = vpop.eup %7100  ;;  %v2982_v61 = vadd.f32 1.0, %v7099_v59  ;;  %v8994_v59 = vld [vmem:[#allocation12_spill] sm:$0xff] }
 0x7aa   :  { %v2992_v21 = vadd.f32 1.0, %v7101_v60  ;;  %v8995_v60 = vld [vmem:[#allocation18_spill] sm:$0xff] }
 0x7ab   :  { %7102 = vrcp.f32 %v2982_v61  ;;  %v8996_v61 = vld [vmem:[#allocation13_spill] sm:$0xff] }
 0x7ac   :  { %7104 = vrcp.f32 %v2992_v21  ;;  %v8997_v21 = vld [vmem:[#allocation14_spill] sm:$0xff] }
 0x7b5   :  { %v7103_v5 = vpop.eup %7102 }
 0x7b6   :  { %v7105_v2 = vpop.eup %7104  ;;  %v2998_v12 = vmul.f32 %v7103_v5, %v2996_v4  ;;  %v8999_v4 = vld [vmem:[#allocation16_spill] sm:$0xff]  ;;  %v9000_v5 = vld [vmem:[#allocation17_spill] sm:$0xff] }
 0x7b7   :  { %v3006_v41 = vmul.f32 %v7105_v2, %v3004_v58  ;;  %v3001_v30 = vsub.f32 1.0, %v7105_v2  ;;  %v9001_v58 = vld [vmem:[#allocation22_spill] sm:$0xff]  ;;  %v9002_v2 = vld [vmem:[#allocation19_spill] sm:$0xff] }
 0x7b8   :  { %v2999_v56 = vadd.f32 %v2998_v12, %v8952_v0  ;;  %v9003_v12 = vld [vmem:[#allocation20_spill] sm:$0xff] }
 0x7ba   :  { %7106 = vtanh.f32 %v2999_v56  ;;  %v9005_v56 = vld [vmem:[#allocation24_spill] sm:$0xff] }
 0x7c4   :  { %v7107_v38 = vpop.eup %7106 }
 0x7c5   :  { %v3002_v22 = vmul.f32 %v7107_v38, %v3001_v30  ;;  %v9006_v30 = vld [vmem:[#allocation25_spill] sm:$0xff]  ;;  %v9007_v38 = vld [vmem:[#allocation26_spill] sm:$0xff] }
 0x7c7   :  { %v8293_v47 = vadd.f32 %v3006_v41, %v3002_v22  ;;  %v9004_v41 = vld [vmem:[#allocation23_spill] sm:$0xff] }
 0x7c8   :  { %v9008_v22 = vld [vmem:[#allocation27_spill] sm:$0xff] }
 0x7c9   :  { %v8296_v16 = vrot.slane %v8293_v47, 2 }
 0x7cb   :  { %3076 = vmatmul.mubr.f32.vlgmr.msra.gmra.mrb[26].mxu0 %v8296_v16  ;;  %5350 = vmatmul.mubr.f32.vlgmr.msra.gmra.mrb[34].mxu1 %v8296_v16 }
 0x7cc   :  { %6552 = vmatpush1.bf16.msra.mxu0 %v8831_v15  ;;  %6583 = vmatpush3.bf16.msra.mxu1 %v8832_v55 }
 0x7cd   :  { %6554 = vmatprep.subr.bf16.mxu0 %v8833_v29  ;;  %6584 = vmatprep.subr.bf16.mxu1 %v8802_v34 }
 0x7ce   :  { %3216 = vmatprep.mubr.f32.mxu0 %v8804_v20  ;;  %5384 = vmatprep.mubr.msk.f32.mxu1 %vm7235_vm2, %v8804_v20 }
 0x7d0   :  { %6556 = vmatpush1.bf16.msra.mxu0 %v8834_v27  ;;  %6586 = vmatpush3.bf16.msra.mxu1 %v8835_v1 }
 0x7d1   :  { %6558 = vmatprep.subr.bf16.mxu0 %v8836_v53  ;;  %6587 = vmatprep.subr.bf16.mxu1 %v8802_v34 }
 0x7d4   :  { %6560 = vmatpush1.bf16.msra.mxu0 %v8837_v14  ;;  %6589 = vmatpush3.bf16.msra.mxu1 %v8838_v7 }
 0x7d5   :  { %6562 = vmatprep.subr.bf16.mxu0 %v8839_v42  ;;  %6590 = vmatprep.subr.bf16.mxu1 %v8802_v34 }
 0x7d8   :  { %6564 = vmatpush1.bf16.msra.mxu0 %v8840_v51  ;;  %6592 = vmatpush3.bf16.msra.mxu1 %v8841_v23 }
 0x7d9   :  { %6566 = vmatprep.subr.bf16.mxu0 %v8842_v52  ;;  %6593 = vmatprep.subr.bf16.mxu1 %v8802_v34 }
 0x7dc   :  { %6568 = vmatpush1.bf16.msra.mxu0 %v7632_v36  ;;  %6595 = vmatpush3.bf16.msra.mxu1 %v7634_v45 }
 0x7dd   :  { %6570 = vmatprep.subr.bf16.mxu0 %v8843_v6  ;;  %6596 = vmatprep.subr.bf16.mxu1 %v8802_v34 }
 0x7e0   :  { %6572 = vmatpush1.bf16.msra.mxu0 %v8844_v46  ;;  %6598 = vmatpush3.bf16.msra.mxu1 %v7644_v43 }
 0x7e1   :  { %6574 = vmatprep.subr.bf16.mxu0 %v7648_v62  ;;  %6599 = vmatprep.subr.bf16.mxu1 %v8802_v34 }
 0x7e4   :  { %6576 = vmatpush1.bf16.msra.mxu0 %v7652_v54  ;;  %6601 = vmatpush3.bf16.msra.mxu1 %v7654_v39 }
 0x7e5   :  { %6578 = vmatprep.subr.bf16.mxu0 %v7658_v31  ;;  %6602 = vmatprep.subr.bf16.mxu1 %v8802_v34 }
 0x7e8   :  { %6580 = vmatpush1.bf16.msra.mxu0 %v7662_v57  ;;  %6604 = vmatpush3.bf16.msra.mxu1 %v7664_v3 }
 0x7e9   :  { %6606 = vmatprep.subr.bf16.mxu0 %v7359_v9  ;;  %6637 = vmatprep.subr.bf16.mxu1 %v8802_v34 }
 0x7eb   :  { %3217 = vmatmul.mubr.f32.vlgmr.msra.gmra.mrb[26].mxu0 %v8288_v50  ;;  %5385 = vmatmul.mubr.f32.vlgmr.msra.gmra.mrb[36].mxu1 %v8288_v50 }
 0x7ec   :  { %6608 = vmatpush1.bf16.msra.mxu0 %v7361_v10  ;;  %6639 = vmatpush3.bf16.msra.mxu1 %v7392_v35 }
 0x7ed   :  { %6610 = vmatprep.subr.bf16.mxu0 %v7364_v13  ;;  %6640 = vmatprep.subr.bf16.mxu1 %v8802_v34 }
 0x7ee   :  { %3378 = vmatprep.mubr.f32.mxu0 %v8804_v20  ;;  %5419 = vmatprep.mubr.msk.f32.mxu1 %vm7235_vm2, %v8804_v20 }
 0x7f0   :  { %6612 = vmatpush1.bf16.msra.mxu0 %v7370_v18  ;;  %6642 = vmatpush3.bf16.msra.mxu1 %v7400_v40 }
 0x7f1   :  { %6614 = vmatprep.subr.bf16.mxu0 %v7374_v19  ;;  %6643 = vmatprep.subr.bf16.mxu1 %v8802_v34 }
 0x7f4   :  { %6616 = vmatpush1.bf16.msra.mxu0 %v7380_v25  ;;  %6645 = vmatpush3.bf16.msra.mxu1 %v7412_v49 }
 0x7f5   :  { %6618 = vmatprep.subr.bf16.mxu0 %v7387_v28  ;;  %6646 = vmatprep.subr.bf16.mxu1 %v8802_v34 }
 0x7f8   :  { %6620 = vmatpush1.bf16.msra.mxu0 %v8910_v26  ;;  %6648 = vmatpush3.bf16.msra.mxu1 %v8992_v32 }
 0x7f9   :  { %6622 = vmatprep.subr.bf16.mxu0 %v8993_v8  ;;  %6649 = vmatprep.subr.bf16.mxu1 %v8802_v34 }
 0x7fc   :  { %6624 = vmatpush1.bf16.msra.mxu0 %v8994_v59  ;;  %6651 = vmatpush3.bf16.msra.mxu1 %v8995_v60  ;;  %v9031_v59 = vld [vmem:[#allocation73_spill] sm:$0xff] }
 0x7fd   :  { %6626 = vmatprep.subr.bf16.mxu0 %v8996_v61  ;;  %6652 = vmatprep.subr.bf16.mxu1 %v8802_v34 }
 0x800   :  { %6628 = vmatpush1.bf16.msra.mxu0 %v8997_v21  ;;  %6654 = vmatpush3.bf16.msra.mxu1 %v8998_v37 }
 0x801   :  { %6630 = vmatprep.subr.bf16.mxu0 %v8999_v4  ;;  %6655 = vmatprep.subr.bf16.mxu1 %v8802_v34 }
 0x804   :  { %6632 = vmatpush1.bf16.msra.mxu0 %v9000_v5  ;;  %6657 = vmatpush3.bf16.msra.mxu1 %v9001_v58  ;;  %v9017_v58 = vld [vmem:[#allocation36_spill] sm:$0xff] }
 0x805   :  { %6634 = vmatprep.subr.bf16.mxu0 %v9002_v2  ;;  %6658 = vmatprep.subr.bf16.mxu1 %v8802_v34  ;;  %v9016_v2 = vld [vmem:[#allocation35_spill] sm:$0xff] }
 0x808   :  { %6636 = vmatpush1.bf16.msra.mxu0 %v9003_v12  ;;  %6660 = vmatpush3.bf16.msra.mxu1 %v9004_v41  ;;  %v9010_v41 = vld [vmem:[#allocation29_spill] sm:$0xff]  ;;  %v9011_v12 = vld [vmem:[#allocation30_spill] sm:$0xff] }
 0x809   :  { %6662 = vmatprep.subr.bf16.mxu0 %v9005_v56  ;;  %6693 = vmatprep.subr.bf16.mxu1 %v8802_v34  ;;  %v9009_v56 = vld [vmem:[#allocation28_spill] sm:$0xff] }
 0x80b   :  { %3379 = vmatmul.mubr.f32.vlgmr.msra.gmra.mrb[28].mxu0 %v8296_v16  ;;  %5420 = vmatmul.mubr.f32.vlgmr.msra.gmra.mrb[38].mxu1 %v8296_v16  ;;  %v9012_v16 = vld [vmem:[#allocation31_spill] sm:$0xff] }
 0x80c   :  { %6664 = vmatpush1.bf16.msra.mxu0 %v9006_v30  ;;  %6695 = vmatpush3.bf16.msra.mxu1 %v9007_v38  ;;  %v9013_v38 = vld [vmem:[#allocation32_spill] sm:$0xff]  ;;  %v9015_v30 = vld [vmem:[#allocation34_spill] sm:$0xff] }
 0x80d   :  { %6666 = vmatprep.subr.bf16.mxu0 %v9008_v22  ;;  %6696 = vmatprep.subr.bf16.mxu1 %v8802_v34  ;;  %v9014_v22 = vld [vmem:[#allocation33_spill] sm:$0xff] }
 0x80e   :  { %3554 = vmatprep.mubr.f32.mxu0 %v8804_v20  ;;  %5454 = vmatprep.mubr.msk.f32.mxu1 %vm7235_vm2, %v8804_v20 }
 0x810   :  { %6668 = vmatpush1.bf16.msra.mxu0 %v9009_v56  ;;  %6698 = vmatpush3.bf16.msra.mxu1 %v9010_v41  ;;  %v9018_v41 = vld [vmem:[#allocation37_spill] sm:$0xff]  ;;  %v9020_v56 = vld [vmem:[#allocation39_spill] sm:$0xff] }
 0x811   :  { %6670 = vmatprep.subr.bf16.mxu0 %v9011_v12  ;;  %6699 = vmatprep.subr.bf16.mxu1 %v8802_v34  ;;  %v9019_v12 = vld [vmem:[#allocation38_spill] sm:$0xff] }
 0x814   :  { %6672 = vmatpush1.bf16.msra.mxu0 %v9012_v16  ;;  %6701 = vmatpush3.bf16.msra.mxu1 %v9013_v38  ;;  %v9021_v38 = vld [vmem:[#allocation40_spill] sm:$0xff]  ;;  %v9023_v16 = vld [vmem:[#allocation42_spill] sm:$0xff] }
 0x815   :  { %6674 = vmatprep.subr.bf16.mxu0 %v9014_v22  ;;  %6702 = vmatprep.subr.bf16.mxu1 %v8802_v34  ;;  %v9022_v22 = vld [vmem:[#allocation41_spill] sm:$0xff] }
 0x818   :  { %6676 = vmatpush1.bf16.msra.mxu0 %v9015_v30  ;;  %6704 = vmatpush3.bf16.msra.mxu1 %v9016_v2  ;;  %v9024_v2 = vld [vmem:[#allocation43_spill] sm:$0xff]  ;;  %v9026_v30 = vld [vmem:[#allocation45_spill] sm:$0xff] }
 0x819   :  { %6678 = vmatprep.subr.bf16.mxu0 %v9017_v58  ;;  %6705 = vmatprep.subr.bf16.mxu1 %v8802_v34  ;;  %v9025_v58 = vld [vmem:[#allocation44_spill] sm:$0xff] }
 0x81c   :  { %6680 = vmatpush1.bf16.msra.mxu0 %v9018_v41  ;;  %6707 = vmatpush3.bf16.msra.mxu1 %v9019_v12  ;;  %v9027_v12 = vld [vmem:[#allocation46_spill] sm:$0xff]  ;;  %v9029_v41 = vld [vmem:[#allocation48_spill] sm:$0xff] }
 0x81d   :  { %6682 = vmatprep.subr.bf16.mxu0 %v9020_v56  ;;  %6708 = vmatprep.subr.bf16.mxu1 %v8802_v34  ;;  %v9028_v56 = vld [vmem:[#allocation47_spill] sm:$0xff] }
 0x820   :  { %6684 = vmatpush1.bf16.msra.mxu0 %v9021_v38  ;;  %6710 = vmatpush3.bf16.msra.mxu1 %v9022_v22 }
 0x821   :  { %6686 = vmatprep.subr.bf16.mxu0 %v9023_v16  ;;  %6711 = vmatprep.subr.bf16.mxu1 %v8802_v34 }
 0x824   :  { %6688 = vmatpush1.bf16.msra.mxu0 %v9024_v2  ;;  %6713 = vmatpush3.bf16.msra.mxu1 %v9025_v58 }
 0x825   :  { %6690 = vmatprep.subr.bf16.mxu0 %v9026_v30  ;;  %6714 = vmatprep.subr.bf16.mxu1 %v8802_v34  ;;  %v9030_v30 = vld [vmem:[#allocation50_spill] sm:$0xff] }
 0x828   :  { %6692 = vmatpush1.bf16.msra.mxu0 %v9027_v12  ;;  %6716 = vmatpush3.bf16.msra.mxu1 %v9028_v56 }
 0x829   :  { %6718 = vmatprep.subr.bf16.mxu0 %v9029_v41  ;;  %6749 = vmatprep.subr.bf16.mxu1 %v8802_v34 }
 0x89e   :  { %v3148_v22 = vpop.f32.mrb[34].mxu1 }
 0x89f   :  { %v5351_v16 = vpop.f32.mrb[35].mxu1  ;;  %v3149_v32 = vadd.f32 %v3148_v22, %v7766_v63 }
 0x8be   :  { %v3218_v38 = vpop.f32.mrb[26].mxu0  ;;  %v3289_v5 = vpop.f32.mrb[36].mxu1 }
 0x8bf   :  { %v6962_v2 = vadd.f32 %v8907_v44, %v3218_v38  ;;  %v3220_v4 = vpop.f32.mrb[27].mxu0  ;;  %v5386_v58 = vpop.f32.mrb[37].mxu1  ;;  %v3290_v8 = vadd.f32 %v3289_v5, %v9031_v59 }
 0x8c0   :  { %v6964_v21 = vadd.f32 %v9030_v30, %v3220_v4 }
 0x8c1   :  { %v4329_v37 = vmul.f32 -1.442695, %v6962_v2 }
 0x8c2   :  { %v4330_v61 = vmul.f32 -1.442695, %v6964_v21 }
 0x8c3   :  { %7108 = vpow2.f32 %v4329_v37 }
 0x8c4   :  { %7110 = vpow2.f32 %v4330_v61 }
 0x8cd   :  { %v7109_v12 = vpop.eup %7108 }
 0x8ce   :  { %v3297_v56 = vadd.f32 1.0, %v7109_v12  ;;  %v7111_v41 = vpop.eup %7110 }
 0x8cf   :  { %v3304_v60 = vadd.f32 1.0, %v7111_v41 }
 0x8d0   :  { %7112 = vrcp.f32 %v3297_v56 }
 0x8d1   :  { %7114 = vrcp.f32 %v3304_v60 }
 0x8da   :  { %v7113_v16 = vpop.eup %7112 }
 0x8db   :  { %v3307_v26 = vmul.f32 %v7113_v16, %v3290_v8  ;;  %v7115_v59 = vpop.eup %7114 }
 0x8dc   :  { %v3312_v16 = vmul.f32 %v7115_v59, %v8288_v50 }
 0x8dd   :  { %v3308_v38 = vadd.f32 %v3307_v26, %v3149_v32  ;;  %v3310_v26 = vsub.f32 1.0, %v7115_v59 }
 0x8de   :  { %v3380_v58 = vpop.f32.mrb[28].mxu0  ;;  %v3451_v2 = vpop.f32.mrb[38].mxu1 }
 0x8df   :  { %7116 = vtanh.f32 %v3308_v38  ;;  %v3381_v37 = vadd.f32 %v3380_v58, %v7567_v48  ;;  %v3382_v21 = vpop.f32.mrb[29].mxu0  ;;  %v5421_v61 = vpop.f32.mrb[39].mxu1 }
 0x8e0   :  { %v3383_v4 = vadd.f32 %v3382_v21, %v8826_v17 }
 0x8e1   :  { %v3456_v12 = vrot.slane %v3381_v37, 4 }
 0x8e2   :  { %v3466_v56 = vrot.slane %v3383_v4, 4  ;;  %v3452_v4 = vadd.f32 %v3451_v2, %v8829_v33  ;;  %v9043_v2 = vld [vmem:[#allocation19_spill] sm:$0xff] }
 0x8e3   :  { %v3458_v41 = vadd.f32 %v3456_v12, %v8950_v24 }
 0x8e4   :  { %v3468_v5 = vadd.f32 %v3466_v56, %v8991_v11  ;;  %v3476_v12 = vrot.slane %v3452_v4, 4  ;;  %v9048_v4 = vld [vmem:[#allocation26_spill] sm:$0xff] }
 0x8e5   :  { %v4331_v22 = vmul.f32 -1.442695, %v3458_v41  ;;  %v3483_v41 = vrot.slane %v8293_v47, 6  ;;  %v9042_v47 = vld [vmem:[#allocation22_spill] sm:$0xff] }
 0x8e6   :  { %v4332_v8 = vmul.f32 -1.442695, %v3468_v5 }
 0x8e7   :  { %7118 = vpow2.f32 %v4331_v22 }
 0x8e8   :  { %7120 = vpow2.f32 %v4332_v8 }
 0x8e9   :  { %v7117_v32 = vpop.eup %7116 }
 0x8ea   :  { %v3311_v60 = vmul.f32 %v7117_v32, %v3310_v26 }
 0x8ec   :  { %v8418_v38 = vadd.f32 %v3312_v16, %v3311_v60 }
 0x8f1   :  { %v7119_v58 = vpop.eup %7118 }
 0x8f2   :  { %v7121_v21 = vpop.eup %7120  ;;  %v3462_v37 = vadd.f32 1.0, %v7119_v58  ;;  %v9044_v58 = vld [vmem:[#allocation20_spill] sm:$0xff] }
 0x8f3   :  { %v3472_v61 = vadd.f32 1.0, %v7121_v21  ;;  %v9045_v21 = vld [vmem:[#allocation23_spill] sm:$0xff] }
 0x8f4   :  { %7122 = vrcp.f32 %v3462_v37  ;;  %v9046_v37 = vld [vmem:[#allocation24_spill] sm:$0xff] }
 0x8f5   :  { %7124 = vrcp.f32 %v3472_v61  ;;  %v9047_v61 = vld [vmem:[#allocation25_spill] sm:$0xff] }
 0x8fe   :  { %v7123_v56 = vpop.eup %7122 }
 0x8ff   :  { %v7125_v5 = vpop.eup %7124  ;;  %v3478_v22 = vmul.f32 %v7123_v56, %v3476_v12  ;;  %v9049_v12 = vld [vmem:[#allocation27_spill] sm:$0xff]  ;;  %v9050_v56 = vld [vmem:[#allocation28_spill] sm:$0xff] }
 0x900   :  { %v3485_v8 = vmul.f32 %v7125_v5, %v3483_v41  ;;  %v3481_v50 = vsub.f32 1.0, %v7125_v5  ;;  %v9051_v41 = vld [vmem:[#allocation29_spill] sm:$0xff]  ;;  %v9052_v5 = vld [vmem:[#allocation30_spill] sm:$0xff] }
 0x901   :  { %v3479_v26 = vadd.f32 %v3478_v22, %v8952_v0  ;;  %v9053_v22 = vld [vmem:[#allocation31_spill] sm:$0xff] }
 0x903   :  { %7126 = vtanh.f32 %v3479_v26  ;;  %v9055_v26 = vld [vmem:[#allocation33_spill] sm:$0xff] }
 0x90d   :  { %v7127_v59 = vpop.eup %7126 }
 0x90e   :  { %v3482_v32 = vmul.f32 %v7127_v59, %v3481_v50  ;;  %v9056_v50 = vld [vmem:[#allocation34_spill] sm:$0xff]  ;;  %v9057_v59 = vld [vmem:[#allocation35_spill] sm:$0xff] }
 0x910   :  { %v8423_v60 = vadd.f32 %v3485_v8, %v3482_v32  ;;  %v9054_v8 = vld [vmem:[#allocation32_spill] sm:$0xff] }
 0x911   :  { %v9058_v32 = vld [vmem:[#allocation36_spill] sm:$0xff] }
 0x912   :  { %v8426_v16 = vrot.slane %v8423_v60, 4 }
 0x914   :  { %3555 = vmatmul.mubr.f32.vlgmr.msra.gmra.mrb[30].mxu0 %v8426_v16  ;;  %5455 = vmatmul.mubr.f32.vlgmr.msra.gmra.mrb[40].mxu1 %v8426_v16 }
 0x915   :  { %6720 = vmatpush1.bf16.msra.mxu0 %v8831_v15  ;;  %6751 = vmatpush3.bf16.msra.mxu1 %v8832_v55 }
 0x916   :  { %6722 = vmatprep.subr.bf16.mxu0 %v8833_v29  ;;  %6752 = vmatprep.subr.bf16.mxu1 %v8802_v34 }
 0x917   :  { %3695 = vmatprep.mubr.f32.mxu0 %v8804_v20  ;;  %5489 = vmatprep.mubr.msk.f32.mxu1 %vm7235_vm2, %v8804_v20 }
 0x919   :  { %6724 = vmatpush1.bf16.msra.mxu0 %v8834_v27  ;;  %6754 = vmatpush3.bf16.msra.mxu1 %v8835_v1 }
 0x91a   :  { %6726 = vmatprep.subr.bf16.mxu0 %v8836_v53  ;;  %6755 = vmatprep.subr.bf16.mxu1 %v8802_v34 }
 0x91d   :  { %6728 = vmatpush1.bf16.msra.mxu0 %v8837_v14  ;;  %6757 = vmatpush3.bf16.msra.mxu1 %v8838_v7 }
 0x91e   :  { %6730 = vmatprep.subr.bf16.mxu0 %v8839_v42  ;;  %6758 = vmatprep.subr.bf16.mxu1 %v8802_v34 }
 0x921   :  { %6732 = vmatpush1.bf16.msra.mxu0 %v8840_v51  ;;  %6760 = vmatpush3.bf16.msra.mxu1 %v8841_v23 }
 0x922   :  { %6734 = vmatprep.subr.bf16.mxu0 %v8842_v52  ;;  %6761 = vmatprep.subr.bf16.mxu1 %v8802_v34 }
 0x925   :  { %6736 = vmatpush1.bf16.msra.mxu0 %v7632_v36  ;;  %6763 = vmatpush3.bf16.msra.mxu1 %v7634_v45 }
 0x926   :  { %6738 = vmatprep.subr.bf16.mxu0 %v8843_v6  ;;  %6764 = vmatprep.subr.bf16.mxu1 %v8802_v34 }
 0x929   :  { %6740 = vmatpush1.bf16.msra.mxu0 %v8844_v46  ;;  %6766 = vmatpush3.bf16.msra.mxu1 %v7644_v43 }
 0x92a   :  { %6742 = vmatprep.subr.bf16.mxu0 %v7648_v62  ;;  %6767 = vmatprep.subr.bf16.mxu1 %v8802_v34 }
 0x92d   :  { %6744 = vmatpush1.bf16.msra.mxu0 %v7652_v54  ;;  %6769 = vmatpush3.bf16.msra.mxu1 %v7654_v39 }
 0x92e   :  { %6746 = vmatprep.subr.bf16.mxu0 %v7658_v31  ;;  %6770 = vmatprep.subr.bf16.mxu1 %v8802_v34 }
 0x931   :  { %6748 = vmatpush1.bf16.msra.mxu0 %v7662_v57  ;;  %6772 = vmatpush3.bf16.msra.mxu1 %v7664_v3 }
 0x932   :  { %6774 = vmatprep.subr.bf16.mxu0 %v7359_v9  ;;  %6805 = vmatprep.subr.bf16.mxu1 %v8802_v34  ;;  %v9032_v9 = vld [vmem:[#allocation10_spill] sm:$0xff] }
 0x934   :  { %3696 = vmatmul.mubr.f32.vlgmr.msra.gmra.mrb[30].mxu0 %v8418_v38  ;;  %5490 = vmatmul.mubr.f32.vlgmr.msra.gmra.mrb[42].mxu1 %v8418_v38 }
 0x935   :  { %6776 = vmatpush1.bf16.msra.mxu0 %v7361_v10  ;;  %6807 = vmatpush3.bf16.msra.mxu1 %v7392_v35  ;;  %v9033_v10 = vld [vmem:[#allocation15_spill] sm:$0xff]  ;;  %v9037_v35 = vld [vmem:[#allocation13_spill] sm:$0xff] }
 0x936   :  { %6778 = vmatprep.subr.bf16.mxu0 %v7364_v13  ;;  %6808 = vmatprep.subr.bf16.mxu1 %v8802_v34  ;;  %v9034_v13 = vld [vmem:[#allocation11_spill] sm:$0xff] }
 0x937   :  { %3857 = vmatprep.mubr.f32.mxu0 %v8804_v20  ;;  %5524 = vmatprep.mubr.msk.f32.mxu1 %vm7235_vm2, %v8804_v20 }
 0x939   :  { %6780 = vmatpush1.bf16.msra.mxu0 %v7370_v18  ;;  %6810 = vmatpush3.bf16.msra.mxu1 %v7400_v40  ;;  %v9035_v18 = vld [vmem:[#allocation12_spill] sm:$0xff] }
 0x93a   :  { %6782 = vmatprep.subr.bf16.mxu0 %v7374_v19  ;;  %6811 = vmatprep.subr.bf16.mxu1 %v8802_v34  ;;  %v9036_v19 = vld [vmem:[#allocation18_spill] sm:$0xff]  ;;  %v9040_v40 = vld [vmem:[#allocation16_spill] sm:$0xff] }
 0x93d   :  { %6784 = vmatpush1.bf16.msra.mxu0 %v7380_v25  ;;  %6813 = vmatpush3.bf16.msra.mxu1 %v7412_v49  ;;  %v9038_v25 = vld [vmem:[#allocation14_spill] sm:$0xff]  ;;  %v9041_v49 = vld [vmem:[#allocation17_spill] sm:$0xff] }
 0x93e   :  { %6786 = vmatprep.subr.bf16.mxu0 %v7387_v28  ;;  %6814 = vmatprep.subr.bf16.mxu1 %v8802_v34  ;;  %v9039_v28 = vld [vmem:[#allocation21_spill] sm:$0xff] }
 0x941   :  { %6788 = vmatpush1.bf16.msra.mxu0 %v9032_v9  ;;  %6816 = vmatpush3.bf16.msra.mxu1 %v9033_v10  ;;  %v9060_v9 = vld [vmem:[#allocation38_spill] sm:$0xff]  ;;  %v9061_v10 = vld [vmem:[#allocation39_spill] sm:$0xff] }
 0x942   :  { %6790 = vmatprep.subr.bf16.mxu0 %v9034_v13  ;;  %6817 = vmatprep.subr.bf16.mxu1 %v8802_v34  ;;  %v9062_v13 = vld [vmem:[#allocation40_spill] sm:$0xff] }
 0x945   :  { %6792 = vmatpush1.bf16.msra.mxu0 %v9035_v18  ;;  %6819 = vmatpush3.bf16.msra.mxu1 %v9036_v19  ;;  %v9063_v18 = vld [vmem:[#allocation41_spill] sm:$0xff]  ;;  %v9064_v19 = vld [vmem:[#allocation42_spill] sm:$0xff] }
 0x946   :  { %6794 = vmatprep.subr.bf16.mxu0 %v9037_v35  ;;  %6820 = vmatprep.subr.bf16.mxu1 %v8802_v34  ;;  %v9065_v35 = vld [vmem:[#allocation43_spill] sm:$0xff] }
 0x949   :  { %6796 = vmatpush1.bf16.msra.mxu0 %v9038_v25  ;;  %6822 = vmatpush3.bf16.msra.mxu1 %v9039_v28  ;;  %v9066_v25 = vld [vmem:[#allocation44_spill] sm:$0xff]  ;;  %v9067_v28 = vld [vmem:[#allocation45_spill] sm:$0xff] }
 0x94a   :  { %6798 = vmatprep.subr.bf16.mxu0 %v9040_v40  ;;  %6823 = vmatprep.subr.bf16.mxu1 %v8802_v34  ;;  %v9068_v40 = vld [vmem:[#allocation46_spill] sm:$0xff] }
 0x94d   :  { %6800 = vmatpush1.bf16.msra.mxu0 %v9041_v49  ;;  %6825 = vmatpush3.bf16.msra.mxu1 %v9042_v47  ;;  %v9069_v49 = vld [vmem:[#allocation47_spill] sm:$0xff]  ;;  %v9070_v47 = vld [vmem:[#allocation48_spill] sm:$0xff] }
 0x94e   :  { %6802 = vmatprep.subr.bf16.mxu0 %v9043_v2  ;;  %6826 = vmatprep.subr.bf16.mxu1 %v8802_v34 }
 0x951   :  { %6804 = vmatpush1.bf16.msra.mxu0 %v9044_v58  ;;  %6828 = vmatpush3.bf16.msra.mxu1 %v9045_v21 }
 0x952   :  { %6830 = vmatprep.subr.bf16.mxu0 %v9046_v37  ;;  %6861 = vmatprep.subr.bf16.mxu1 %v8802_v34 }
 0x954   :  { %3858 = vmatmul.mubr.f32.vlgmr.msra.gmra.mrb[32].mxu0 %v8426_v16  ;;  %5525 = vmatmul.mubr.f32.vlgmr.msra.gmra.mrb[44].mxu1 %v8426_v16  ;;  %v9059_v16 = vld [vmem:[#allocation37_spill] sm:$0xff] }
 0x955   :  { %6832 = vmatpush1.bf16.msra.mxu0 %v9047_v61  ;;  %6863 = vmatpush3.bf16.msra.mxu1 %v9048_v4 }
 0x956   :  { %6834 = vmatprep.subr.bf16.mxu0 %v9049_v12  ;;  %6864 = vmatprep.subr.bf16.mxu1 %v8802_v34 }
 0x957   :  { %4033 = vmatprep.mubr.f32.mxu0 %v8804_v20  ;;  %5559 = vmatprep.mubr.msk.f32.mxu1 %vm7235_vm2, %v8804_v20 }
 0x959   :  { %6836 = vmatpush1.bf16.msra.mxu0 %v9050_v56  ;;  %6866 = vmatpush3.bf16.msra.mxu1 %v9051_v41 }
 0x95a   :  { %6838 = vmatprep.subr.bf16.mxu0 %v9052_v5  ;;  %6867 = vmatprep.subr.bf16.mxu1 %v8802_v34 }
 0x95d   :  { %6840 = vmatpush1.bf16.msra.mxu0 %v9053_v22  ;;  %6869 = vmatpush3.bf16.msra.mxu1 %v9054_v8 }
 0x95e   :  { %6842 = vmatprep.subr.bf16.mxu0 %v9055_v26  ;;  %6870 = vmatprep.subr.bf16.mxu1 %v8802_v34 }
 0x961   :  { %6844 = vmatpush1.bf16.msra.mxu0 %v9056_v50  ;;  %6872 = vmatpush3.bf16.msra.mxu1 %v9057_v59  ;;  %v9071_v59 = vld [vmem:[#allocation73_spill] sm:$0xff] }
 0x962   :  { %6846 = vmatprep.subr.bf16.mxu0 %v9058_v32  ;;  %6873 = vmatprep.subr.bf16.mxu1 %v8802_v34 }
 0x965   :  { %6848 = vmatpush1.bf16.msra.mxu0 %v9059_v16  ;;  %6875 = vmatpush3.bf16.msra.mxu1 %v9060_v9 }
 0x966   :  { %6850 = vmatprep.subr.bf16.mxu0 %v9061_v10  ;;  %6876 = vmatprep.subr.bf16.mxu1 %v8802_v34 }
 0x969   :  { %6852 = vmatpush1.bf16.msra.mxu0 %v9062_v13  ;;  %6878 = vmatpush3.bf16.msra.mxu1 %v9063_v18 }
 0x96a   :  { %6854 = vmatprep.subr.bf16.mxu0 %v9064_v19  ;;  %6879 = vmatprep.subr.bf16.mxu1 %v8802_v34 }
 0x96d   :  { %6856 = vmatpush1.bf16.msra.mxu0 %v9065_v35  ;;  %6881 = vmatpush3.bf16.msra.mxu1 %v9066_v25 }
 0x96e   :  { %6858 = vmatprep.subr.bf16.mxu0 %v9067_v28  ;;  %6882 = vmatprep.subr.bf16.mxu1 %v8802_v34 }
 0x971   :  { %6860 = vmatpush1.bf16.msra.mxu0 %v9068_v40  ;;  %6884 = vmatpush3.bf16.msra.mxu1 %v9069_v49 }
 0x972   :  { %6886 = vmatprep.subr.bf16.mxu0 %v9070_v47  ;;  %6917 = vmatprep.subr.bf16.mxu1 %v8802_v34 }
 0x9e7   :  { %v3627_v2 = vpop.f32.mrb[40].mxu1 }
 0x9e8   :  { %v5456_v58 = vpop.f32.mrb[41].mxu1  ;;  %v3628_v9 = vadd.f32 %v3627_v2, %v7766_v63 }
 0xa07   :  { %v3697_v21 = vpop.f32.mrb[30].mxu0  ;;  %v3768_v37 = vpop.f32.mrb[42].mxu1 }
 0xa08   :  { %v6966_v61 = vadd.f32 %v8907_v44, %v3697_v21  ;;  %v3699_v4 = vpop.f32.mrb[31].mxu0  ;;  %v5491_v12 = vpop.f32.mrb[43].mxu1  ;;  %v3769_v32 = vadd.f32 %v3768_v37, %v9071_v59 }
 0xa09   :  { %v6968_v41 = vadd.f32 %v9030_v30, %v3699_v4 }
 0xa0a   :  { %v4333_v56 = vmul.f32 -1.442695, %v6966_v61 }
 0xa0b   :  { %v4334_v5 = vmul.f32 -1.442695, %v6968_v41 }
 0xa0c   :  { %7128 = vpow2.f32 %v4333_v56 }
 0xa0d   :  { %7130 = vpow2.f32 %v4334_v5 }
 0xa16   :  { %v7129_v22 = vpop.eup %7128 }
 0xa17   :  { %v3776_v8 = vadd.f32 1.0, %v7129_v22  ;;  %v7131_v26 = vpop.eup %7130 }
 0xa18   :  { %v3783_v50 = vadd.f32 1.0, %v7131_v26 }
 0xa19   :  { %7132 = vrcp.f32 %v3776_v8 }
 0xa1a   :  { %7134 = vrcp.f32 %v3783_v50  ;;  %v3962_v50 = vrot.slane %v8423_v60, 6 }
 0xa23   :  { %v7133_v16 = vpop.eup %7132 }
 0xa24   :  { %v3786_v10 = vmul.f32 %v7133_v16, %v3769_v32  ;;  %v7135_v37 = vpop.eup %7134 }
 0xa25   :  { %v3789_v4 = vsub.f32 1.0, %v7135_v37 }
 0xa26   :  { %v3787_v13 = vadd.f32 %v3786_v10, %v3628_v9 }
 0xa27   :  { %v3859_v18 = vpop.f32.mrb[32].mxu0  ;;  %v3930_v19 = vpop.f32.mrb[44].mxu1 }
 0xa28   :  { %7136 = vtanh.f32 %v3787_v13  ;;  %v3860_v35 = vadd.f32 %v3859_v18, %v7567_v48  ;;  %v3861_v25 = vpop.f32.mrb[33].mxu0  ;;  %v5526_v28 = vpop.f32.mrb[45].mxu1  ;;  %v3791_v48 = vmul.f32 %v7135_v37, %v8418_v38 }
 0xa29   :  { %v3862_v40 = vadd.f32 %v3861_v25, %v8826_v17 }
 0xa2a   :  { %v3935_v49 = vrot.slane %v3860_v35, 2 }
 0xa2b   :  { %v3945_v47 = vrot.slane %v3862_v40, 2 }
 0xa2c   :  { %v3937_v58 = vadd.f32 %v3935_v49, %v8950_v24  ;;  %v3931_v24 = vadd.f32 %v3930_v19, %v8829_v33 }
 0xa2d   :  { %v3947_v21 = vadd.f32 %v3945_v47, %v8991_v11 }
 0xa2e   :  { %v4335_v2 = vmul.f32 -1.442695, %v3937_v58  ;;  %v3955_v11 = vrot.slane %v3931_v24, 2 }
 0xa2f   :  { %v4336_v61 = vmul.f32 -1.442695, %v3947_v21 }
 0xa30   :  { %7138 = vpow2.f32 %v4335_v2 }
 0xa31   :  { %7140 = vpow2.f32 %v4336_v61 }
 0xa32   :  { %v7137_v12 = vpop.eup %7136 }
 0xa33   :  { %v3790_v56 = vmul.f32 %v7137_v12, %v3789_v4 }
 0xa35   :  { %v8548_v41 = vadd.f32 %v3791_v48, %v3790_v56 }
 0xa3a   :  { %v7139_v5 = vpop.eup %7138 }
 0xa3b   :  { %v7141_v17 = vpop.eup %7140  ;;  %v3941_v22 = vadd.f32 1.0, %v7139_v5 }
 0xa3c   :  { %v3951_v8 = vadd.f32 1.0, %v7141_v17 }
 0xa3d   :  { %7142 = vrcp.f32 %v3941_v22 }
 0xa3e   :  { %7144 = vrcp.f32 %v3951_v8 }
 0xa47   :  { %v7143_v26 = vpop.eup %7142 }
 0xa48   :  { %v7145_v32 = vpop.eup %7144  ;;  %v3957_v16 = vmul.f32 %v7143_v26, %v3955_v11 }
 0xa49   :  { %v3964_v9 = vmul.f32 %v7145_v32, %v3962_v50  ;;  %v3960_v38 = vsub.f32 1.0, %v7145_v32 }
 0xa4a   :  { %v3958_v10 = vadd.f32 %v3957_v16, %v8952_v0 }
 0xa4c   :  { %7146 = vtanh.f32 %v3958_v10 }
 0xa56   :  { %v7147_v13 = vpop.eup %7146 }
 0xa57   :  { %v3961_v18 = vmul.f32 %v7147_v13, %v3960_v38 }
 0xa59   :  { %v3965_v35 = vadd.f32 %v3964_v9, %v3961_v18 }
 0xa5b   :  { %v3967_v25 = vrot.slane %v3965_v35, 6 }
 0xa5d   :  { %4034 = vmatmul.mubr.f32.vlgmr.msra.gmra.mrb[34].mxu0 %v3967_v25  ;;  %5560 = vmatmul.mubr.f32.vlgmr.msra.gmra.mrb[46].mxu1 %v3967_v25 }
 0xa5e   :  { %6888 = vmatpush1.bf16.msra.mxu0 %v8831_v15  ;;  %6919 = vmatpush3.bf16.msra.mxu1 %v8832_v55 }
 0xa5f   :  { %6890 = vmatprep.subr.bf16.mxu0 %v8833_v29  ;;  %6920 = vmatprep.subr.bf16.mxu1 %v8802_v34 }
 0xa60   :  { %4174 = vmatprep.mubr.f32.mxu0 %v8804_v20  ;;  %5594 = vmatprep.mubr.msk.f32.mxu1 %vm7235_vm2, %v8804_v20 }
 0xa62   :  { %6892 = vmatpush1.bf16.msra.mxu0 %v8834_v27  ;;  %6922 = vmatpush3.bf16.msra.mxu1 %v8835_v1 }
 0xa63   :  { %6894 = vmatprep.subr.bf16.mxu0 %v8836_v53  ;;  %6923 = vmatprep.subr.bf16.mxu1 %v8802_v34 }
 0xa66   :  { %6896 = vmatpush1.bf16.msra.mxu0 %v8837_v14  ;;  %6925 = vmatpush3.bf16.msra.mxu1 %v8838_v7 }
 0xa67   :  { %6898 = vmatprep.subr.bf16.mxu0 %v8839_v42  ;;  %6926 = vmatprep.subr.bf16.mxu1 %v8802_v34 }
 0xa6a   :  { %6900 = vmatpush1.bf16.msra.mxu0 %v8840_v51  ;;  %6928 = vmatpush3.bf16.msra.mxu1 %v8841_v23 }
 0xa6b   :  { %6902 = vmatprep.subr.bf16.mxu0 %v8842_v52  ;;  %6929 = vmatprep.subr.bf16.mxu1 %v8802_v34 }
 0xa6e   :  { %6904 = vmatpush1.bf16.msra.mxu0 %v7632_v36  ;;  %6931 = vmatpush3.bf16.msra.mxu1 %v7634_v45 }
 0xa6f   :  { %6906 = vmatprep.subr.bf16.mxu0 %v8843_v6  ;;  %6932 = vmatprep.subr.bf16.mxu1 %v8802_v34  ;;  %v4339_v6 = vld [vmem:[%s8608_s9] ss:$0 sm:$0xff] }
 0xa72   :  { %6908 = vmatpush1.bf16.msra.mxu0 %v8844_v46  ;;  %6934 = vmatpush3.bf16.msra.mxu1 %v7644_v43 }
 0xa73   :  { %6910 = vmatprep.subr.bf16.mxu0 %v7648_v62  ;;  %6935 = vmatprep.subr.bf16.mxu1 %v8802_v34 }
 0xa76   :  { %6912 = vmatpush1.bf16.msra.mxu0 %v7652_v54  ;;  %6937 = vmatpush3.bf16.msra.mxu1 %v7654_v39 }
 0xa77   :  { %6914 = vmatprep.subr.bf16.mxu0 %v7658_v31  ;;  %6938 = vmatprep.subr.bf16.mxu1 %v8802_v34 }
 0xa7a   :  { %6916 = vmatpush1.bf16.msra.mxu0 %v7662_v57  ;;  %6940 = vmatpush3.bf16.msra.mxu1 %v7664_v3 }
 0xa7d   :  { %4175 = vmatmul.mubr.f32.vlgmr.msra.gmra.mrb[34].mxu0 %v8548_v41  ;;  %5595 = vmatmul.mubr.f32.vlgmr.msra.gmra.mrb[48].mxu1 %v8548_v41 }
 0xb30   :  { %v4106_v20 = vpop.f32.mrb[46].mxu1 }
 0xb31   :  { %v5561_v36 = vpop.f32.mrb[47].mxu1  ;;  %v4107_v1 = vadd.f32 %v4106_v20, %v7766_v63  ;;  %v4340_v63 = vld [vmem:[#allocation2] ss:$0 sm:$0xff] }
 0xb50   :  { %v4176_v45 = vpop.f32.mrb[34].mxu0  ;;  %v4247_v43 = vpop.f32.mrb[48].mxu1 }
 0xb51   :  { %v6970_v62 = vadd.f32 %v8907_v44, %v4176_v45  ;;  %v4178_v54 = vpop.f32.mrb[35].mxu0  ;;  %v5596_v39 = vpop.f32.mrb[49].mxu1  ;;  %v4248_v29 = vadd.f32 %v4247_v43, %v9071_v59 }
 0xb52   :  { %v6972_v31 = vadd.f32 %v9030_v30, %v4178_v54 }
 0xb53   :  { %v4337_v33 = vmul.f32 -1.442695, %v6970_v62 }
 0xb54   :  { %v4338_v34 = vmul.f32 -1.442695, %v6972_v31 }
 0xb55   :  { %7148 = vpow2.f32 %v4337_v33 }
 0xb56   :  { %7150 = vpow2.f32 %v4338_v34 }
 0xb5f   :  { %v7149_v57 = vpop.eup %7148 }
 0xb60   :  { %v4255_v3 = vadd.f32 1.0, %v7149_v57  ;;  %v7151_v15 = vpop.eup %7150 }
 0xb61   :  { %v4262_v55 = vadd.f32 1.0, %v7151_v15 }
 0xb62   :  { %7152 = vrcp.f32 %v4255_v3 }
 0xb63   :  { %7154 = vrcp.f32 %v4262_v55 }
 0xb6c   :  { %v7153_v27 = vpop.eup %7152 }
 0xb6d   :  { %v4265_v53 = vmul.f32 %v7153_v27, %v4248_v29  ;;  %v7155_v7 = vpop.eup %7154 }
 0xb6e   :  { %v4268_v42 = vsub.f32 1.0, %v7155_v7  ;;  %v4270_v52 = vmul.f32 %v7155_v7, %v8548_v41 }
 0xb6f   :  { %v4266_v14 = vadd.f32 %v4265_v53, %v4107_v1 }
 0xb71   :  { %7156 = vtanh.f32 %v4266_v14 }
 0xb7b   :  { %v7157_v51 = vpop.eup %7156 }
 0xb7c   :  { %v4269_v23 = vmul.f32 %v7157_v51, %v4268_v42 }
 0xb7e   :  { %v4271_v46 = vadd.f32 %v4270_v52, %v4269_v23 }
 0xb80   :  { %v4279_v44 = vmul.f32 %v4339_v6, %v4271_v46 }
 0xb82   :  { %v4281_v0 = vsel %vm4280_vm3, %v4279_v44, 0.0 }
 0xb83   :  { %4282 = vadd.xlane.f32.xlu0 %v4281_v0 }
 0xc10   :  { %v4283_v30 = vpop.xlane.xlu0 %4282 }
 0xc11   :  { %v4291_v60 = vadd.f32 %v4340_v63, %v4283_v30 }
 0xc13   :  { %4293 = vst.msk [vmem:[%s8610_s11] sm:$0x3] %vm4292_vm4, %v4291_v60 }
 0xc14   :  { %4298 = vsyncpa [#allocation4], 1 }
 0xc15   :  { %4299 = vsyncpa [#allocation6], 1 }

</bundles_post_ra>
